<compile_context>
chip_gen: v6e
topology: v6e:2x2x1
jax: 0.10.0
libtpu: 0.0.40
codegen_flags: <defaults>
</compile_context>

<pallas_src>
import jax
import jax.numpy as jnp
from jax.experimental import pallas as pl
from jax.experimental.pallas import tpu as pltpu

# ---- synthetic (scaled-down) BERT config -------------------------------------
H = 128          # hidden size (original bert-base: 768)
NH = 4           # attention heads (original: 12)
HD = H // NH     # head dim
FF = 512         # intermediate size (original: 3072)
LAYERS = 2       # encoder layers (original: 12)
VOCAB = 1000     # vocab size (original: 30522)
S = 16           # padded subword sequence length
B = 2            # batch
W = 6            # max word-level (token_loc) sequence length

MXU_DTYPE = jnp.bfloat16   # matmul-operand dtype; elementwise math stays f32

# Batch rows per grid block.  BLOCK_B = B fuses the whole batch into one block
# (best on single-TC v5e/v6e).  On v7x set BLOCK_B = 1 so the leading "parallel"
# grid axis spreads batch blocks across the 2 TensorCores.
BLOCK_B = B
NB = B // BLOCK_B

# rows of the packed per-layer small-vector slab (LAYERS, N_VEC, H)
VEC_BQ, VEC_BK, VEC_BV, VEC_BO, VEC_G1, VEC_BE1, VEC_B2, VEC_G2, VEC_BE2 = range(9)
N_VEC = 9
STACK_ORDER = ("wqkv", "wo", "vec", "w1", "b1", "w2")


def _layernorm(x, g, b, eps=1e-12):
    mu = jnp.mean(x, axis=-1, keepdims=True)
    var = jnp.mean((x - mu) ** 2, axis=-1, keepdims=True)
    return (x - mu) * jax.lax.rsqrt(var + eps) * g + b


# ------------------------------------------------------------------------------
# Pallas kernel: full BERT encoder stack (all layers) + pooler, one call.
# Grid = (batch blocks ["parallel"], layers ["arbitrary"]).  The hidden state is
# resident in the output block across the layer axis.
# ------------------------------------------------------------------------------
def bert_stack_kernel(mask_ref, x_ref,
                      wqkv_ref, wo_ref, vec_ref, w1_ref, b1_ref, w2_ref,
                      wp_ref, bp_ref,
                      h_ref, pooled_ref,
                      qkv_sc, ctx_sc):
    l = pl.program_id(1)
    BB = h_ref.shape[0]                  # batch rows in this block (= BLOCK_B)
    M = BB * S                           # fused matmul row count

    # Layer 0: seed the resident hidden state from the embeddings block.
    @pl.when(l == 0)
    def _():
        h_ref[...] = x_ref[...]

    x3 = h_ref[...]                      # (BB, S, H) f32, resident across layers
    x2 = x3.reshape(M, H)
    xb = x2.astype(MXU_DTYPE)

    vec = vec_ref[0]                     # (N_VEC, H) f32: packed biases / LN params
    # additive mask, head-major flattened batch: (NH*BB, 1, S); hoisted in wrapper
    add_mask = mask_ref[...].reshape(NH * BB, 1, S)

    # ---- fused QKV projection: one (M,H)@(H,3H) MXU matmul --------------------
    qkv = jnp.dot(xb, wqkv_ref[0], preferred_element_type=jnp.float32)   # (M, 3H)
    q3 = (qkv[:, 0 * H:1 * H] + vec[VEC_BQ]).reshape(BB, S, H).astype(MXU_DTYPE)
    k3 = (qkv[:, 1 * H:2 * H] + vec[VEC_BK]).reshape(BB, S, H).astype(MXU_DTYPE)
    v3 = (qkv[:, 2 * H:3 * H] + vec[VEC_BV]).reshape(BB, S, H).astype(MXU_DTYPE)

    # ---- head split: static lane slices -> head-major scratch (NH*BB, S, HD) --
    for hh in range(NH):
        sl = slice(hh * HD, (hh + 1) * HD)      # lanes of head hh
        dst = slice(hh * BB, (hh + 1) * BB)     # head-major rows in scratch
        qkv_sc[0, dst] = q3[:, :, sl]
        qkv_sc[1, dst] = k3[:, :, sl]
        qkv_sc[2, dst] = v3[:, :, sl]
    qh = qkv_sc[0]                              # (NH*BB, S, HD) bf16
    kh = qkv_sc[1]
    vh = qkv_sc[2]

    # ---- head-batched attention: one einsum per stage -------------------------
    scale = 1.0 / (HD ** 0.5)
    s = jnp.einsum('bqd,bkd->bqk', qh, kh,
                   preferred_element_type=jnp.float32) * scale           # (NH*BB,S,S)
    s = s + add_mask
    s = s - jnp.max(s, axis=-1, keepdims=True)
    p = jnp.exp(s)
    # approx reciprocal (EUP slot); ~1e-3 rel. error vs exact divide.
    p = p * pl.reciprocal(jnp.sum(p, axis=-1, keepdims=True), approx=True)
    ctx = jnp.einsum('bqk,bkd->bqd', p.astype(MXU_DTYPE), vh,
                     preferred_element_type=jnp.float32)                 # (NH*BB,S,HD)

    # ---- merge heads back lane-contiguously, single K=H output projection -----
    for hh in range(NH):
        ctx_sc[:, :, hh * HD:(hh + 1) * HD] = ctx[hh * BB:(hh + 1) * BB]
    ctx_all = ctx_sc[...].reshape(M, H)
    attn = jnp.dot(ctx_all.astype(MXU_DTYPE), wo_ref[0],
                   preferred_element_type=jnp.float32) + vec[VEC_BO]

    h1 = _layernorm(x2 + attn, vec[VEC_G1], vec[VEC_BE1])                # f32

    # ---- feed-forward ----------------------------------------------------------
    ff = jnp.dot(h1.astype(MXU_DTYPE), w1_ref[0],
                 preferred_element_type=jnp.float32) + b1_ref[0]
    # TODO(synk): bert-base uses exact (erf) GELU; tanh approximation used here.
    ff = jax.nn.gelu(ff, approximate=True)
    ff = jnp.dot(ff.astype(MXU_DTYPE), w2_ref[0],
                 preferred_element_type=jnp.float32) + vec[VEC_B2]
    h2 = _layernorm(h1 + ff, vec[VEC_G2], vec[VEC_BE2])                  # (M, H)

    h3 = h2.reshape(BB, S, H)
    h_ref[...] = h3                      # stays resident; written to HBM once per b

    # Pooler fused into the last layer step: pooled = tanh(h[:,0,:] @ Wp + bp)
    @pl.when(l == pl.num_programs(1) - 1)
    def _():
        cls = h3[:, 0:1, :].reshape(BB, H)
        pooled = jnp.tanh(
            jnp.dot(cls.astype(MXU_DTYPE), wp_ref[...],
                    preferred_element_type=jnp.float32) + bp_ref[...])
        pooled_ref[...] = pooled.reshape(BB, 1, H)


def bert_encoder_stack(x, add_mask, layer_stack, wp, bp):
    stacked = [layer_stack[name] for name in STACK_ORDER]

    def _layer_spec(a):
        # (LAYERS, d0, d1) -> stream one layer's slab per grid step (prefetched).
        return pl.BlockSpec((1,) + a.shape[1:], lambda b, l: (l, 0, 0))

    def _const_spec(a):
        # Whole array, same block every step -> loaded once.
        nd = a.ndim
        return pl.BlockSpec(a.shape, lambda b, l, _nd=nd: (0,) * _nd)

    in_specs = (
        [pl.BlockSpec((NH, BLOCK_B, 1, S), lambda b, l: (0, b, 0, 0)),   # add. mask
         pl.BlockSpec((BLOCK_B, S, H), lambda b, l: (b, 0, 0))]          # embeddings
        + [_layer_spec(a) for a in stacked]
        + [_const_spec(wp), _const_spec(bp)]
    )
    out_specs = [
        pl.BlockSpec((BLOCK_B, S, H), lambda b, l: (b, 0, 0)),   # resident hidden state
        pl.BlockSpec((BLOCK_B, 1, H), lambda b, l: (b, 0, 0)),   # pooled ([CLS]) output
    ]
    out_shape = [
        jax.ShapeDtypeStruct((B, S, H), jnp.float32),
        jax.ShapeDtypeStruct((B, 1, H), jnp.float32),
    ]
    h, pooled = pl.pallas_call(
        bert_stack_kernel,
        grid=(NB, LAYERS),
        in_specs=in_specs,
        out_specs=out_specs,
        out_shape=out_shape,
        scratch_shapes=[
            pltpu.VMEM((3, NH * BLOCK_B, S, HD), MXU_DTYPE),   # head-split q/k/v
            pltpu.VMEM((BLOCK_B, S, H), jnp.float32),          # merged attention ctx
        ],
        # embeddings HBM buffer is reused as the hidden-state output buffer
        input_output_aliases={1: 0},
        compiler_params=pltpu.CompilerParams(
            dimension_semantics=("parallel", "arbitrary")),
        # NOTE: at bert-base scale set vmem_limit_bytes and FF-tile w1/w2 (v7x).
    )(add_mask, x, *stacked, wp, bp)
    return h, pooled.reshape(B, H)


# ------------------------------------------------------------------------------
# Parameter initialization (deterministic, synthetic)
# ------------------------------------------------------------------------------
def init_params(key):
    def nrm(k, shape, scale=0.02):
        return scale * jax.random.normal(k, shape, dtype=jnp.float32)

    keys = jax.random.split(key, 5)
    params = {
        "word_emb": nrm(keys[0], (VOCAB, H)),
        "pos_emb": nrm(keys[1], (S, H)),
        "type_emb": nrm(keys[2], (2, H)),
        "emb_g": jnp.ones((H,), jnp.float32),
        "emb_b": jnp.zeros((H,), jnp.float32),
        "wp": nrm(keys[3], (H, H)).astype(MXU_DTYPE),
        "bp": jnp.zeros((1, H), jnp.float32),
    }
    lk = jax.random.split(keys[4], 4)
    # packed small vectors: [bq, bk, bv, bo, g1, be1, b2, g2, be2]
    vec = jnp.zeros((LAYERS, N_VEC, H), jnp.float32)
    vec = vec.at[:, VEC_G1, :].set(1.0).at[:, VEC_G2, :].set(1.0)
    params["layer_stack"] = {
        # matmul weights stored in bf16 (halves DMA + VMEM); vectors stay f32.
        "wqkv": nrm(lk[0], (LAYERS, H, 3 * H)).astype(MXU_DTYPE),   # fused Wq|Wk|Wv
        "wo":   nrm(lk[1], (LAYERS, H, H)).astype(MXU_DTYPE),
        "vec":  vec,
        "w1":   nrm(lk[2], (LAYERS, H, FF)).astype(MXU_DTYPE),
        "b1":   jnp.zeros((LAYERS, 1, FF), jnp.float32),
        "w2":   nrm(lk[3], (LAYERS, FF, H)).astype(MXU_DTYPE),
    }
    return params


# ------------------------------------------------------------------------------
# Full forward (mirrors BertEncoder.forward semantics)
# ------------------------------------------------------------------------------
def bert_encoder_forward(params, token_ids, type_ids, mask_ids, token_loc, lens):
    # Embeddings (glue): word + position + type, then LayerNorm.
    emb = (params["word_emb"][token_ids]
           + params["pos_emb"][None, :, :]
           + params["type_emb"][type_ids])
    x = _layernorm(emb, params["emb_g"], params["emb_b"])

    # Additive attention mask, hoisted + pre-broadcast over heads (head-major):
    # (NH, B, 1, S); 0 valid / -1e9 pad.
    mask = mask_ids.astype(jnp.float32)
    add_mask = (mask - 1.0) * 1e9
    add_mask = jnp.broadcast_to(add_mask[None, :, None, :], (NH, B, 1, S))

    h, utt = bert_encoder_stack(x, add_mask, params["layer_stack"],
                                params["wp"], params["bp"])   # single Pallas call

    # hiddens[idx] = h[idx][token_loc[idx]]; out[idx][:lens[idx]] = hiddens[idx]
    gathered = jnp.take_along_axis(h, token_loc[:, :, None], axis=1)   # (B, W, H)
    word_mask = (jnp.arange(W)[None, :] < lens[:, None]).astype(jnp.float32)
    out = gathered * word_mask[:, :, None]   # rows beyond lens stay zero
    return out, utt


# ------------------------------------------------------------------------------
if __name__ == "__main__":
    key = jax.random.PRNGKey(0)
    pkey, dkey = jax.random.split(key)
    params = init_params(pkey)

    # Synthetic, deterministic stand-ins for get_info() outputs.
    lens = jnp.array([6, 4], dtype=jnp.int32)               # word-level lengths
    sub_lens = jnp.array([11, 7], dtype=jnp.int32)          # subword lengths incl [CLS]/[SEP]
    token_loc = jnp.array([[1, 2, 4, 5, 6, 8],              # first-subword position per word
                           [1, 3, 4, 5, 0, 0]], dtype=jnp.int32)

    token_ids = jax.random.randint(dkey, (B, S), 5, VOCAB, dtype=jnp.int32)
    pos = jnp.arange(S)[None, :]
    token_ids = jnp.where(pos >= sub_lens[:, None], 0, token_ids)        # [PAD]
    token_ids = jnp.where(pos == 0, 3, token_ids)                        # [CLS]-like id
    token_ids = jnp.where(pos == (sub_lens[:, None] - 1), 4, token_ids)  # [SEP]-like id
    mask_ids = (pos < sub_lens[:, None]).astype(jnp.int32)
    type_ids = jnp.zeros((B, S), dtype=jnp.int32)

    fwd = jax.jit(bert_encoder_forward)
    out, utt = fwd(params, token_ids, type_ids, mask_ids, token_loc, lens)
    jax.block_until_ready((out, utt))
    assert out.shape == (B, W, H) and utt.shape == (B, H)
    assert bool(jnp.all(jnp.isfinite(out))) and bool(jnp.all(jnp.isfinite(utt)))
    print("KERNEL_OK")
</pallas_src>

<mosaic_0001>
module attributes {stable_mosaic.version = 11 : i64} {
  func.func @bert_stack_kernel(%arg0: i32, %arg1: i32, %arg2: memref<4x2x1x16xf32, #tpu.memory_space<vmem>>, %arg3: memref<2x16x128xf32, #tpu.memory_space<vmem>>, %arg4: memref<1x128x384xbf16, #tpu.memory_space<vmem>>, %arg5: memref<1x128x128xbf16, #tpu.memory_space<vmem>>, %arg6: memref<1x9x128xf32, #tpu.memory_space<vmem>>, %arg7: memref<1x128x512xbf16, #tpu.memory_space<vmem>>, %arg8: memref<1x1x512xf32, #tpu.memory_space<vmem>>, %arg9: memref<1x512x128xbf16, #tpu.memory_space<vmem>>, %arg10: memref<128x128xbf16, #tpu.memory_space<vmem>>, %arg11: memref<1x128xf32, #tpu.memory_space<vmem>>, %arg12: memref<2x16x128xf32, #tpu.memory_space<vmem>>, %arg13: memref<2x1x128xf32, #tpu.memory_space<vmem>>, %arg14: memref<3x8x16x32xbf16, #tpu.memory_space<vmem>>, %arg15: memref<2x16x128xf32, #tpu.memory_space<vmem>>) attributes {dimension_semantics = [#tpu.dimension_semantics<parallel>, #tpu.dimension_semantics<arbitrary>], iteration_bounds = array<i64: 1, 2>, scalar_prefetch = 0 : i64, scratch_operands = 2 : i64, tpu.core_type = #tpu.core_type<tc>, window_params = [{transform_indices = @transform_0, window_bounds = array<i64: 4, 2, 1, 16>}, {transform_indices = @transform_1, window_bounds = array<i64: 2, 16, 128>}, {transform_indices = @transform_2, window_bounds = array<i64: 1, 128, 384>}, {transform_indices = @transform_3, window_bounds = array<i64: 1, 128, 128>}, {transform_indices = @transform_4, window_bounds = array<i64: 1, 9, 128>}, {transform_indices = @transform_5, window_bounds = array<i64: 1, 128, 512>}, {transform_indices = @transform_6, window_bounds = array<i64: 1, 1, 512>}, {transform_indices = @transform_7, window_bounds = array<i64: 1, 512, 128>}, {pipeline_mode = #tpu.pipeline_mode<synchronous>, transform_indices = @transform_8, window_bounds = array<i64: 128, 128>}, {pipeline_mode = #tpu.pipeline_mode<synchronous>, transform_indices = @transform_9, window_bounds = array<i64: 1, 128>}, {transform_indices = @transform_10, window_bounds = array<i64: 2, 16, 128>}, {transform_indices = @transform_11, window_bounds = array<i64: 2, 1, 128>}]} {
    %c0_i32 = arith.constant 0 : i32
    %0 = arith.cmpi eq, %arg1, %c0_i32 : i32
    %1 = arith.extui %0 : i1 to i32
    %c0_i32_0 = arith.constant 0 : i32
    %2 = arith.cmpi ne, %1, %c0_i32_0 : i32
    scf.if %2 {
      %c0_119 = arith.constant 0 : index
      %c0_120 = arith.constant 0 : index
      %c0_121 = arith.constant 0 : index
      %220 = vector.load %arg3[%c0_119, %c0_120, %c0_121] : memref<2x16x128xf32, #tpu.memory_space<vmem>>, vector<2x16x128xf32>
      %c0_122 = arith.constant 0 : index
      %c0_123 = arith.constant 0 : index
      %c0_124 = arith.constant 0 : index
      %221 = vector.load %arg12[%c0_122, %c0_123, %c0_124] : memref<2x16x128xf32, #tpu.memory_space<vmem>>, vector<2x16x128xf32>
      tpu.vector_store %arg12[%c0_122, %c0_123, %c0_124], %220 {strides = array<i32>} : memref<2x16x128xf32, #tpu.memory_space<vmem>>, vector<2x16x128xf32>,
    } else {
    }
    %c0 = arith.constant 0 : index
    %c0_1 = arith.constant 0 : index
    %c0_2 = arith.constant 0 : index
    %3 = vector.load %arg12[%c0, %c0_1, %c0_2] : memref<2x16x128xf32, #tpu.memory_space<vmem>>, vector<2x16x128xf32>
    %4 = vector.shape_cast %3 : vector<2x16x128xf32> to vector<32x128xf32>
    %5 = arith.truncf %4 : vector<32x128xf32> to vector<32x128xbf16>
    %c0_3 = arith.constant 0 : index
    %c0_4 = arith.constant 0 : index
    %c0_5 = arith.constant 0 : index
    %6 = vector.load %arg6[%c0_3, %c0_4, %c0_5] : memref<1x9x128xf32, #tpu.memory_space<vmem>>, vector<1x9x128xf32>
    %7 = vector.shape_cast %6 : vector<1x9x128xf32> to vector<9x128xf32>
    %c0_6 = arith.constant 0 : index
    %c0_7 = arith.constant 0 : index
    %c0_8 = arith.constant 0 : index
    %c0_9 = arith.constant 0 : index
    %8 = vector.load %arg2[%c0_6, %c0_7, %c0_8, %c0_9] : memref<4x2x1x16xf32, #tpu.memory_space<vmem>>, vector<4x2x1x16xf32>
    %9 = vector.shape_cast %8 : vector<4x2x1x16xf32> to vector<8x1x16xf32>
    %c0_10 = arith.constant 0 : index
    %c0_11 = arith.constant 0 : index
    %c0_12 = arith.constant 0 : index
    %10 = vector.load %arg4[%c0_10, %c0_11, %c0_12] : memref<1x128x384xbf16, #tpu.memory_space<vmem>>, vector<1x128x384xbf16>
    %11 = vector.shape_cast %10 : vector<1x128x384xbf16> to vector<128x384xbf16>
    %cst = arith.constant dense<0.000000e+00> : vector<32x384xf32>
    %12 = tpu.matmul %5, %11, %cst {dimension_numbers = #tpu.dot_dimension_numbers<[1], [0], [0], [1], [0, 0, 1, 1], [], []>} : vector<32x128xbf16>, vector<128x384xbf16>, vector<32x384xf32> -> vector<32x384xf32>
    %13 = vector.extract_strided_slice %12 {offsets = [0, 0], sizes = [32, 128], strides = [1, 1]} : vector<32x384xf32> to vector<32x128xf32>
    %14 = vector.extract_strided_slice %7 {offsets = [0, 0], sizes = [1, 128], strides = [1, 1]} : vector<9x128xf32> to vector<1x128xf32>
    %15 = vector.shape_cast %14 : vector<1x128xf32> to vector<128xf32>
    %16 = vector.shape_cast %15 : vector<128xf32> to vector<1x128xf32>
    %17 = vector.broadcast %16 : vector<1x128xf32> to vector<32x128xf32>
    %18 = arith.addf %13, %17 : vector<32x128xf32>
    %19 = vector.shape_cast %18 : vector<32x128xf32> to vector<2x16x128xf32>
    %20 = arith.truncf %19 : vector<2x16x128xf32> to vector<2x16x128xbf16>
    %21 = vector.extract_strided_slice %12 {offsets = [0, 128], sizes = [32, 128], strides = [1, 1]} : vector<32x384xf32> to vector<32x128xf32>
    %22 = vector.extract_strided_slice %7 {offsets = [1, 0], sizes = [1, 128], strides = [1, 1]} : vector<9x128xf32> to vector<1x128xf32>
    %23 = vector.shape_cast %22 : vector<1x128xf32> to vector<128xf32>
    %24 = vector.shape_cast %23 : vector<128xf32> to vector<1x128xf32>
    %25 = vector.broadcast %24 : vector<1x128xf32> to vector<32x128xf32>
    %26 = arith.addf %21, %25 : vector<32x128xf32>
    %27 = vector.shape_cast %26 : vector<32x128xf32> to vector<2x16x128xf32>
    %28 = arith.truncf %27 : vector<2x16x128xf32> to vector<2x16x128xbf16>
    %29 = vector.extract_strided_slice %12 {offsets = [0, 256], sizes = [32, 128], strides = [1, 1]} : vector<32x384xf32> to vector<32x128xf32>
    %30 = vector.extract_strided_slice %7 {offsets = [2, 0], sizes = [1, 128], strides = [1, 1]} : vector<9x128xf32> to vector<1x128xf32>
    %31 = vector.shape_cast %30 : vector<1x128xf32> to vector<128xf32>
    %32 = vector.shape_cast %31 : vector<128xf32> to vector<1x128xf32>
    %33 = vector.broadcast %32 : vector<1x128xf32> to vector<32x128xf32>
    %34 = arith.addf %29, %33 : vector<32x128xf32>
    %35 = vector.shape_cast %34 : vector<32x128xf32> to vector<2x16x128xf32>
    %36 = arith.truncf %35 : vector<2x16x128xf32> to vector<2x16x128xbf16>
    %37 = vector.extract_strided_slice %20 {offsets = [0, 0, 0], sizes = [2, 16, 32], strides = [1, 1, 1]} : vector<2x16x128xbf16> to vector<2x16x32xbf16>
    %c0_13 = arith.constant 0 : index
    %c0_14 = arith.constant 0 : index
    %c0_15 = arith.constant 0 : index
    %c0_16 = arith.constant 0 : index
    %38 = vector.load %arg14[%c0_13, %c0_14, %c0_15, %c0_16] : memref<3x8x16x32xbf16, #tpu.memory_space<vmem>>, vector<1x2x16x32xbf16>
    %39 = vector.shape_cast %38 : vector<1x2x16x32xbf16> to vector<2x16x32xbf16>
    %40 = vector.shape_cast %37 : vector<2x16x32xbf16> to vector<1x2x16x32xbf16>
    tpu.vector_store %arg14[%c0_13, %c0_14, %c0_15, %c0_16], %40 {strides = array<i32>} : memref<3x8x16x32xbf16, #tpu.memory_space<vmem>>, vector<1x2x16x32xbf16>,
    %41 = vector.extract_strided_slice %28 {offsets = [0, 0, 0], sizes = [2, 16, 32], strides = [1, 1, 1]} : vector<2x16x128xbf16> to vector<2x16x32xbf16>
    %c1 = arith.constant 1 : index
    %c0_17 = arith.constant 0 : index
    %c0_18 = arith.constant 0 : index
    %c0_19 = arith.constant 0 : index
    %42 = vector.load %arg14[%c1, %c0_17, %c0_18, %c0_19] : memref<3x8x16x32xbf16, #tpu.memory_space<vmem>>, vector<1x2x16x32xbf16>
    %43 = vector.shape_cast %42 : vector<1x2x16x32xbf16> to vector<2x16x32xbf16>
    %44 = vector.shape_cast %41 : vector<2x16x32xbf16> to vector<1x2x16x32xbf16>
    tpu.vector_store %arg14[%c1, %c0_17, %c0_18, %c0_19], %44 {strides = array<i32>} : memref<3x8x16x32xbf16, #tpu.memory_space<vmem>>, vector<1x2x16x32xbf16>,
    %45 = vector.extract_strided_slice %36 {offsets = [0, 0, 0], sizes = [2, 16, 32], strides = [1, 1, 1]} : vector<2x16x128xbf16> to vector<2x16x32xbf16>
    %c2 = arith.constant 2 : index
    %c0_20 = arith.constant 0 : index
    %c0_21 = arith.constant 0 : index
    %c0_22 = arith.constant 0 : index
    %46 = vector.load %arg14[%c2, %c0_20, %c0_21, %c0_22] : memref<3x8x16x32xbf16, #tpu.memory_space<vmem>>, vector<1x2x16x32xbf16>
    %47 = vector.shape_cast %46 : vector<1x2x16x32xbf16> to vector<2x16x32xbf16>
    %48 = vector.shape_cast %45 : vector<2x16x32xbf16> to vector<1x2x16x32xbf16>
    tpu.vector_store %arg14[%c2, %c0_20, %c0_21, %c0_22], %48 {strides = array<i32>} : memref<3x8x16x32xbf16, #tpu.memory_space<vmem>>, vector<1x2x16x32xbf16>,
    %49 = vector.extract_strided_slice %20 {offsets = [0, 0, 32], sizes = [2, 16, 32], strides = [1, 1, 1]} : vector<2x16x128xbf16> to vector<2x16x32xbf16>
    %c0_23 = arith.constant 0 : index
    %c2_24 = arith.constant 2 : index
    %c0_25 = arith.constant 0 : index
    %c0_26 = arith.constant 0 : index
    %50 = vector.load %arg14[%c0_23, %c2_24, %c0_25, %c0_26] : memref<3x8x16x32xbf16, #tpu.memory_space<vmem>>, vector<1x2x16x32xbf16>
    %51 = vector.shape_cast %50 : vector<1x2x16x32xbf16> to vector<2x16x32xbf16>
    %52 = vector.shape_cast %49 : vector<2x16x32xbf16> to vector<1x2x16x32xbf16>
    tpu.vector_store %arg14[%c0_23, %c2_24, %c0_25, %c0_26], %52 {strides = array<i32>} : memref<3x8x16x32xbf16, #tpu.memory_space<vmem>>, vector<1x2x16x32xbf16>,
    %53 = vector.extract_strided_slice %28 {offsets = [0, 0, 32], sizes = [2, 16, 32], strides = [1, 1, 1]} : vector<2x16x128xbf16> to vector<2x16x32xbf16>
    %c1_27 = arith.constant 1 : index
    %c2_28 = arith.constant 2 : index
    %c0_29 = arith.constant 0 : index
    %c0_30 = arith.constant 0 : index
    %54 = vector.load %arg14[%c1_27, %c2_28, %c0_29, %c0_30] : memref<3x8x16x32xbf16, #tpu.memory_space<vmem>>, vector<1x2x16x32xbf16>
    %55 = vector.shape_cast %54 : vector<1x2x16x32xbf16> to vector<2x16x32xbf16>
    %56 = vector.shape_cast %53 : vector<2x16x32xbf16> to vector<1x2x16x32xbf16>
    tpu.vector_store %arg14[%c1_27, %c2_28, %c0_29, %c0_30], %56 {strides = array<i32>} : memref<3x8x16x32xbf16, #tpu.memory_space<vmem>>, vector<1x2x16x32xbf16>,
    %57 = vector.extract_strided_slice %36 {offsets = [0, 0, 32], sizes = [2, 16, 32], strides = [1, 1, 1]} : vector<2x16x128xbf16> to vector<2x16x32xbf16>
    %c2_31 = arith.constant 2 : index
    %c2_32 = arith.constant 2 : index
    %c0_33 = arith.constant 0 : index
    %c0_34 = arith.constant 0 : index
    %58 = vector.load %arg14[%c2_31, %c2_32, %c0_33, %c0_34] : memref<3x8x16x32xbf16, #tpu.memory_space<vmem>>, vector<1x2x16x32xbf16>
    %59 = vector.shape_cast %58 : vector<1x2x16x32xbf16> to vector<2x16x32xbf16>
    %60 = vector.shape_cast %57 : vector<2x16x32xbf16> to vector<1x2x16x32xbf16>
    tpu.vector_store %arg14[%c2_31, %c2_32, %c0_33, %c0_34], %60 {strides = array<i32>} : memref<3x8x16x32xbf16, #tpu.memory_space<vmem>>, vector<1x2x16x32xbf16>,
    %61 = vector.extract_strided_slice %20 {offsets = [0, 0, 64], sizes = [2, 16, 32], strides = [1, 1, 1]} : vector<2x16x128xbf16> to vector<2x16x32xbf16>
    %c0_35 = arith.constant 0 : index
    %c4 = arith.constant 4 : index
    %c0_36 = arith.constant 0 : index
    %c0_37 = arith.constant 0 : index
    %62 = vector.load %arg14[%c0_35, %c4, %c0_36, %c0_37] : memref<3x8x16x32xbf16, #tpu.memory_space<vmem>>, vector<1x2x16x32xbf16>
    %63 = vector.shape_cast %62 : vector<1x2x16x32xbf16> to vector<2x16x32xbf16>
    %64 = vector.shape_cast %61 : vector<2x16x32xbf16> to vector<1x2x16x32xbf16>
    tpu.vector_store %arg14[%c0_35, %c4, %c0_36, %c0_37], %64 {strides = array<i32>} : memref<3x8x16x32xbf16, #tpu.memory_space<vmem>>, vector<1x2x16x32xbf16>,
    %65 = vector.extract_strided_slice %28 {offsets = [0, 0, 64], sizes = [2, 16, 32], strides = [1, 1, 1]} : vector<2x16x128xbf16> to vector<2x16x32xbf16>
    %c1_38 = arith.constant 1 : index
    %c4_39 = arith.constant 4 : index
    %c0_40 = arith.constant 0 : index
    %c0_41 = arith.constant 0 : index
    %66 = vector.load %arg14[%c1_38, %c4_39, %c0_40, %c0_41] : memref<3x8x16x32xbf16, #tpu.memory_space<vmem>>, vector<1x2x16x32xbf16>
    %67 = vector.shape_cast %66 : vector<1x2x16x32xbf16> to vector<2x16x32xbf16>
    %68 = vector.shape_cast %65 : vector<2x16x32xbf16> to vector<1x2x16x32xbf16>
    tpu.vector_store %arg14[%c1_38, %c4_39, %c0_40, %c0_41], %68 {strides = array<i32>} : memref<3x8x16x32xbf16, #tpu.memory_space<vmem>>, vector<1x2x16x32xbf16>,
    %69 = vector.extract_strided_slice %36 {offsets = [0, 0, 64], sizes = [2, 16, 32], strides = [1, 1, 1]} : vector<2x16x128xbf16> to vector<2x16x32xbf16>
    %c2_42 = arith.constant 2 : index
    %c4_43 = arith.constant 4 : index
    %c0_44 = arith.constant 0 : index
    %c0_45 = arith.constant 0 : index
    %70 = vector.load %arg14[%c2_42, %c4_43, %c0_44, %c0_45] : memref<3x8x16x32xbf16, #tpu.memory_space<vmem>>, vector<1x2x16x32xbf16>
    %71 = vector.shape_cast %70 : vector<1x2x16x32xbf16> to vector<2x16x32xbf16>
    %72 = vector.shape_cast %69 : vector<2x16x32xbf16> to vector<1x2x16x32xbf16>
    tpu.vector_store %arg14[%c2_42, %c4_43, %c0_44, %c0_45], %72 {strides = array<i32>} : memref<3x8x16x32xbf16, #tpu.memory_space<vmem>>, vector<1x2x16x32xbf16>,
    %73 = vector.extract_strided_slice %20 {offsets = [0, 0, 96], sizes = [2, 16, 32], strides = [1, 1, 1]} : vector<2x16x128xbf16> to vector<2x16x32xbf16>
    %c0_46 = arith.constant 0 : index
    %c6 = arith.constant 6 : index
    %c0_47 = arith.constant 0 : index
    %c0_48 = arith.constant 0 : index
    %74 = vector.load %arg14[%c0_46, %c6, %c0_47, %c0_48] : memref<3x8x16x32xbf16, #tpu.memory_space<vmem>>, vector<1x2x16x32xbf16>
    %75 = vector.shape_cast %74 : vector<1x2x16x32xbf16> to vector<2x16x32xbf16>
    %76 = vector.shape_cast %73 : vector<2x16x32xbf16> to vector<1x2x16x32xbf16>
    tpu.vector_store %arg14[%c0_46, %c6, %c0_47, %c0_48], %76 {strides = array<i32>} : memref<3x8x16x32xbf16, #tpu.memory_space<vmem>>, vector<1x2x16x32xbf16>,
    %77 = vector.extract_strided_slice %28 {offsets = [0, 0, 96], sizes = [2, 16, 32], strides = [1, 1, 1]} : vector<2x16x128xbf16> to vector<2x16x32xbf16>
    %c1_49 = arith.constant 1 : index
    %c6_50 = arith.constant 6 : index
    %c0_51 = arith.constant 0 : index
    %c0_52 = arith.constant 0 : index
    %78 = vector.load %arg14[%c1_49, %c6_50, %c0_51, %c0_52] : memref<3x8x16x32xbf16, #tpu.memory_space<vmem>>, vector<1x2x16x32xbf16>
    %79 = vector.shape_cast %78 : vector<1x2x16x32xbf16> to vector<2x16x32xbf16>
    %80 = vector.shape_cast %77 : vector<2x16x32xbf16> to vector<1x2x16x32xbf16>
    tpu.vector_store %arg14[%c1_49, %c6_50, %c0_51, %c0_52], %80 {strides = array<i32>} : memref<3x8x16x32xbf16, #tpu.memory_space<vmem>>, vector<1x2x16x32xbf16>,
    %81 = vector.extract_strided_slice %36 {offsets = [0, 0, 96], sizes = [2, 16, 32], strides = [1, 1, 1]} : vector<2x16x128xbf16> to vector<2x16x32xbf16>
    %c2_53 = arith.constant 2 : index
    %c6_54 = arith.constant 6 : index
    %c0_55 = arith.constant 0 : index
    %c0_56 = arith.constant 0 : index
    %82 = vector.load %arg14[%c2_53, %c6_54, %c0_55, %c0_56] : memref<3x8x16x32xbf16, #tpu.memory_space<vmem>>, vector<1x2x16x32xbf16>
    %83 = vector.shape_cast %82 : vector<1x2x16x32xbf16> to vector<2x16x32xbf16>
    %84 = vector.shape_cast %81 : vector<2x16x32xbf16> to vector<1x2x16x32xbf16>
    tpu.vector_store %arg14[%c2_53, %c6_54, %c0_55, %c0_56], %84 {strides = array<i32>} : memref<3x8x16x32xbf16, #tpu.memory_space<vmem>>, vector<1x2x16x32xbf16>,
    %c0_57 = arith.constant 0 : index
    %c0_58 = arith.constant 0 : index
    %c0_59 = arith.constant 0 : index
    %c0_60 = arith.constant 0 : index
    %85 = vector.load %arg14[%c0_57, %c0_58, %c0_59, %c0_60] : memref<3x8x16x32xbf16, #tpu.memory_space<vmem>>, vector<1x8x16x32xbf16>
    %86 = vector.shape_cast %85 : vector<1x8x16x32xbf16> to vector<8x16x32xbf16>
    %c1_61 = arith.constant 1 : index
    %c0_62 = arith.constant 0 : index
    %c0_63 = arith.constant 0 : index
    %c0_64 = arith.constant 0 : index
    %87 = vector.load %arg14[%c1_61, %c0_62, %c0_63, %c0_64] : memref<3x8x16x32xbf16, #tpu.memory_space<vmem>>, vector<1x8x16x32xbf16>
    %88 = vector.shape_cast %87 : vector<1x8x16x32xbf16> to vector<8x16x32xbf16>
    %c2_65 = arith.constant 2 : index
    %c0_66 = arith.constant 0 : index
    %c0_67 = arith.constant 0 : index
    %c0_68 = arith.constant 0 : index
    %89 = vector.load %arg14[%c2_65, %c0_66, %c0_67, %c0_68] : memref<3x8x16x32xbf16, #tpu.memory_space<vmem>>, vector<1x8x16x32xbf16>
    %90 = vector.shape_cast %89 : vector<1x8x16x32xbf16> to vector<8x16x32xbf16>
    "tpu.trace_start"() <{level = 10 : i32, message = "bqd,bkd->bqk"}> : () -> ()
    %cst_69 = arith.constant dense<0.000000e+00> : vector<8x16x16xf32>
    %91 = tpu.matmul %86, %88, %cst_69 {dimension_numbers = #tpu.dot_dimension_numbers<[2], [2], [1], [1], [0, 0, 0, 1, 1, 1], [0], [0]>} : vector<8x16x32xbf16>, vector<8x16x32xbf16>, vector<8x16x16xf32> -> vector<8x16x16xf32>
    "tpu.trace_stop"() : () -> ()
    %cst_70 = arith.constant 0.176776692 : f32
    %92 = vector.broadcast %cst_70 : f32 to vector<8x16x16xf32>
    %93 = arith.mulf %91, %92 : vector<8x16x16xf32>
    %94 = vector.broadcast %9 : vector<8x1x16xf32> to vector<8x16x16xf32>
    %95 = arith.addf %93, %94 : vector<8x16x16xf32>
    %cst_71 = arith.constant dense<0xFF800000> : vector<8x16xf32>
    %96 = vector.multi_reduction <maximumf>, %95, %cst_71 [2] : vector<8x16x16xf32> to vector<8x16xf32>
    %97 = vector.shape_cast %96 : vector<8x16xf32> to vector<8x16x1xf32>
    %98 = vector.broadcast %97 : vector<8x16x1xf32> to vector<8x16x16xf32>
    %99 = arith.subf %95, %98 : vector<8x16x16xf32>
    %100 = math.exp %99 : vector<8x16x16xf32>
    %cst_72 = arith.constant dense<0.000000e+00> : vector<8x16xf32>
    %101 = vector.multi_reduction <add>, %100, %cst_72 [2] : vector<8x16x16xf32> to vector<8x16xf32>
    %102 = vector.shape_cast %101 : vector<8x16xf32> to vector<8x16x1xf32>
    %103 = tpu.reciprocal %102 {approx = true} : vector<8x16x1xf32> -> vector<8x16x1xf32>
    %104 = vector.broadcast %103 : vector<8x16x1xf32> to vector<8x16x16xf32>
    %105 = arith.mulf %100, %104 : vector<8x16x16xf32>
    %106 = arith.truncf %105 : vector<8x16x16xf32> to vector<8x16x16xbf16>
    "tpu.trace_start"() <{level = 10 : i32, message = "bqk,bkd->bqd"}> : () -> ()
    %cst_73 = arith.constant dense<0.000000e+00> : vector<8x16x32xf32>
    %107 = tpu.matmul %106, %90, %cst_73 {dimension_numbers = #tpu.dot_dimension_numbers<[2], [1], [1], [2], [0, 0, 0, 1, 1, 2], [0], [0]>} : vector<8x16x16xbf16>, vector<8x16x32xbf16>, vector<8x16x32xf32> -> vector<8x16x32xf32>
    "tpu.trace_stop"() : () -> ()
    %108 = vector.extract_strided_slice %107 {offsets = [0, 0, 0], sizes = [2, 16, 32], strides = [1, 1, 1]} : vector<8x16x32xf32> to vector<2x16x32xf32>
    %c0_74 = arith.constant 0 : index
    %c0_75 = arith.constant 0 : index
    %c0_76 = arith.constant 0 : index
    %109 = vector.load %arg15[%c0_74, %c0_75, %c0_76] : memref<2x16x128xf32, #tpu.memory_space<vmem>>, vector<2x16x32xf32>
    tpu.vector_store %arg15[%c0_74, %c0_75, %c0_76], %108 {strides = array<i32>} : memref<2x16x128xf32, #tpu.memory_space<vmem>>, vector<2x16x32xf32>,
    %110 = vector.extract_strided_slice %107 {offsets = [2, 0, 0], sizes = [2, 16, 32], strides = [1, 1, 1]} : vector<8x16x32xf32> to vector<2x16x32xf32>
    %c0_77 = arith.constant 0 : index
    %c0_78 = arith.constant 0 : index
    %c32 = arith.constant 32 : index
    %111 = vector.load %arg15[%c0_77, %c0_78, %c32] : memref<2x16x128xf32, #tpu.memory_space<vmem>>, vector<2x16x32xf32>
    tpu.vector_store %arg15[%c0_77, %c0_78, %c32], %110 {strides = array<i32>} : memref<2x16x128xf32, #tpu.memory_space<vmem>>, vector<2x16x32xf32>,
    %112 = vector.extract_strided_slice %107 {offsets = [4, 0, 0], sizes = [2, 16, 32], strides = [1, 1, 1]} : vector<8x16x32xf32> to vector<2x16x32xf32>
    %c0_79 = arith.constant 0 : index
    %c0_80 = arith.constant 0 : index
    %c64 = arith.constant 64 : index
    %113 = vector.load %arg15[%c0_79, %c0_80, %c64] : memref<2x16x128xf32, #tpu.memory_space<vmem>>, vector<2x16x32xf32>
    tpu.vector_store %arg15[%c0_79, %c0_80, %c64], %112 {strides = array<i32>} : memref<2x16x128xf32, #tpu.memory_space<vmem>>, vector<2x16x32xf32>,
    %114 = vector.extract_strided_slice %107 {offsets = [6, 0, 0], sizes = [2, 16, 32], strides = [1, 1, 1]} : vector<8x16x32xf32> to vector<2x16x32xf32>
    %c0_81 = arith.constant 0 : index
    %c0_82 = arith.constant 0 : index
    %c96 = arith.constant 96 : index
    %115 = vector.load %arg15[%c0_81, %c0_82, %c96] : memref<2x16x128xf32, #tpu.memory_space<vmem>>, vector<2x16x32xf32>
    tpu.vector_store %arg15[%c0_81, %c0_82, %c96], %114 {strides = array<i32>} : memref<2x16x128xf32, #tpu.memory_space<vmem>>, vector<2x16x32xf32>,
    %c0_83 = arith.constant 0 : index
    %c0_84 = arith.constant 0 : index
    %c0_85 = arith.constant 0 : index
    %116 = vector.load %arg15[%c0_83, %c0_84, %c0_85] : memref<2x16x128xf32, #tpu.memory_space<vmem>>, vector<2x16x128xf32>
    %117 = vector.shape_cast %116 : vector<2x16x128xf32> to vector<32x128xf32>
    %118 = arith.truncf %117 : vector<32x128xf32> to vector<32x128xbf16>
    %c0_86 = arith.constant 0 : index
    %c0_87 = arith.constant 0 : index
    %c0_88 = arith.constant 0 : index
    %119 = vector.load %arg5[%c0_86, %c0_87, %c0_88] : memref<1x128x128xbf16, #tpu.memory_space<vmem>>, vector<1x128x128xbf16>
    %120 = vector.shape_cast %119 : vector<1x128x128xbf16> to vector<128x128xbf16>
    %cst_89 = arith.constant dense<0.000000e+00> : vector<32x128xf32>
    %121 = tpu.matmul %118, %120, %cst_89 {dimension_numbers = #tpu.dot_dimension_numbers<[1], [0], [0], [1], [0, 0, 1, 1], [], []>} : vector<32x128xbf16>, vector<128x128xbf16>, vector<32x128xf32> -> vector<32x128xf32>
    %122 = vector.extract_strided_slice %7 {offsets = [3, 0], sizes = [1, 128], strides = [1, 1]} : vector<9x128xf32> to vector<1x128xf32>
    %123 = vector.shape_cast %122 : vector<1x128xf32> to vector<128xf32>
    %124 = vector.shape_cast %123 : vector<128xf32> to vector<1x128xf32>
    %125 = vector.broadcast %124 : vector<1x128xf32> to vector<32x128xf32>
    %126 = arith.addf %121, %125 : vector<32x128xf32>
    %127 = arith.addf %4, %126 : vector<32x128xf32>
    %128 = vector.extract_strided_slice %7 {offsets = [4, 0], sizes = [1, 128], strides = [1, 1]} : vector<9x128xf32> to vector<1x128xf32>
    %129 = vector.shape_cast %128 : vector<1x128xf32> to vector<128xf32>
    %130 = vector.extract_strided_slice %7 {offsets = [5, 0], sizes = [1, 128], strides = [1, 1]} : vector<9x128xf32> to vector<1x128xf32>
    %131 = vector.shape_cast %130 : vector<1x128xf32> to vector<128xf32>
    %cst_90 = arith.constant dense<0.000000e+00> : vector<32xf32>
    %132 = vector.multi_reduction <add>, %127, %cst_90 [1] : vector<32x128xf32> to vector<32xf32>
    %133 = vector.shape_cast %132 : vector<32xf32> to vector<32x1xf32>
    %cst_91 = arith.constant 1.280000e+02 : f32
    %134 = vector.broadcast %cst_91 : f32 to vector<32x1xf32>
    %135 = arith.divf %133, %134 : vector<32x1xf32>
    %136 = vector.broadcast %135 : vector<32x1xf32> to vector<32x128xf32>
    %137 = arith.subf %127, %136 : vector<32x128xf32>
    %138 = arith.mulf %137, %137 : vector<32x128xf32>
    %cst_92 = arith.constant dense<0.000000e+00> : vector<32xf32>
    %139 = vector.multi_reduction <add>, %138, %cst_92 [1] : vector<32x128xf32> to vector<32xf32>
    %140 = vector.shape_cast %139 : vector<32xf32> to vector<32x1xf32>
    %cst_93 = arith.constant 1.280000e+02 : f32
    %141 = vector.broadcast %cst_93 : f32 to vector<32x1xf32>
    %142 = arith.divf %140, %141 : vector<32x1xf32>
    %143 = vector.broadcast %135 : vector<32x1xf32> to vector<32x128xf32>
    %144 = arith.subf %127, %143 : vector<32x128xf32>
    %cst_94 = arith.constant 9.99999996E-13 : f32
    %145 = vector.broadcast %cst_94 : f32 to vector<32x1xf32>
    %146 = arith.addf %142, %145 : vector<32x1xf32>
    %147 = math.rsqrt %146 : vector<32x1xf32>
    %148 = vector.broadcast %147 : vector<32x1xf32> to vector<32x128xf32>
    %149 = arith.mulf %144, %148 : vector<32x128xf32>
    %150 = vector.shape_cast %129 : vector<128xf32> to vector<1x128xf32>
    %151 = vector.broadcast %150 : vector<1x128xf32> to vector<32x128xf32>
    %152 = arith.mulf %149, %151 : vector<32x128xf32>
    %153 = vector.shape_cast %131 : vector<128xf32> to vector<1x128xf32>
    %154 = vector.broadcast %153 : vector<1x128xf32> to vector<32x128xf32>
    %155 = arith.addf %152, %154 : vector<32x128xf32>
    %156 = arith.truncf %155 : vector<32x128xf32> to vector<32x128xbf16>
    %c0_95 = arith.constant 0 : index
    %c0_96 = arith.constant 0 : index
    %c0_97 = arith.constant 0 : index
    %157 = vector.load %arg7[%c0_95, %c0_96, %c0_97] : memref<1x128x512xbf16, #tpu.memory_space<vmem>>, vector<1x128x512xbf16>
    %158 = vector.shape_cast %157 : vector<1x128x512xbf16> to vector<128x512xbf16>
    %cst_98 = arith.constant dense<0.000000e+00> : vector<32x512xf32>
    %159 = tpu.matmul %156, %158, %cst_98 {dimension_numbers = #tpu.dot_dimension_numbers<[1], [0], [0], [1], [0, 0, 1, 1], [], []>} : vector<32x128xbf16>, vector<128x512xbf16>, vector<32x512xf32> -> vector<32x512xf32>
    %c0_99 = arith.constant 0 : index
    %c0_100 = arith.constant 0 : index
    %c0_101 = arith.constant 0 : index
    %160 = vector.load %arg8[%c0_99, %c0_100, %c0_101] : memref<1x1x512xf32, #tpu.memory_space<vmem>>, vector<1x1x512xf32>
    %161 = vector.shape_cast %160 : vector<1x1x512xf32> to vector<1x512xf32>
    %162 = vector.broadcast %161 : vector<1x512xf32> to vector<32x512xf32>
    %163 = arith.addf %159, %162 : vector<32x512xf32>
    %164 = arith.mulf %163, %163 : vector<32x512xf32>
    %165 = arith.mulf %163, %164 : vector<32x512xf32>
    %cst_102 = arith.constant 4.471500e-02 : f32
    %166 = vector.broadcast %cst_102 : f32 to vector<32x512xf32>
    %167 = arith.mulf %166, %165 : vector<32x512xf32>
    %168 = arith.addf %163, %167 : vector<32x512xf32>
    %cst_103 = arith.constant 0.797884583 : f32
    %169 = vector.broadcast %cst_103 : f32 to vector<32x512xf32>
    %170 = arith.mulf %169, %168 : vector<32x512xf32>
    %171 = math.tanh %170 : vector<32x512xf32>
    %cst_104 = arith.constant 1.000000e+00 : f32
    %172 = vector.broadcast %cst_104 : f32 to vector<32x512xf32>
    %173 = arith.addf %172, %171 : vector<32x512xf32>
    %cst_105 = arith.constant 5.000000e-01 : f32
    %174 = vector.broadcast %cst_105 : f32 to vector<32x512xf32>
    %175 = arith.mulf %174, %173 : vector<32x512xf32>
    %176 = arith.mulf %163, %175 : vector<32x512xf32>
    %177 = arith.truncf %176 : vector<32x512xf32> to vector<32x512xbf16>
    %c0_106 = arith.constant 0 : index
    %c0_107 = arith.constant 0 : index
    %c0_108 = arith.constant 0 : index
    %178 = vector.load %arg9[%c0_106, %c0_107, %c0_108] : memref<1x512x128xbf16, #tpu.memory_space<vmem>>, vector<1x512x128xbf16>
    %179 = vector.shape_cast %178 : vector<1x512x128xbf16> to vector<512x128xbf16>
    %cst_109 = arith.constant dense<0.000000e+00> : vector<32x128xf32>
    %180 = tpu.matmul %177, %179, %cst_109 {dimension_numbers = #tpu.dot_dimension_numbers<[1], [0], [0], [1], [0, 0, 1, 1], [], []>} : vector<32x512xbf16>, vector<512x128xbf16>, vector<32x128xf32> -> vector<32x128xf32>
    %181 = vector.extract_strided_slice %7 {offsets = [6, 0], sizes = [1, 128], strides = [1, 1]} : vector<9x128xf32> to vector<1x128xf32>
    %182 = vector.shape_cast %181 : vector<1x128xf32> to vector<128xf32>
    %183 = vector.shape_cast %182 : vector<128xf32> to vector<1x128xf32>
    %184 = vector.broadcast %183 : vector<1x128xf32> to vector<32x128xf32>
    %185 = arith.addf %180, %184 : vector<32x128xf32>
    %186 = arith.addf %155, %185 : vector<32x128xf32>
    %187 = vector.extract_strided_slice %7 {offsets = [7, 0], sizes = [1, 128], strides = [1, 1]} : vector<9x128xf32> to vector<1x128xf32>
    %188 = vector.shape_cast %187 : vector<1x128xf32> to vector<128xf32>
    %189 = vector.extract_strided_slice %7 {offsets = [8, 0], sizes = [1, 128], strides = [1, 1]} : vector<9x128xf32> to vector<1x128xf32>
    %190 = vector.shape_cast %189 : vector<1x128xf32> to vector<128xf32>
    %cst_110 = arith.constant dense<0.000000e+00> : vector<32xf32>
    %191 = vector.multi_reduction <add>, %186, %cst_110 [1] : vector<32x128xf32> to vector<32xf32>
    %192 = vector.shape_cast %191 : vector<32xf32> to vector<32x1xf32>
    %cst_111 = arith.constant 1.280000e+02 : f32
    %193 = vector.broadcast %cst_111 : f32 to vector<32x1xf32>
    %194 = arith.divf %192, %193 : vector<32x1xf32>
    %195 = vector.broadcast %194 : vector<32x1xf32> to vector<32x128xf32>
    %196 = arith.subf %186, %195 : vector<32x128xf32>
    %197 = arith.mulf %196, %196 : vector<32x128xf32>
    %cst_112 = arith.constant dense<0.000000e+00> : vector<32xf32>
    %198 = vector.multi_reduction <add>, %197, %cst_112 [1] : vector<32x128xf32> to vector<32xf32>
    %199 = vector.shape_cast %198 : vector<32xf32> to vector<32x1xf32>
    %cst_113 = arith.constant 1.280000e+02 : f32
    %200 = vector.broadcast %cst_113 : f32 to vector<32x1xf32>
    %201 = arith.divf %199, %200 : vector<32x1xf32>
    %202 = vector.broadcast %194 : vector<32x1xf32> to vector<32x128xf32>
    %203 = arith.subf %186, %202 : vector<32x128xf32>
    %cst_114 = arith.constant 9.99999996E-13 : f32
    %204 = vector.broadcast %cst_114 : f32 to vector<32x1xf32>
    %205 = arith.addf %201, %204 : vector<32x1xf32>
    %206 = math.rsqrt %205 : vector<32x1xf32>
    %207 = vector.broadcast %206 : vector<32x1xf32> to vector<32x128xf32>
    %208 = arith.mulf %203, %207 : vector<32x128xf32>
    %209 = vector.shape_cast %188 : vector<128xf32> to vector<1x128xf32>
    %210 = vector.broadcast %209 : vector<1x128xf32> to vector<32x128xf32>
    %211 = arith.mulf %208, %210 : vector<32x128xf32>
    %212 = vector.shape_cast %190 : vector<128xf32> to vector<1x128xf32>
    %213 = vector.broadcast %212 : vector<1x128xf32> to vector<32x128xf32>
    %214 = arith.addf %211, %213 : vector<32x128xf32>
    %215 = vector.shape_cast %214 : vector<32x128xf32> to vector<2x16x128xf32>
    %c0_115 = arith.constant 0 : index
    %c0_116 = arith.constant 0 : index
    %c0_117 = arith.constant 0 : index
    %216 = vector.load %arg12[%c0_115, %c0_116, %c0_117] : memref<2x16x128xf32, #tpu.memory_space<vmem>>, vector<2x16x128xf32>
    tpu.vector_store %arg12[%c0_115, %c0_116, %c0_117], %215 {strides = array<i32>} : memref<2x16x128xf32, #tpu.memory_space<vmem>>, vector<2x16x128xf32>,
    %c1_i32 = arith.constant 1 : i32
    %217 = arith.cmpi eq, %arg1, %c1_i32 : i32
    %218 = arith.extui %217 : i1 to i32
    %c0_i32_118 = arith.constant 0 : i32
    %219 = arith.cmpi ne, %218, %c0_i32_118 : i32
    scf.if %219 {
      %220 = vector.extract_strided_slice %215 {offsets = [0, 0, 0], sizes = [2, 1, 128], strides = [1, 1, 1]} : vector<2x16x128xf32> to vector<2x1x128xf32>
      %221 = vector.shape_cast %220 : vector<2x1x128xf32> to vector<2x128xf32>
      %222 = arith.truncf %221 : vector<2x128xf32> to vector<2x128xbf16>
      %c0_119 = arith.constant 0 : index
      %c0_120 = arith.constant 0 : index
      %223 = vector.load %arg10[%c0_119, %c0_120] : memref<128x128xbf16, #tpu.memory_space<vmem>>, vector<128x128xbf16>
      %cst_121 = arith.constant dense<0.000000e+00> : vector<2x128xf32>
      %224 = tpu.matmul %222, %223, %cst_121 {dimension_numbers = #tpu.dot_dimension_numbers<[1], [0], [0], [1], [0, 0, 1, 1], [], []>} : vector<2x128xbf16>, vector<128x128xbf16>, vector<2x128xf32> -> vector<2x128xf32>
      %c0_122 = arith.constant 0 : index
      %c0_123 = arith.constant 0 : index
      %225 = vector.load %arg11[%c0_122, %c0_123] : memref<1x128xf32, #tpu.memory_space<vmem>>, vector<1x128xf32>
      %226 = vector.broadcast %225 : vector<1x128xf32> to vector<2x128xf32>
      %227 = arith.addf %224, %226 : vector<2x128xf32>
      %228 = math.tanh %227 : vector<2x128xf32>
      %229 = vector.shape_cast %228 : vector<2x128xf32> to vector<2x1x128xf32>
      %c0_124 = arith.constant 0 : index
      %c0_125 = arith.constant 0 : index
      %c0_126 = arith.constant 0 : index
      %230 = vector.load %arg13[%c0_124, %c0_125, %c0_126] : memref<2x1x128xf32, #tpu.memory_space<vmem>>, vector<2x1x128xf32>
      tpu.vector_store %arg13[%c0_124, %c0_125, %c0_126], %229 {strides = array<i32>} : memref<2x1x128xf32, #tpu.memory_space<vmem>>, vector<2x1x128xf32>,
    } else {
    }
    return
  }
  func.func @transform_0(%arg0: i32, %arg1: i32) -> (i32, i32, i32, i32) {
    %c0_i32 = arith.constant 0 : i32
    %c0_i32_0 = arith.constant 0 : i32
    %c0_i32_1 = arith.constant 0 : i32
    %c0_i32_2 = arith.constant 0 : i32
    return %c0_i32, %arg0, %c0_i32_0, %c0_i32_1 : i32, i32, i32, i32
  }
  func.func @transform_1(%arg0: i32, %arg1: i32) -> (i32, i32, i32) {
    %c0_i32 = arith.constant 0 : i32
    %c0_i32_0 = arith.constant 0 : i32
    %c0_i32_1 = arith.constant 0 : i32
    return %arg0, %c0_i32, %c0_i32_0 : i32, i32, i32
  }
  func.func @transform_2(%arg0: i32, %arg1: i32) -> (i32, i32, i32) {
    %c0_i32 = arith.constant 0 : i32
    %c0_i32_0 = arith.constant 0 : i32
    %c0_i32_1 = arith.constant 0 : i32
    return %arg1, %c0_i32, %c0_i32_0 : i32, i32, i32
  }
  func.func @transform_3(%arg0: i32, %arg1: i32) -> (i32, i32, i32) {
    %c0_i32 = arith.constant 0 : i32
    %c0_i32_0 = arith.constant 0 : i32
    %c0_i32_1 = arith.constant 0 : i32
    return %arg1, %c0_i32, %c0_i32_0 : i32, i32, i32
  }
  func.func @transform_4(%arg0: i32, %arg1: i32) -> (i32, i32, i32) {
    %c0_i32 = arith.constant 0 : i32
    %c0_i32_0 = arith.constant 0 : i32
    %c0_i32_1 = arith.constant 0 : i32
    return %arg1, %c0_i32, %c0_i32_0 : i32, i32, i32
  }
  func.func @transform_5(%arg0: i32, %arg1: i32) -> (i32, i32, i32) {
    %c0_i32 = arith.constant 0 : i32
    %c0_i32_0 = arith.constant 0 : i32
    %c0_i32_1 = arith.constant 0 : i32
    return %arg1, %c0_i32, %c0_i32_0 : i32, i32, i32
  }
  func.func @transform_6(%arg0: i32, %arg1: i32) -> (i32, i32, i32) {
    %c0_i32 = arith.constant 0 : i32
    %c0_i32_0 = arith.constant 0 : i32
    %c0_i32_1 = arith.constant 0 : i32
    return %arg1, %c0_i32, %c0_i32_0 : i32, i32, i32
  }
  func.func @transform_7(%arg0: i32, %arg1: i32) -> (i32, i32, i32) {
    %c0_i32 = arith.constant 0 : i32
    %c0_i32_0 = arith.constant 0 : i32
    %c0_i32_1 = arith.constant 0 : i32
    return %arg1, %c0_i32, %c0_i32_0 : i32, i32, i32
  }
  func.func @transform_8(%arg0: i32, %arg1: i32) -> (i32, i32) {
    %c0_i32 = arith.constant 0 : i32
    %c0_i32_0 = arith.constant 0 : i32
    %c0_i32_1 = arith.constant 0 : i32
    return %c0_i32, %c0_i32_0 : i32, i32
  }
  func.func @transform_9(%arg0: i32, %arg1: i32) -> (i32, i32) {
    %c0_i32 = arith.constant 0 : i32
    %c0_i32_0 = arith.constant 0 : i32
    %c0_i32_1 = arith.constant 0 : i32
    return %c0_i32, %c0_i32_0 : i32, i32
  }
  func.func @transform_10(%arg0: i32, %arg1: i32) -> (i32, i32, i32) {
    %c0_i32 = arith.constant 0 : i32
    %c0_i32_0 = arith.constant 0 : i32
    %c0_i32_1 = arith.constant 0 : i32
    return %arg0, %c0_i32, %c0_i32_0 : i32, i32, i32
  }
  func.func @transform_11(%arg0: i32, %arg1: i32) -> (i32, i32, i32) {
    %c0_i32 = arith.constant 0 : i32
    %c0_i32_0 = arith.constant 0 : i32
    %c0_i32_1 = arith.constant 0 : i32
    return %arg0, %c0_i32, %c0_i32_0 : i32, i32, i32
  }
}

</mosaic_0001>

<bundles_post_ra>
// kernel: bert_encoder_forward.1
= control target key start
LH: loop header
LB: loop body
LE: loop exit
PB: predicated region body
PF: predicated region fallthrough
CT: control target
= control target key end

     0   :  { %s5815_s0 = inlined_call_operand.vmem [shape: f32[4,2,1,16], index: 0, kind: input, shape index: {}]   ;;  %s5816_s1 = inlined_call_operand.vmem [shape: f32[2,16,128], index: 1, kind: input, shape index: {}, may-alias: {1,10}]   ;;  %s5817_s2 = inlined_call_operand.hbm [shape: bf16[2,128,384], index: 2, kind: input, shape index: {}]   ;;  %s5818_s3 = inlined_call_operand.vmem [shape: bf16[2,128,128], index: 3, kind: input, shape index: {}]   ;;  %s5819_s4 = inlined_call_operand.vmem [shape: f32[2,9,128], index: 4, kind: input, shape index: {}]   ;;  %s5820_s5 = inlined_call_operand.vmem [shape: bf16[2,128,512], index: 5, kind: input, shape index: {}]   ;;  %s5821_s6 = inlined_call_operand.vmem [shape: f32[2,1,512], index: 6, kind: input, shape index: {}]   ;;  %s5822_s7 = inlined_call_operand.hbm [shape: bf16[2,512,128], index: 7, kind: input, shape index: {}]   ;;  %s5823_s8 = inlined_call_operand.vmem [shape: bf16[128,128], index: 8, kind: input, shape index: {}]   ;;  %s5824_s9 = inlined_call_operand.vmem [shape: f32[1,128], index: 9, kind: input, shape index: {}]   ;;  %s5825_s10 = inlined_call_operand.vmem [shape: f32[2,16,128], index: 10, kind: output, shape index: {0}, may-alias: {1,10}]   ;;  %s5826_s11 = inlined_call_operand.hbm [shape: f32[2,1,128], index: 11, kind: output, shape index: {1}]  }
   0x1   :  { %5830 = sst [smem:[#allocation16_spill]] %s5817_s2 }
   0x2   :  { %5831 = sst [smem:[#allocation17_spill]] %s5822_s7 }
   0x3   :  { %5832 = sst [smem:[#allocation18_spill]] %s5824_s9 }
   0x4   :  { %5833 = sst [smem:[#allocation19_spill]] %s5826_s11 }
   0x5   :  { %17 = vsyncpa [#allocation5], 0 }
   0x6   :  { %19 = vsyncpa [#allocation5 + $0x1], 0 }
   0x7   :  { %20 = vsyncpa [#allocation8], 0 }
   0x8   :  { %22 = vsyncpa [#allocation8 + $0x1], 0 }
   0x9   :  { %23 = vsyncpa [#allocation6], 0  ;;  %s4859_s17 = smov 0   ;;  %s4861_s18 = smov 0  }
   0xa   :  { %s4863_s19 = smov 0   ;;  %s4865_s20 = smov 0  }
   0xb   :  { %s4867_s21 = smov 0   ;;  %s4869_s22 = smov 0  }
   0xc LB: > { %5834 = sst [smem:[#allocation13_spill]] %s4767_s19  ;;  %s5827_s23 = sadd.s32 4294967295, %s4779_s22   ;;  %s4779_s22 = sphi %s4869_s22, %s29_s22   ;;  %s4775_s21 = sphi %s4867_s21, %s5852_s21   ;;  %s4771_s20 = sphi %s4865_s20, %s5851_s20   ;;  %s4767_s19 = sphi %s4863_s19, %s5847_s19   ;;  %s4763_s18 = sphi %s4861_s18, %s5850_s18   ;;  %s4759_s17 = sphi %s4859_s17, %s5849_s17  }
   0xd   : > { %s38_s24 = sadd.s32 1, %s4775_s21  ;;  %s100_s25 = sadd.s32 1, %s4767_s19 }
   0xe   : > { %p39_p0 = scmp.ge.s32.totalorder %s38_s24, 2  ;;  %p107_p1 = scmp.ne.s32.totalorder %s4767_s19, %s4763_s18 }
   0xf   : > { %p108_p2 = scmp.eq.s32.totalorder %s4779_s22, 0  ;;  %p113_p4 = scmp.ne.s32.totalorder %s4763_s18, %s4759_s17 }
  0x10   : > { %s5854_s24 = smov (%p39_p0, %s38_s24), 0  ;;  %p114_p5 = scmp.eq.s32.totalorder %s5827_s23, 0 }
  0x11   : > { %5835 = sst [smem:[#allocation14_spill]] %s5854_s24  ;;  %p109_p3 = por %p108_p2, %p107_p1 }
  0x12   : > { %s97_s26 = ssub.s32 %s4775_s21, %s5854_s24  ;;  %p4900_p7 = por %p114_p5, %p113_p4 }
  0x13   : > { %p98_p6 = scmp.eq.s32.totalorder %s97_s26, 0  ;;  %p4303_p8 = scmp.lt.s32.totalorder %s4779_s22, 2 }
  0x14   : > { %s4909_s29 = sand.u32 1, %s4767_s19   ;;  %s4286_s30 = smul.u32 3072, %s4775_s21 }
  0x15   : > { %s4906_s28 = scalar_select %p98_p6, %s4767_s19, %s100_s25  }
  0x16   : > { %s4285_s12 = smul.u32 192, %s4909_s29  ;;  %s5838_s2 = sld [smem:[#allocation16_spill]] }
  0x17   : > { %5837 = sst [smem:[#allocation15_spill]] %s4906_s28  ;;  %p4916_p9 = pnand %p4303_p8, %p109_p3 }
  0x18   : > { %s389_s17 = scalar_lea.vmem [#allocation4], %s4285_s12  ;;  %s386_s25 = scalar_lea.sflag [#allocation5], %s4909_s29 }
  0x19   : > { %s396_s26 = sshll.u32 %s389_s17, 4  ;;  %p4643_p10 = pneg %p4916_p9  ;;  %s397_s26 = int_to_ptr.vmem [resolvable:$true] %s396_s26 }
  0x1a   : > { %s4654_s23 = scalar_lea.vmem %s397_s26, 3072  ;;  %s4781_s13 = smov [#allocation4]  }
  0x1b   : > { %p4655_p11 = scmp.ne.s32.totalorder %s397_s26, %s4654_s23 }
  0x1c   : > { %s395_s15 = scalar_lea.hbm %s5838_s2, %s4286_s30  ;;  %s4659_s30 = sshll.u32 %s4781_s13, 4  ;;  %s4660_s30 = int_to_ptr.vmem [resolvable:$false] %s4659_s30 }
  0x1d   : > { %p4657_p12 = pnand %p4655_p11, %p4643_p10  ;;  %s4661_s14 = scalar_lea.vmem %s4660_s30, 6144 }
  0x1e   : > { %p4662_p0 = scmp.lt.s32.totalorder %s397_s26, %s4660_s30  ;;  %p4663_p1 = scmp.lt.s32.totalorder %s4661_s14, %s4654_s23 }
  0x1f   : > { %p4658_p13 = pneg %p4657_p12 }
  0x20   : > { %p4664_p2 = por %p4663_p1, %p4662_p0 }
  0x22   : > { %p4665_p3 = pnand %p4664_p2, %p4658_p13 }
  0x24   : > { %4668 = shalt.err (!%p4665_p3)
}
  0x25   : > { %s4782_s12 = smov 192   ;;  %s4783_s17 = smov 12  }
  0x26   : > { %4299 = dma.hbm_to_vmem [thread:$0]  (!%p4916_p9), %s395_s15, 3072, %s397_s26, %s386_s25, %s4782_s12, %s4782_s12, %s4783_s17  }
  0x27   : > { %p3811_p4 = scmp.ge.s32.totalorder %s4779_s22, 1  ;;  %p456_p5 = scmp.lt.s32.totalorder %s4779_s22, 3 }
  0x28   : > { %s3808_s13 = sshll.u32 %s4909_s29, 8  ;;  %s3996_s23 = sshll.u32 %s4775_s21, 12 }
  0x29   : > { %p4931_p6 = pnand %p3811_p4, %p456_p5  ;;  %s441_s14 = scalar_lea.vmem [#allocation7], %s3808_s13 }
  0x2a   : > { %s448_s2 = sshll.u32 %s441_s14, 4  ;;  %s5841_s7 = sld [smem:[#allocation17_spill]]  ;;  %s449_s2 = int_to_ptr.vmem [resolvable:$true] %s448_s2 }
  0x2b   : > { %s438_s11 = scalar_lea.sflag [#allocation8], %s4909_s29  ;;  %s4682_s9 = scalar_lea.vmem %s449_s2, 4096 }
  0x2c   : > { %p4683_p8 = scmp.ne.s32.totalorder %s449_s2, %s4682_s9  ;;  %s4784_s15 = smov [#allocation7]  }
  0x2d   : > { %s4687_s26 = sshll.u32 %s4784_s15, 4  ;;  %s4688_s26 = int_to_ptr.vmem [resolvable:$false] %s4687_s26 }
  0x2e   : > { %p4685_p11 = pnand %p4683_p8, %p4643_p10  ;;  %s4689_s25 = scalar_lea.vmem %s4688_s26, 8192 }
  0x2f   : > { %p4690_p13 = scmp.lt.s32.totalorder %s449_s2, %s4688_s26  ;;  %p4691_p0 = scmp.lt.s32.totalorder %s4689_s25, %s4682_s9 }
  0x30   : > { %s447_s19 = scalar_lea.hbm %s5841_s7, %s3996_s23  ;;  %p4686_p12 = pneg %p4685_p11 }
  0x31   : > { %p4692_p1 = por %p4691_p0, %p4690_p13 }
  0x33   : > { %p4693_p2 = pnand %p4692_p1, %p4686_p12 }
  0x35   : > { %4696 = shalt.err (!%p4693_p2)
}
  0x36   : > { %s4785_s12 = smov 64   ;;  %s4786_s24 = smov 4  }
  0x37   : > { %4302 = dma.hbm_to_vmem [thread:$0]  (!%p4916_p9), %s447_s19, 4096, %s449_s2, %s438_s11, %s4785_s12, %s4785_s12, %s4786_s24  }
  0x38   : > { %460 = sbr.rel (%p4931_p6) target bundleno = 2869 (0xb35), region = 60  ;;  %s462_s28 = sand.u32 (!%p4931_p6), 1, %s4763_s18  }
  0x39   : > { %s4287_s29 = smul.u32 (!%p4931_p6), 192, %s462_s28  ;;  %s463_s17 = scalar_lea.sflag (!%p4931_p6), [#allocation5], %s462_s28 }
  0x3b   : > { %s4948_s13 = scalar_lea.vmem (!%p4931_p6), [#allocation4], %s4287_s29 }
  0x3d   : > { %4746 = dma.done.wait (%p4900_p7), %s463_s17, 3072  }
  0x3e   : > { %4748 = vsyncadd (%p4900_p7), %s463_s17, 4294964224  ;;  %s3812_s9 = sshll.u32 %s462_s28, 8  ;;  %s472_s23 = scalar_lea.sflag [#allocation8], %s462_s28 }
  0x3f   : > { %s4954_s16 = scalar_lea.vmem [#allocation7], %s3812_s9 }
  0x40   : > { %4750 = dma.done.wait (%p4900_p7), %s472_s23, 4096  }
  0x41   : > { %4752 = vsyncadd (%p4900_p7), %s472_s23, 4294963200  ;;  %p561_p9 = scmp.lt.s32.totalorder %s4771_s20, 1  ;;  %p3820_p7 = scmp.ne.s32.totalorder %s4771_s20, 0 }
  0x43   : > { %s562_s2 = scalar_select %p561_p9, %s4771_s20, 1 }
  0x44   : > { %592 = sbr.rel (%p3820_p7) target bundleno = 84 (0x54), region = 72 }
  0x45   : > { %s3997_s11 = sshll.u32 %s562_s2, 6  ;;  %s3998_s19 = sshll.u32 %s562_s2, 4 }
  0x46   : > { %s4965_s15 = scalar_lea.vmem %s5818_s3, %s3997_s11  ;;  %s4970_s12 = scalar_lea.vmem %s5819_s4, %s3998_s19 }
  0x47   : > { %s3999_s24 = sshll.u32 %s562_s2, 8  ;;  %s3819_s28 = sshll.u32 %s562_s2, 2 }
  0x48   : > { %s4975_s17 = scalar_lea.vmem %s5820_s5, %s3999_s24  ;;  %s4980_s7 = scalar_lea.vmem %s5821_s6, %s3819_s28 }
  0x49   : > { %v593_v0 = vld [vmem:[%s5816_s1] sm:$0xff]  ;;  %v594_v1 = vld [vmem:[%s5816_s1 + $0x8] sm:$0xff]  ;;  %v595_v2 = vld [vmem:[%s5816_s1 + $0x10] sm:$0xff] }
  0x4a   : > { %597 = vst [vmem:[%s5825_s10] sm:$0xff] %v593_v0  ;;  %598 = vst [vmem:[%s5825_s10 + $0x8] sm:$0xff] %v594_v1 }
  0x4b   : > { %599 = vst [vmem:[%s5825_s10 + $0x10] sm:$0xff] %v595_v2 }
  0x52   : > { %v596_v3 = vld [vmem:[%s5816_s1 + $0x18] sm:$0xff] }
  0x53   : > { %600 = vst [vmem:[%s5825_s10 + $0x18] sm:$0xff] %v596_v3 }
  0x54 PF: > { %v4370_v4 = vld [vmem:[%s4948_s13 + $0xac] ss:$12 sps:$4 sm:$0xff]   ;;  %v4372_v5 = vld [vmem:[%s4948_s13 + $0xa8] ss:$12 sps:$4 sm:$0xff]   ;;  %v4787_v6 = vmov 0   ;;  %v601_v12 = vld [vmem:[%s5825_s10] sm:$0xff]  ;;  %v879_v36 = vlaneseq }
  0x55   : > { %809 = vmatprep.mubr.bf16.mxu0 %v4787_v6  ;;  %777 = vmatprep.subr.bf16.mxu0 %v4370_v4  ;;  %v4373_v7 = vld [vmem:[%s4948_s13 + $0x94] ss:$12 sps:$4 sm:$0xff]   ;;  %v4375_v8 = vld [vmem:[%s4948_s13 + $0x90] ss:$12 sps:$4 sm:$0xff]   ;;  %v4378_v10 = vld [vmem:[%s4948_s13 + $0x78] ss:$12 sps:$4 sm:$0xff]  }
  0x56   : > { %778 = vmatpush1.bf16.msra.mxu0 %v4372_v5  ;;  %v4376_v9 = vld [vmem:[%s4948_s13 + $0x7c] ss:$12 sps:$4 sm:$0xff]   ;;  %v4379_v11 = vld [vmem:[%s4948_s13 + $0x64] ss:$12 sps:$4 sm:$0xff]   ;;  %v4381_v13 = vld [vmem:[%s4948_s13 + $0x60] ss:$12 sps:$4 sm:$0xff]  }
  0x57   : > { %779 = vmatprep.subr.bf16.mxu0 %v4373_v7  ;;  %v4382_v14 = vld [vmem:[%s4948_s13 + $0x4c] ss:$12 sps:$4 sm:$0xff]   ;;  %v4394_v17 = vld [vmem:[%s4948_s13 + $0xb0] ss:$12 sps:$4 sm:$0xff]   ;;  %v4384_v19 = vld [vmem:[%s4948_s13 + $0x48] ss:$12 sps:$4 sm:$0xff]  }
  0x58   : > { %v602_v15 = vld [vmem:[%s5825_s10 + $0x8] sm:$0xff]  ;;  %v4395_v18 = vld [vmem:[%s4948_s13 + $0x98] ss:$12 sps:$4 sm:$0xff]   ;;  %4129 = vmatprep.subr.bf16.mxu1 %v4394_v17  ;;  %v4385_v20 = vld [vmem:[%s4948_s13 + $0x34] ss:$12 sps:$4 sm:$0xff]   ;;  %v4788_v35 = vmov 0.0  }
  0x59   : > { %v605_v16 = vpack.c.bf16 %v602_v15, %v601_v12  ;;  %4130 = vmatpush3.bf16.msra.mxu1 %v4394_v17  ;;  %v4396_v21 = vld [vmem:[%s4948_s13 + $0x80] ss:$12 sps:$4 sm:$0xff]   ;;  %v4387_v22 = vld [vmem:[%s4948_s13 + $0x30] ss:$12 sps:$4 sm:$0xff]   ;;  %v4397_v24 = vld [vmem:[%s4948_s13 + $0x68] ss:$12 sps:$4 sm:$0xff]  }
  0x5a   : > { %780 = vmatpush1.bf16.msra.mxu0 %v4375_v8  ;;  %4131 = vmatprep.subr.bf16.mxu1 %v4395_v18  ;;  %v4388_v23 = vld [vmem:[%s4948_s13 + $0x1c] ss:$12 sps:$4 sm:$0xff]   ;;  %v4390_v25 = vld [vmem:[%s4948_s13 + $0x18] ss:$12 sps:$4 sm:$0xff]   ;;  %v4393_v28 = vld [vmem:[%s4948_s13] ss:$12 sps:$4 sm:$0xff]  }
  0x5b   : > { %781 = vmatprep.subr.bf16.mxu0 %v4376_v9  ;;  %4145 = vmatprep.mubr.bf16.mxu1 %v605_v16  ;;  %v4391_v26 = vld [vmem:[%s4948_s13 + $0x4] ss:$12 sps:$4 sm:$0xff]   ;;  %v4400_v30 = vld [vmem:[%s4948_s13 + $0x20] ss:$12 sps:$4 sm:$0xff]   ;;  %v604_v32 = vld [vmem:[%s5825_s10 + $0x18] sm:$0xff]  ;;  %vm4789_vm0 = vmmov 0  }
  0x5c   : > { %v4398_v27 = vld [vmem:[%s4948_s13 + $0x50] ss:$12 sps:$4 sm:$0xff]   ;;  %v4399_v29 = vld [vmem:[%s4948_s13 + $0x38] ss:$12 sps:$4 sm:$0xff]   ;;  %v4401_v33 = vld [vmem:[%s4948_s13 + $0x8] ss:$12 sps:$4 sm:$0xff]  }
  0x5d   : > { %4132 = vmatpush3.bf16.msra.mxu1 %v4395_v18  ;;  %v603_v31 = vld [vmem:[%s5825_s10 + $0x10] sm:$0xff]  ;;  %v5051_v37 = vshrl.u32 %v879_v36, 7  ;;  %v5055_v39 = vld [vmem:[%s4970_s12] sm:$0xff]  ;;  %vm923_vm1 = vcmask 257024   ;;  %s4790_s13 = smov 96   ;;  %s4791_s9 = smov 64  }
  0x5e   : > { %782 = vmatpush1.bf16.msra.mxu0 %v4378_v10  ;;  %4133 = vmatprep.subr.bf16.mxu1 %v4396_v21  ;;  %v606_v34 = vpack.c.bf16 %v604_v32, %v603_v31  ;;  %vm1177_vm2 = vcmask 261120   ;;  %s4792_s23 = smov 32   ;;  %vm1704_vm3 = vcmask 130048   ;;  %vm2309_vm4 = vcmask 523520   ;;  %p3978_p10 = scmp.ne.s32.totalorder %s4771_s20, 1 }
  0x5f   : > { %783 = vmatprep.subr.bf16.mxu0 %v4379_v11  ;;  %v881_v38 = vsub.s32 0, %v5051_v37  ;;  %v891_v40 = vsub.s32 1, %v5051_v37  ;;  %v901_v11 = vsub.s32 2, %v5051_v37  ;;  %vm2330_vm5 = vcmask 785920   ;;  %s5842_s11 = sld [smem:[#allocation18_spill]] (!%p3978_p10) }
  0x60   : > { %vm2351_vm6 = vcmask 1048320  }
  0x61   : > { %4134 = vmatpush3.bf16.msra.mxu1 %v4396_v21  ;;  %v882_v41 = vrot.slane %v5055_v39, %v881_v38  ;;  %v892_v42 = vrot.slane %v5055_v39, %v891_v40  ;;  %v902_v12 = vrot.slane %v5055_v39, %v901_v11 }
  0x62   : > { %784 = vmatpush1.bf16.msra.mxu0 %v4381_v13  ;;  %4135 = vmatprep.subr.bf16.mxu1 %v4397_v24 }
  0x63   : > { %785 = vmatprep.subr.bf16.mxu0 %v4382_v14 }
  0x65   : > { %4136 = vmatpush3.bf16.msra.mxu1 %v4397_v24 }
  0x66   : > { %786 = vmatpush1.bf16.msra.mxu0 %v4384_v19  ;;  %4137 = vmatprep.subr.bf16.mxu1 %v4398_v27 }
  0x67   : > { %787 = vmatprep.subr.bf16.mxu0 %v4385_v20 }
  0x69   : > { %4138 = vmatpush3.bf16.msra.mxu1 %v4398_v27 }
  0x6a   : > { %788 = vmatpush1.bf16.msra.mxu0 %v4387_v22  ;;  %4139 = vmatprep.subr.bf16.mxu1 %v4399_v29 }
  0x6b   : > { %789 = vmatprep.subr.bf16.mxu0 %v4388_v23 }
  0x6d   : > { %4140 = vmatpush3.bf16.msra.mxu1 %v4399_v29 }
  0x6e   : > { %790 = vmatpush1.bf16.msra.mxu0 %v4390_v25  ;;  %4141 = vmatprep.subr.bf16.mxu1 %v4400_v30 }
  0x6f   : > { %791 = vmatprep.subr.bf16.mxu0 %v4391_v26 }
  0x71   : > { %4142 = vmatpush3.bf16.msra.mxu1 %v4400_v30 }
  0x72   : > { %792 = vmatpush1.bf16.msra.mxu0 %v4393_v28  ;;  %4143 = vmatprep.subr.bf16.mxu1 %v4401_v33 }
  0x73   : > { %4149 = vmatprep.subr.bf16.mxu0 %v4788_v35 }
  0x75   : > { %810 = vmatmul.mubr.bf16.vlgmr.msra.gmra.mxu0 %v605_v16  ;;  %4144 = vmatpush3.bf16.msra.mxu1 %v4401_v33 }
  0x76   : > { %819 = vmatprep.mubr.bf16.mxu0 %v4787_v6  ;;  %4161 = vmatprep.subr.bf16.mxu1 %v4788_v35 }
  0x78   : > { %4146 = vmatmul.mubr.bf16.vlgmr.msra.gmra.mxu1 %v606_v34 }
  0x79   : > { %4163 = vmatprep.mubr.msk.bf16.mxu1 %vm4789_vm0, %v4788_v35 }
  0x7d   : > { %820 = vmatmul.mubr.bf16.gmra.mxu0 %v606_v34 }
  0x7e   : > { %4151 = vmatprep.mubr.msk.bf16.mxu0 %vm4789_vm0, %v4788_v35 }
 0x135   : > { %v811_v43 = vpop.f32.mrf.mxu0 }
 0x136   : > { %v883_v44 = vadd.f32 %v882_v41, %v811_v43 }
 0x137   : > { %v813_v45 = vpop.f32.mrf.mxu0 }
 0x138   : > { %v5064_v46 = vpack.c.bf16 %v883_v44, %v883_v44  ;;  %v893_v47 = vadd.f32 %v892_v42, %v813_v45  ;;  %v4147_v10 = vpop.f32.mrf.mxu1 }
 0x139   : > { %v815_v48 = vpop.f32.mrf.mxu0  ;;  %v905_v14 = vadd.f32 %v4147_v10, %v902_v12 }
 0x13a   : > { %924 = vst.msk [vmem:[#allocation2] sm:$0xf] %vm923_vm1, %v5064_v46  ;;  %v4004_v49 = vpack.c.bf16 %v893_v47, %v893_v47  ;;  %v884_v50 = vadd.f32 %v882_v41, %v815_v48  ;;  %966 = vrot.lane.b32.xlu0 %v5064_v46, %s4790_s13  ;;  %v864_v13 = vpop.f32.mrf.mxu1 }
 0x13b   : > { %v817_v51 = vpop.f32.mrf.mxu0  ;;  %v903_v15 = vadd.f32 %v902_v12, %v864_v13  ;;  %v5119_v16 = vpack.c.bf16 %v905_v14, %v905_v14 }
 0x13c   : > { %943 = vst.msk [vmem:[#allocation2 + $0x40] sm:$0xf] %vm923_vm1, %v4004_v49  ;;  %v5071_v52 = vpack.c.bf16 %v884_v50, %v884_v50  ;;  %v894_v53 = vadd.f32 %v892_v42, %v817_v51  ;;  %v4148_v18 = vpop.f32.mrf.mxu1 }
 0x13d   : > { %v821_v54 = vpop.f32.mrf.mxu0  ;;  %v5121_v17 = vpack.c.bf16 %v903_v15, %v903_v15  ;;  %964 = vst.msk [vmem:[#allocation2 + $0x88] sm:$0xf] %vm923_vm1, %v5119_v16  ;;  %v906_v19 = vadd.f32 %v4148_v18, %v902_v12 }
 0x13e   : > { %925 = vst.msk [vmem:[#allocation2 + $0x4] sm:$0xf] %vm923_vm1, %v5071_v52  ;;  %v4005_v55 = vpack.c.bf16 %v894_v53, %v894_v53  ;;  %v885_v56 = vadd.f32 %v882_v41, %v821_v54  ;;  %1017 = vrot.lane.b32.xlu0 %v5064_v46, %s4791_s9  ;;  %968 = vrot.lane.b32.xlu1 %v5071_v52, %s4790_s13  ;;  %v867_v20 = vpop.f32.mrf.mxu1 }
 0x13f   : > { %v823_v57 = vpop.f32.mrf.mxu0  ;;  %962 = vst.msk [vmem:[#allocation2 + $0x80] sm:$0xf] %vm923_vm1, %v5121_v17  ;;  %v5129_v21 = vpack.c.bf16 %v906_v19, %v906_v19  ;;  %v904_v22 = vadd.f32 %v902_v12, %v867_v20  ;;  %v3881_v12 = vld [vmem:[%s5815_s0] ss:$0 sm:$0xff] }
 0x140   : > { %944 = vst.msk [vmem:[#allocation2 + $0x44] sm:$0xf] %vm923_vm1, %v4005_v55  ;;  %v4002_v58 = vpack.c.bf16 %v885_v56, %v885_v56  ;;  %v895_v59 = vadd.f32 %v892_v42, %v823_v57 }
 0x141   : > { %v825_v60 = vpop.f32.mrf.mxu0  ;;  %965 = vst.msk [vmem:[#allocation2 + $0x8c] sm:$0xf] %vm923_vm1, %v5129_v21  ;;  %v5134_v23 = vpack.c.bf16 %v904_v22, %v904_v22 }
 0x142   : > { %926 = vst.msk [vmem:[#allocation2 + $0x8] sm:$0xf] %vm923_vm1, %v4002_v58  ;;  %v4006_v61 = vpack.c.bf16 %v895_v59, %v895_v59  ;;  %v886_v62 = vadd.f32 %v882_v41, %v825_v60  ;;  %983 = vrot.lane.b32.xlu0 %v4004_v49, %s4790_s13  ;;  %1019 = vrot.lane.b32.xlu1 %v5071_v52, %s4791_s9 }
 0x143   : > { %v827_v63 = vpop.f32.mrf.mxu0  ;;  %963 = vst.msk [vmem:[#allocation2 + $0x84] sm:$0xf] %vm923_vm1, %v5134_v23 }
 0x144   : > { %945 = vst.msk [vmem:[#allocation2 + $0x48] sm:$0xf] %vm923_vm1, %v4006_v61  ;;  %v4003_v0 = vpack.c.bf16 %v886_v62, %v886_v62  ;;  %v896_v1 = vadd.f32 %v892_v42, %v827_v63 }
 0x145   : > { %v4403_v7 = vld [vmem:[#allocation2] sm:$0xff]  }
 0x146   : > { %927 = vst.msk [vmem:[#allocation2 + $0xc] sm:$0xf] %vm923_vm1, %v4003_v0  ;;  %v4007_v2 = vpack.c.bf16 %v896_v1, %v896_v1  ;;  %1034 = vrot.lane.b32.xlu0 %v4004_v49, %s4791_s9  ;;  %1036 = vrot.lane.b32.xlu1 %v4005_v55, %s4791_s9 }
 0x147   : > { %v4402_v3 = vld [vmem:[#allocation2 + $0x40] sm:$0xff]  }
 0x148   : > { %946 = vst.msk [vmem:[#allocation2 + $0x4c] sm:$0xf] %vm923_vm1, %v4007_v2  ;;  %v1182_v4 = vsel %vm1177_vm2, %v4402_v3, 0 }
 0x149   : > { %4150 = vmatpush3.bf16.xpose.msra.mxu0 %v1182_v4 }
 0x14a   : > { %985 = vrot.lane.b32.xlu0 %v4005_v55, %s4790_s13  ;;  %987 = vrot.lane.b32.xlu1 %v4006_v61, %s4790_s13  ;;  %v4418_v4 = vld [vmem:[#allocation2 + $0x80] sm:$0xff]  }
 0x14b   : > { %4155 = vmatprep.subr.bf16.mxu0 %v4788_v35 }
 0x14d   : > { %v4405_v9 = vld [vmem:[#allocation2 + $0x8] sm:$0xff]  }
 0x14e   : > { %1085 = vrot.lane.b32.xlu0 %v4004_v49, %s4792_s23  ;;  %972 = vrot.lane.b32.xlu1 %v4003_v0, %s4790_s13 }
 0x14f   : > { %v4404_v5 = vld [vmem:[#allocation2 + $0x48] sm:$0xff]  }
 0x150   : > { %v1239_v8 = vsel %vm1177_vm2, %v4404_v5, 0  ;;  %4152 = vmatmul.mubr.msk.bf16.vlgmr.msra.gmra.mxu0 %vm1177_vm2, %v4403_v7  ;;  %v4419_v7 = vld [vmem:[#allocation2 + $0x88] sm:$0xff]  }
 0x151   : > { %4156 = vmatpush3.bf16.xpose.msra.mxu0 %v1239_v8  ;;  %4157 = vmatprep.mubr.msk.bf16.mxu0 %vm4789_vm0, %v4788_v35 }
 0x152   : > { %970 = vrot.lane.b32.xlu0 %v4002_v58, %s4790_s13  ;;  %989 = vrot.lane.b32.xlu1 %v4007_v2, %s4790_s13 }
 0x153   : > { %4167 = vmatprep.subr.bf16.mxu0 %v4788_v35 }
 0x156   : > { %1038 = vrot.lane.b32.xlu0 %v4006_v61, %s4791_s9  ;;  %1087 = vrot.lane.b32.xlu1 %v4005_v55, %s4792_s23 }
 0x158   : > { %4158 = vmatmul.mubr.msk.bf16.vlgmr.msra.gmra.mxu0 %vm1177_vm2, %v4405_v9 }
 0x159   : > { %4169 = vmatprep.mubr.msk.bf16.mxu0 %vm4789_vm0, %v4788_v35 }
 0x15a   : > { %1021 = vrot.lane.b32.xlu0 %v4002_v58, %s4791_s9  ;;  %1040 = vrot.lane.b32.xlu1 %v4007_v2, %s4791_s9 }
 0x15e   : > { %1089 = vrot.lane.b32.xlu0 %v4006_v61, %s4792_s23  ;;  %1023 = vrot.lane.b32.xlu1 %v4003_v0, %s4791_s9 }
 0x162   : > { %1068 = vrot.lane.b32.xlu0 %v5064_v46, %s4792_s23  ;;  %1091 = vrot.lane.b32.xlu1 %v4007_v2, %s4792_s23 }
 0x166   : > { %1072 = vrot.lane.b32.xlu0 %v4002_v58, %s4792_s23  ;;  %1070 = vrot.lane.b32.xlu1 %v5071_v52, %s4792_s23 }
 0x16a   : > { %1074 = vrot.lane.b32.xlu1 %v4003_v0, %s4792_s23  ;;  %1002 = vrot.lane.b32.xlu0 %v5134_v23, %s4790_s13 }
 0x16e   : > { %1000 = vrot.lane.b32.xlu1 %v5121_v17, %s4790_s13  ;;  %1006 = vrot.lane.b32.xlu0 %v5129_v21, %s4790_s13 }
 0x172   : > { %1004 = vrot.lane.b32.xlu1 %v5119_v16, %s4790_s13  ;;  %1055 = vrot.lane.b32.xlu0 %v5119_v16, %s4791_s9 }
 0x176   : > { %1051 = vrot.lane.b32.xlu1 %v5121_v17, %s4791_s9 }
 0x17a   : > { %1053 = vrot.lane.b32.xlu1 %v5134_v23, %s4791_s9 }
 0x17e   : > { %1057 = vrot.lane.b32.xlu1 %v5129_v21, %s4791_s9 }
 0x1ac   : > { %v967_v24 = vpop.permute.xlu0 %966 }
 0x1ad   : > { %979 = vst.msk [vmem:[#allocation2 + $0x10] sm:$0xf] %vm923_vm1, %v967_v24 }
 0x1b0   : > { %v1018_v25 = vpop.permute.xlu0 %1017  ;;  %v969_v26 = vpop.permute.xlu1 %968 }
 0x1b1   : > { %1030 = vst.msk [vmem:[#allocation2 + $0x20] sm:$0xf] %vm923_vm1, %v1018_v25  ;;  %980 = vst.msk [vmem:[#allocation2 + $0x14] sm:$0xf] %vm923_vm1, %v969_v26 }
 0x1b4   : > { %v984_v27 = vpop.permute.xlu0 %983  ;;  %v1020_v28 = vpop.permute.xlu1 %1019 }
 0x1b5   : > { %996 = vst.msk [vmem:[#allocation2 + $0x50] sm:$0xf] %vm923_vm1, %v984_v27  ;;  %1031 = vst.msk [vmem:[#allocation2 + $0x24] sm:$0xf] %vm923_vm1, %v1020_v28 }
 0x1b8   : > { %v1035_v29 = vpop.permute.xlu0 %1034  ;;  %v1037_v30 = vpop.permute.xlu1 %1036  ;;  %v4407_v47 = vld [vmem:[#allocation2 + $0x10] sm:$0xff]  }
 0x1b9   : > { %1047 = vst.msk [vmem:[#allocation2 + $0x60] sm:$0xf] %vm923_vm1, %v1035_v29  ;;  %1048 = vst.msk [vmem:[#allocation2 + $0x64] sm:$0xf] %vm923_vm1, %v1037_v30  ;;  %v3882_v30 = vld [vmem:[%s5815_s0 + $0x1] ss:$0 sm:$0xff] }
 0x1bc   : > { %v986_v31 = vpop.permute.xlu0 %985  ;;  %v988_v32 = vpop.permute.xlu1 %987  ;;  %v4411_v56 = vld [vmem:[#allocation2 + $0x20] sm:$0xff]  }
 0x1bd   : > { %997 = vst.msk [vmem:[#allocation2 + $0x54] sm:$0xf] %vm923_vm1, %v986_v31  ;;  %998 = vst.msk [vmem:[#allocation2 + $0x58] sm:$0xf] %vm923_vm1, %v988_v32 }
 0x1c0   : > { %v1086_v33 = vpop.permute.xlu0 %1085  ;;  %v973_v34 = vpop.permute.xlu1 %972  ;;  %v4408_v45 = vld [vmem:[#allocation2 + $0x60] sm:$0xff]  }
 0x1c1   : > { %1098 = vst.msk [vmem:[#allocation2 + $0x70] sm:$0xf] %vm923_vm1, %v1086_v33  ;;  %982 = vst.msk [vmem:[#allocation2 + $0x1c] sm:$0xf] %vm923_vm1, %v973_v34  ;;  %v1410_v50 = vsel %vm1177_vm2, %v4408_v45, 0 }
 0x1c4   : > { %v971_v36 = vpop.permute.xlu0 %970  ;;  %v4406_v39 = vld [vmem:[#allocation2 + $0x50] sm:$0xff]   ;;  %v990_v41 = vpop.permute.xlu1 %989 }
 0x1c5   : > { %981 = vst.msk [vmem:[#allocation2 + $0x18] sm:$0xf] %vm923_vm1, %v971_v36  ;;  %999 = vst.msk [vmem:[#allocation2 + $0x5c] sm:$0xf] %vm923_vm1, %v990_v41  ;;  %v1296_v42 = vsel %vm1177_vm2, %v4406_v39, 0 }
 0x1c6   : > { %4162 = vmatpush3.bf16.xpose.msra.mxu1 %v1296_v42 }
 0x1c7   : > { %4173 = vmatprep.subr.bf16.mxu1 %v4788_v35 }
 0x1c8   : > { %v1039_v43 = vpop.permute.xlu0 %1038  ;;  %v1088_v44 = vpop.permute.xlu1 %1087 }
 0x1c9   : > { %1049 = vst.msk [vmem:[#allocation2 + $0x68] sm:$0xf] %vm923_vm1, %v1039_v43  ;;  %1099 = vst.msk [vmem:[#allocation2 + $0x74] sm:$0xf] %vm923_vm1, %v1088_v44 }
 0x1cc   : > { %v1022_v46 = vpop.permute.xlu0 %1021  ;;  %v1041_v48 = vpop.permute.xlu1 %1040  ;;  %v4409_v49 = vld [vmem:[#allocation2 + $0x58] sm:$0xff]  }
 0x1cd   : > { %1032 = vst.msk [vmem:[#allocation2 + $0x28] sm:$0xf] %vm923_vm1, %v1022_v46  ;;  %1050 = vst.msk [vmem:[#allocation2 + $0x6c] sm:$0xf] %vm923_vm1, %v1041_v48  ;;  %4164 = vmatmul.mubr.msk.bf16.vlgmr.msra.gmra.mxu1 %vm1177_vm2, %v4407_v47  ;;  %v1353_v51 = vsel %vm1177_vm2, %v4409_v49, 0  ;;  %v4410_v58 = vld [vmem:[#allocation2 + $0x18] sm:$0xff]  }
 0x1ce   : > { %4174 = vmatpush3.bf16.xpose.msra.mxu1 %v1410_v50  ;;  %4175 = vmatprep.mubr.msk.bf16.mxu1 %vm4789_vm0, %v4788_v35  ;;  %v3883_v49 = vld [vmem:[%s5815_s0 + $0x2] ss:$0 sm:$0xff] }
 0x1cf   : > { %4168 = vmatpush3.bf16.xpose.msra.mxu0 %v1353_v51  ;;  %4185 = vmatprep.subr.bf16.mxu1 %v4788_v35 }
 0x1d0   : > { %v1090_v52 = vpop.permute.xlu0 %1089  ;;  %v1024_v53 = vpop.permute.xlu1 %1023  ;;  %4179 = vmatprep.subr.bf16.mxu0 %v4788_v35  ;;  %v4412_v54 = vld [vmem:[#allocation2 + $0x70] sm:$0xff]  }
 0x1d1   : > { %1100 = vst.msk [vmem:[#allocation2 + $0x78] sm:$0xf] %vm923_vm1, %v1090_v52  ;;  %1033 = vst.msk [vmem:[#allocation2 + $0x2c] sm:$0xf] %vm923_vm1, %v1024_v53  ;;  %v1524_v60 = vsel %vm1177_vm2, %v4412_v54, 0 }
 0x1d4   : > { %v1069_v55 = vpop.permute.xlu0 %1068  ;;  %v1092_v57 = vpop.permute.xlu1 %1091  ;;  %v4413_v59 = vld [vmem:[#allocation2 + $0x68] sm:$0xff]  }
 0x1d5   : > { %1081 = vst.msk [vmem:[#allocation2 + $0x30] sm:$0xf] %vm923_vm1, %v1069_v55  ;;  %1101 = vst.msk [vmem:[#allocation2 + $0x7c] sm:$0xf] %vm923_vm1, %v1092_v57  ;;  %4176 = vmatmul.mubr.msk.bf16.vlgmr.msra.gmra.mxu1 %vm1177_vm2, %v4411_v56  ;;  %v1467_v61 = vsel %vm1177_vm2, %v4413_v59, 0 }
 0x1d6   : > { %4170 = vmatmul.mubr.msk.bf16.vlgmr.msra.gmra.mxu0 %vm1177_vm2, %v4410_v58  ;;  %4186 = vmatpush3.bf16.xpose.msra.mxu1 %v1524_v60 }
 0x1d7   : > { %4180 = vmatpush3.bf16.xpose.msra.mxu0 %v1467_v61  ;;  %4181 = vmatprep.mubr.msk.bf16.mxu0 %vm4789_vm0, %v4788_v35  ;;  %v3884_v61 = vld [vmem:[%s5815_s0 + $0x3] ss:$0 sm:$0xff] }
 0x1d8   : > { %v1073_v62 = vpop.permute.xlu0 %1072  ;;  %v1071_v63 = vpop.permute.xlu1 %1070  ;;  %4191 = vmatprep.subr.bf16.mxu0 %v4788_v35  ;;  %4187 = vmatprep.mubr.msk.bf16.mxu1 %vm4789_vm0, %v4788_v35  ;;  %v4414_v1 = vld [vmem:[#allocation2 + $0x28] sm:$0xff]  }
 0x1d9   : > { %1083 = vst.msk [vmem:[#allocation2 + $0x38] sm:$0xf] %vm923_vm1, %v1073_v62  ;;  %1082 = vst.msk [vmem:[#allocation2 + $0x34] sm:$0xf] %vm923_vm1, %v1071_v63  ;;  %4197 = vmatprep.subr.bf16.mxu1 %v4788_v35 }
 0x1dc   : > { %v1075_v0 = vpop.permute.xlu1 %1074  ;;  %v4415_v2 = vld [vmem:[#allocation2 + $0x78] sm:$0xff]   ;;  %v1003_v15 = vpop.permute.xlu0 %1002 }
 0x1dd   : > { %1084 = vst.msk [vmem:[#allocation2 + $0x3c] sm:$0xf] %vm923_vm1, %v1075_v0  ;;  %v1581_v3 = vsel %vm1177_vm2, %v4415_v2, 0  ;;  %1014 = vst.msk [vmem:[#allocation2 + $0x94] sm:$0xf] %vm923_vm1, %v1003_v15 }
 0x1de   : > { %4182 = vmatmul.mubr.msk.bf16.vlgmr.msra.gmra.mxu0 %vm1177_vm2, %v4414_v1  ;;  %v3885_v2 = vld [vmem:[%s5815_s0 + $0x4] ss:$0 sm:$0xff] }
 0x1df   : > { %4192 = vmatpush3.bf16.xpose.msra.mxu0 %v1581_v3  ;;  %4193 = vmatprep.mubr.msk.bf16.mxu0 %vm4789_vm0, %v4788_v35 }
 0x1e0   : > { %v4416_v5 = vld [vmem:[#allocation2 + $0x30] sm:$0xff]   ;;  %4203 = vmatprep.subr.bf16.mxu0 %v4788_v35  ;;  %v1001_v9 = vpop.permute.xlu1 %1000  ;;  %v1007_v26 = vpop.permute.xlu0 %1006 }
 0x1e1   : > { %4188 = vmatmul.mubr.msk.bf16.vlgmr.msra.gmra.mxu1 %vm1177_vm2, %v4416_v5  ;;  %1013 = vst.msk [vmem:[#allocation2 + $0x90] sm:$0xf] %vm923_vm1, %v1001_v9  ;;  %1016 = vst.msk [vmem:[#allocation2 + $0x9c] sm:$0xf] %vm923_vm1, %v1007_v26 }
 0x1e2   : > { %4198 = vmatpush3.bf16.msra.mxu1 %v4418_v4  ;;  %4199 = vmatprep.mubr.msk.bf16.mxu1 %vm4789_vm0, %v4788_v35 }
 0x1e3   : > { %4209 = vmatprep.subr.bf16.mxu1 %v4788_v35 }
 0x1e4   : > { %v4417_v8 = vld [vmem:[#allocation2 + $0x38] sm:$0xff]   ;;  %v1005_v19 = vpop.permute.xlu1 %1004  ;;  %v1056_v34 = vpop.permute.xlu0 %1055 }
 0x1e5   : > { %1015 = vst.msk [vmem:[#allocation2 + $0x98] sm:$0xf] %vm923_vm1, %v1005_v19  ;;  %1066 = vst.msk [vmem:[#allocation2 + $0xa8] sm:$0xf] %vm923_vm1, %v1056_v34  ;;  %v3886_v19 = vld [vmem:[%s5815_s0 + $0x5] ss:$0 sm:$0xff] }
 0x1e6   : > { %4194 = vmatmul.mubr.msk.bf16.vlgmr.msra.gmra.mxu0 %vm1177_vm2, %v4417_v8 }
 0x1e7   : > { %4204 = vmatpush3.bf16.msra.mxu0 %v4419_v7  ;;  %4205 = vmatprep.mubr.msk.bf16.mxu0 %vm4789_vm0, %v4788_v35 }
 0x1e8   : > { %4215 = vmatprep.subr.bf16.mxu0 %v4788_v35  ;;  %v1052_v28 = vpop.permute.xlu1 %1051 }
 0x1e9   : > { %1064 = vst.msk [vmem:[#allocation2 + $0xa0] sm:$0xf] %vm923_vm1, %v1052_v28 }
 0x1ec   : > { %v1054_v39 = vpop.permute.xlu1 %1053 }
 0x1ed   : > { %1065 = vst.msk [vmem:[#allocation2 + $0xa4] sm:$0xf] %vm923_vm1, %v1054_v39 }
 0x1f0   : > { %v1058_v46 = vpop.permute.xlu1 %1057 }
 0x1f1   : > { %1067 = vst.msk [vmem:[#allocation2 + $0xac] sm:$0xf] %vm923_vm1, %v1058_v46 }
 0x210   : > { %v1218_v10 = vpop.f32.mrf.mxu0 }
 0x211   : > { %v1624_v13 = vmul.f32 0.17677669, %v1218_v10 }
 0x212   : > { %v4153_v14 = vpop.f32.mrf.mxu0 }
 0x213   : > { %v5214_v18 = vadd.f32 %v3881_v12, %v1624_v13 }
 0x214   : > { %v1221_v20 = vpop.f32.mrf.mxu0 }
 0x215   : > { %v1625_v22 = vmul.f32 0.17677669, %v1221_v20  ;;  %v1705_v24 = vsel %vm1704_vm3, %v5214_v18, -inf }
 0x216   : > { %1706 = vmax.xlane.f32.xlu0 %v1705_v24  ;;  %v4154_v25 = vpop.f32.mrf.mxu0 }
 0x217   : > { %v5220_v27 = vadd.f32 %v3881_v12, %v1625_v22 }
 0x218   : > { %v1275_v29 = vpop.f32.mrf.mxu0 }
 0x219   : > { %v1626_v31 = vmul.f32 0.17677669, %v1275_v29  ;;  %v1708_v32 = vsel %vm1704_vm3, %v5220_v27, -inf }
 0x21a   : > { %1709 = vmax.xlane.f32.xlu1 %v1708_v32  ;;  %v4159_v33 = vpop.f32.mrf.mxu0 }
 0x21b   : > { %v5229_v36 = vadd.f32 %v3882_v30, %v1626_v31  ;;  %v3887_v31 = vld [vmem:[%s5815_s0 + $0x6] ss:$0 sm:$0xff] }
 0x21c   : > { %v1278_v41 = vpop.f32.mrf.mxu0 }
 0x21d   : > { %v1627_v42 = vmul.f32 0.17677669, %v1278_v41  ;;  %v1711_v43 = vsel %vm1704_vm3, %v5229_v36, -inf }
 0x21e   : > { %1712 = vmax.xlane.f32.xlu0 %v1711_v43  ;;  %v4160_v44 = vpop.f32.mrf.mxu0 }
 0x21f   : > { %v5235_v45 = vadd.f32 %v3882_v30, %v1627_v42 }
 0x221   : > { %v1714_v47 = vsel %vm1704_vm3, %v5235_v45, -inf }
 0x222   : > { %1715 = vmax.xlane.f32.xlu0 %v1714_v47 }
 0x28d   : > { %v1332_v48 = vpop.f32.mrf.mxu1 }
 0x28e   : > { %v1628_v50 = vmul.f32 0.17677669, %v1332_v48 }
 0x28f   : > { %v4165_v51 = vpop.f32.mrf.mxu1 }
 0x290   : > { %v5243_v52 = vadd.f32 %v3883_v49, %v1628_v50  ;;  %v3888_v51 = vld [vmem:[%s5815_s0 + $0x7] ss:$0 sm:$0xff] }
 0x291   : > { %v1335_v53 = vpop.f32.mrf.mxu1 }
 0x292   : > { %v1629_v54 = vmul.f32 0.17677669, %v1335_v53  ;;  %v1717_v55 = vsel %vm1704_vm3, %v5243_v52, -inf }
 0x293   : > { %v4166_v56 = vpop.f32.mrf.mxu1  ;;  %1718 = vmax.xlane.f32.xlu1 %v1717_v55 }
 0x294   : > { %v5247_v57 = vadd.f32 %v3883_v49, %v1629_v54 }
 0x295   : > { %v1446_v58 = vpop.f32.mrf.mxu1 }
 0x296   : > { %v1389_v59 = vpop.f32.mrf.mxu0  ;;  %v1720_v60 = vsel %vm1704_vm3, %v5247_v57, -inf  ;;  %v1632_v63 = vmul.f32 0.17677669, %v1446_v58 }
 0x297   : > { %v1630_v62 = vmul.f32 0.17677669, %v1389_v59  ;;  %v4177_v0 = vpop.f32.mrf.mxu1  ;;  %1721 = vmax.xlane.f32.xlu0 %v1720_v60 }
 0x298   : > { %v4171_v1 = vpop.f32.mrf.mxu0  ;;  %v5261_v12 = vadd.f32 %v3885_v2, %v1632_v63 }
 0x299   : > { %v1449_v3 = vpop.f32.mrf.mxu1  ;;  %v5257_v4 = vadd.f32 %v3884_v61, %v1630_v62 }
 0x29a   : > { %v1392_v5 = vpop.f32.mrf.mxu0  ;;  %v1633_v8 = vmul.f32 0.17677669, %v1449_v3  ;;  %v1729_v22 = vsel %vm1704_vm3, %v5261_v12, -inf }
 0x29b   : > { %v1631_v7 = vmul.f32 0.17677669, %v1392_v5  ;;  %v4178_v9 = vpop.f32.mrf.mxu1  ;;  %v1723_v10 = vsel %vm1704_vm3, %v5257_v4, -inf }
 0x29c   : > { %1724 = vmax.xlane.f32.xlu1 %v1723_v10  ;;  %v4172_v13 = vpop.f32.mrf.mxu0  ;;  %v5272_v25 = vadd.f32 %v3885_v2, %v1633_v8 }
 0x29d   : > { %v5263_v14 = vadd.f32 %v3884_v61, %v1631_v7 }
 0x29e   : > { %v1503_v15 = vpop.f32.mrf.mxu0  ;;  %v1732_v34 = vsel %vm1704_vm3, %v5272_v25, -inf }
 0x29f   : > { %v1634_v20 = vmul.f32 0.17677669, %v1503_v15  ;;  %v1726_v24 = vsel %vm1704_vm3, %v5263_v14, -inf  ;;  %v1707_v2 = vpop.xlane.xlu0 %1706 }
 0x2a0   : > { %1730 = vmax.xlane.f32.xlu1 %v1729_v22  ;;  %1727 = vmax.xlane.f32.xlu0 %v1726_v24  ;;  %v4183_v26 = vpop.f32.mrf.mxu0  ;;  %v1753_v5 = vsub.f32 %v5214_v18, %v1707_v2 }
 0x2a1   : > { %v5274_v28 = vadd.f32 %v3886_v19, %v1634_v20  ;;  %v1560_v30 = vpop.f32.mrf.mxu1 }
 0x2a2   : > { %v1506_v29 = vpop.f32.mrf.mxu0  ;;  %v1636_v33 = vmul.f32 0.17677669, %v1560_v30  ;;  %v1769_v9 = vmul.f32 1.442695, %v1753_v5 }
 0x2a3   : > { %v1635_v32 = vmul.f32 0.17677669, %v1506_v29  ;;  %v4189_v39 = vpop.f32.mrf.mxu1  ;;  %v1735_v41 = vsel %vm1704_vm3, %v5274_v28, -inf  ;;  %v1710_v7 = vpop.xlane.xlu1 %1709 }
 0x2a4   : > { %1733 = vmax.xlane.f32.xlu0 %v1732_v34  ;;  %1736 = vmax.xlane.f32.xlu1 %v1735_v41  ;;  %v4184_v42 = vpop.f32.mrf.mxu0  ;;  %v5283_v43 = vadd.f32 %v3887_v31, %v1636_v33  ;;  %v1754_v8 = vsub.f32 %v5220_v27, %v1710_v7  ;;  %4514 = vpow2.f32 %v1769_v9 }
 0x2a5   : > { %v5285_v44 = vadd.f32 %v3886_v19, %v1635_v32  ;;  %v1563_v46 = vpop.f32.mrf.mxu1 }
 0x2a6   : > { %v1637_v47 = vmul.f32 0.17677669, %v1563_v46  ;;  %v1617_v48 = vpop.f32.mrf.mxu0  ;;  %v1741_v49 = vsel %vm1704_vm3, %v5283_v43, -inf  ;;  %v1771_v15 = vmul.f32 1.442695, %v1754_v8 }
 0x2a7   : > { %v1738_v50 = vsel %vm1704_vm3, %v5285_v44, -inf  ;;  %v1638_v53 = vmul.f32 0.17677669, %v1617_v48  ;;  %v4190_v54 = vpop.f32.mrf.mxu1  ;;  %v1713_v3 = vpop.xlane.xlu0 %1712 }
 0x2a8   : > { %1739 = vmax.xlane.f32.xlu0 %v1738_v50  ;;  %1742 = vmax.xlane.f32.xlu1 %v1741_v49  ;;  %v4195_v55 = vpop.f32.mrf.mxu0  ;;  %v5294_v56 = vadd.f32 %v3887_v31, %v1637_v47  ;;  %v1755_v10 = vsub.f32 %v5229_v36, %v1713_v3  ;;  %4516 = vpow2.f32 %v1771_v15 }
 0x2a9   : > { %v5296_v58 = vadd.f32 %v3888_v51, %v1638_v53 }
 0x2aa   : > { %v1620_v59 = vpop.f32.mrf.mxu0  ;;  %v1744_v60 = vsel %vm1704_vm3, %v5294_v56, -inf  ;;  %v1773_v19 = vmul.f32 1.442695, %v1755_v10 }
 0x2ab   : > { %v1639_v61 = vmul.f32 0.17677669, %v1620_v59  ;;  %v1747_v62 = vsel %vm1704_vm3, %v5296_v58, -inf  ;;  %v1716_v13 = vpop.xlane.xlu0 %1715 }
 0x2ac   : > { %1745 = vmax.xlane.f32.xlu0 %v1744_v60  ;;  %1748 = vmax.xlane.f32.xlu1 %v1747_v62  ;;  %v4196_v63 = vpop.f32.mrf.mxu0  ;;  %v1756_v20 = vsub.f32 %v5235_v45, %v1716_v13  ;;  %4518 = vpow2.f32 %v1773_v19 }
 0x2ad   : > { %v5302_v0 = vadd.f32 %v3888_v51, %v1639_v61 }
 0x2af   : > { %v1750_v1 = vsel %vm1704_vm3, %v5302_v0, -inf }
 0x2b0   : > { %1751 = vmax.xlane.f32.xlu0 %v1750_v1 }
 0x2bd   : > { %1104 = vrot.lane.b32.xlu1 %v5134_v23, %s4792_s23  ;;  %v1775_v23 = vmul.f32 1.442695, %v1756_v20 }
 0x2bf   : > { %4520 = vpow2.f32 %v1775_v23 }
 0x2c6   : > { %1102 = vrot.lane.b32.xlu0 %v5121_v17, %s4792_s23  ;;  %v5314_v17 = vpop.eup %4514 }
 0x2c7   : > { %v5316_v22 = vpop.eup %4516  ;;  %v1801_v18 = vsel %vm1704_vm3, %v5314_v17, 0.0 }
 0x2c8   : > { %v5320_v27 = vpop.eup %4518  ;;  %v1804_v45 = vsel %vm1704_vm3, %v5316_v22, 0.0 }
 0x2c9   : > { %v1807_v36 = vsel %vm1704_vm3, %v5320_v27, 0.0 }
 0x2cc   : > { %v5326_v24 = vpop.eup %4520 }
 0x2cd   : > { %v1810_v26 = vsel %vm1704_vm3, %v5326_v24, 0.0 }
 0x2e1   : > { %1802 = vadd.xlane.f32.xlu1 %v1801_v18 }
 0x2e5   : > { %1808 = vadd.xlane.f32.xlu1 %v1807_v36  ;;  %1805 = vadd.xlane.f32.xlu0 %v1804_v45 }
 0x2e9   : > { %1811 = vadd.xlane.f32.xlu0 %v1810_v26 }
 0x31c   : > { %v1719_v29 = vpop.xlane.xlu1 %1718 }
 0x31d   : > { %v1757_v30 = vsub.f32 %v5243_v52, %v1719_v29 }
 0x31f   : > { %v1777_v31 = vmul.f32 1.442695, %v1757_v30 }
 0x320   : > { %v1722_v32 = vpop.xlane.xlu0 %1721 }
 0x321   : > { %4522 = vpow2.f32 %v1777_v31  ;;  %v1758_v33 = vsub.f32 %v5247_v57, %v1722_v32 }
 0x323   : > { %v1779_v34 = vmul.f32 1.442695, %v1758_v33 }
 0x325   : > { %4524 = vpow2.f32 %v1779_v34  ;;  %v1725_v39 = vpop.xlane.xlu1 %1724 }
 0x326   : > { %v1759_v41 = vsub.f32 %v5257_v4, %v1725_v39 }
 0x328   : > { %v1781_v42 = vmul.f32 1.442695, %v1759_v41 }
 0x329   : > { %v1731_v46 = vpop.xlane.xlu1 %1730  ;;  %v1728_v47 = vpop.xlane.xlu0 %1727 }
 0x32a   : > { %4526 = vpow2.f32 %v1781_v42  ;;  %v1761_v48 = vsub.f32 %v5261_v12, %v1731_v46  ;;  %v1760_v49 = vsub.f32 %v5263_v14, %v1728_v47 }
 0x32c   : > { %v1785_v50 = vmul.f32 1.442695, %v1761_v48  ;;  %v1783_v52 = vmul.f32 1.442695, %v1760_v49 }
 0x32d   : > { %v1734_v51 = vpop.xlane.xlu0 %1733  ;;  %v1737_v54 = vpop.xlane.xlu1 %1736 }
 0x32e   : > { %v5335_v53 = vpop.eup %4522  ;;  %4528 = vpow2.f32 %v1785_v50  ;;  %v1762_v57 = vsub.f32 %v5272_v25, %v1734_v51  ;;  %v1763_v4 = vsub.f32 %v5274_v28, %v1737_v54 }
 0x32f   : > { %4530 = vpow2.f32 %v1783_v52  ;;  %v1813_v55 = vsel %vm1704_vm3, %v5335_v53, 0.0 }
 0x330   : > { %v1787_v59 = vmul.f32 1.442695, %v1762_v57  ;;  %1814 = vadd.xlane.f32.xlu1 %v1813_v55  ;;  %v1789_v12 = vmul.f32 1.442695, %v1763_v4 }
 0x331   : > { %v1740_v60 = vpop.xlane.xlu0 %1739  ;;  %v1743_v61 = vpop.xlane.xlu1 %1742 }
 0x332   : > { %v5341_v14 = vpop.eup %4524  ;;  %4532 = vpow2.f32 %v1787_v59  ;;  %v1764_v62 = vsub.f32 %v5285_v44, %v1740_v60  ;;  %v1765_v25 = vsub.f32 %v5283_v43, %v1743_v61  ;;  %v4420_v59 = vld [vmem:[#allocation2 + $0x90] sm:$0xff]   ;;  %v4421_v61 = vld [vmem:[#allocation2 + $0x98] sm:$0xff]  }
 0x333   : > { %4534 = vpow2.f32 %v1789_v12  ;;  %v1816_v63 = vsel %vm1704_vm3, %v5341_v14, 0.0 }
 0x334   : > { %v1791_v28 = vmul.f32 1.442695, %v1764_v62  ;;  %1817 = vadd.xlane.f32.xlu0 %v1816_v63  ;;  %v1793_v1 = vmul.f32 1.442695, %v1765_v25 }
 0x335   : > { %v1746_v2 = vpop.xlane.xlu0 %1745  ;;  %v1749_v5 = vpop.xlane.xlu1 %1748 }
 0x336   : > { %4536 = vpow2.f32 %v1791_v28  ;;  %v1766_v3 = vsub.f32 %v5294_v56, %v1746_v2  ;;  %v1767_v8 = vsub.f32 %v5296_v58, %v1749_v5 }
 0x337   : > { %v5348_v7 = vpop.eup %4526  ;;  %4538 = vpow2.f32 %v1793_v1 }
 0x338   : > { %v1795_v44 = vmul.f32 1.442695, %v1766_v3  ;;  %v1819_v43 = vsel %vm1704_vm3, %v5348_v7, 0.0  ;;  %v1797_v9 = vmul.f32 1.442695, %v1767_v8 }
 0x339   : > { %1820 = vadd.xlane.f32.xlu1 %v1819_v43  ;;  %v1105_v10 = vpop.permute.xlu1 %1104  ;;  %v1752_v13 = vpop.xlane.xlu0 %1751  ;;  %v4422_v43 = vld [vmem:[#allocation2 + $0xa0] sm:$0xff]  }
 0x33a   : > { %4540 = vpow2.f32 %v1795_v44  ;;  %1116 = vst.msk [vmem:[#allocation2 + $0xb4] sm:$0xf] %vm923_vm1, %v1105_v10  ;;  %v1768_v56 = vsub.f32 %v5302_v0, %v1752_v13 }
 0x33b   : > { %v5353_v15 = vpop.eup %4528  ;;  %4542 = vpow2.f32 %v1797_v9 }
 0x33c   : > { %v5357_v19 = vpop.eup %4530  ;;  %v1825_v58 = vsel %vm1704_vm3, %v5353_v15, 0.0  ;;  %v1799_v20 = vmul.f32 1.442695, %v1768_v56 }
 0x33d   : > { %1826 = vadd.xlane.f32.xlu1 %v1825_v58  ;;  %v1822_v23 = vsel %vm1704_vm3, %v5357_v19, 0.0  ;;  %v1103_v18 = vpop.permute.xlu0 %1102 }
 0x33e   : > { %1823 = vadd.xlane.f32.xlu0 %v1822_v23  ;;  %4544 = vpow2.f32 %v1799_v20  ;;  %1115 = vst.msk [vmem:[#allocation2 + $0xb0] sm:$0xf] %vm923_vm1, %v1103_v18 }
 0x33f   : > { %v5363_v36 = vpop.eup %4532 }
 0x340   : > { %v5366_v45 = vpop.eup %4534  ;;  %v1828_v0 = vsel %vm1704_vm3, %v5363_v36, 0.0 }
 0x341   : > { %v1831_v26 = vsel %vm1704_vm3, %v5366_v45, 0.0 }
 0x342   : > { %1832 = vadd.xlane.f32.xlu1 %v1831_v26  ;;  %1829 = vadd.xlane.f32.xlu0 %v1828_v0  ;;  %v4423_v0 = vld [vmem:[#allocation2 + $0xa8] sm:$0xff]  }
 0x343   : > { %v5372_v29 = vpop.eup %4536 }
 0x344   : > { %v5374_v30 = vpop.eup %4538  ;;  %v1834_v31 = vsel %vm1704_vm3, %v5372_v29, 0.0 }
 0x345   : > { %v1837_v32 = vsel %vm1704_vm3, %v5374_v30, 0.0 }
 0x346   : > { %1838 = vadd.xlane.f32.xlu1 %v1837_v32  ;;  %1835 = vadd.xlane.f32.xlu0 %v1834_v31 }
 0x347   : > { %v5380_v33 = vpop.eup %4540 }
 0x348   : > { %v5382_v34 = vpop.eup %4542  ;;  %v1840_v39 = vsel %vm1704_vm3, %v5380_v33, 0.0 }
 0x349   : > { %v1843_v41 = vsel %vm1704_vm3, %v5382_v34, 0.0 }
 0x34a   : > { %1844 = vadd.xlane.f32.xlu1 %v1843_v41  ;;  %1841 = vadd.xlane.f32.xlu0 %v1840_v39 }
 0x34b   : > { %v5388_v42 = vpop.eup %4544 }
 0x34c   : > { %v1846_v46 = vsel %vm1704_vm3, %v5388_v42, 0.0 }
 0x34e   : > { %1847 = vadd.xlane.f32.xlu0 %v1846_v46  ;;  %v4424_v46 = vld [vmem:[#allocation2 + $0xb0] sm:$0xff]  }
 0x35b   : > { %1108 = vrot.lane.b32.xlu1 %v5129_v21, %s4792_s23 }
 0x364   : > { %1106 = vrot.lane.b32.xlu0 %v5119_v16, %s4792_s23 }
 0x36a   : > { %v1803_v47 = vpop.xlane.xlu1 %1802 }
 0x36b   : > { %4546 = vrcp.f32 %v1803_v47 }
 0x36e   : > { %v1809_v48 = vpop.xlane.xlu1 %1808  ;;  %v1806_v49 = vpop.xlane.xlu0 %1805 }
 0x36f   : > { %4548 = vrcp.f32 %v1806_v49 }
 0x370   : > { %4550 = vrcp.f32 %v1809_v48 }
 0x372   : > { %v1812_v50 = vpop.xlane.xlu0 %1811 }
 0x373   : > { %4552 = vrcp.f32 %v1812_v50 }
 0x378   : > { %v4547_v52 = vpop.eup %4546 }
 0x379   : > { %v1865_v54 = vmul.f32 %v4547_v52, %v5314_v17 }
 0x37c   : > { %v4549_v51 = vpop.eup %4548 }
 0x37d   : > { %v4551_v57 = vpop.eup %4550  ;;  %v1866_v4 = vmul.f32 %v4549_v51, %v5316_v22 }
 0x37e   : > { %v1867_v16 = vmul.f32 %v4551_v57, %v5320_v27 }
 0x37f   : > { %v1881_v21 = vpack.c.bf16 %v1866_v4, %v1865_v54 }
 0x380   : > { %v4553_v55 = vpop.eup %4552 }
 0x381   : > { %v1868_v12 = vmul.f32 %v4553_v55, %v5326_v24  ;;  %4200 = vmatmul.mubr.msk.bf16.vlgmr.msra.gmra.mxu1 %vm1704_vm3, %v1881_v21 }
 0x382   : > { %4210 = vmatpush3.bf16.msra.mxu1 %v4420_v59  ;;  %4211 = vmatprep.mubr.msk.bf16.mxu1 %vm4789_vm0, %v4788_v35 }
 0x383   : > { %v1882_v60 = vpack.c.bf16 %v1868_v12, %v1867_v16  ;;  %4221 = vmatprep.subr.bf16.mxu1 %v4788_v35  ;;  %v4426_v12 = vld [vmem:[%s4965_s15 + $0x38] sm:$0xff]  }
 0x385   : > { %4206 = vmatmul.mubr.msk.bf16.vlgmr.msra.gmra.mxu0 %vm1704_vm3, %v1882_v60  ;;  %v4427_v60 = vld [vmem:[%s4965_s15 + $0x30] sm:$0xff]  }
 0x386   : > { %4216 = vmatpush3.bf16.msra.mxu0 %v4421_v61  ;;  %4217 = vmatprep.mubr.msk.bf16.mxu0 %vm4789_vm0, %v4788_v35 }
 0x387   : > { %4227 = vmatprep.subr.bf16.mxu0 %v4788_v35 }
 0x3b9   : > { %v1815_v17 = vpop.xlane.xlu1 %1814 }
 0x3ba   : > { %4554 = vrcp.f32 %v1815_v17 }
 0x3bd   : > { %v1818_v22 = vpop.xlane.xlu0 %1817 }
 0x3be   : > { %4556 = vrcp.f32 %v1818_v22  ;;  %v4428_v22 = vld [vmem:[%s4965_s15 + $0x28] sm:$0xff]  }
 0x3c2   : > { %v1821_v27 = vpop.xlane.xlu1 %1820 }
 0x3c3   : > { %4558 = vrcp.f32 %v1821_v27 }
 0x3c6   : > { %v1827_v24 = vpop.xlane.xlu1 %1826 }
 0x3c7   : > { %v1824_v62 = vpop.xlane.xlu0 %1823  ;;  %v4555_v25 = vpop.eup %4554 }
 0x3c8   : > { %4560 = vrcp.f32 %v1824_v62  ;;  %v1869_v2 = vmul.f32 %v4555_v25, %v5335_v53  ;;  %v4429_v62 = vld [vmem:[%s4965_s15 + $0x20] sm:$0xff]  }
 0x3c9   : > { %4562 = vrcp.f32 %v1827_v24 }
 0x3cb   : > { %v4557_v63 = vpop.eup %4556  ;;  %v1833_v28 = vpop.xlane.xlu1 %1832 }
 0x3cc   : > { %v1830_v1 = vpop.xlane.xlu0 %1829  ;;  %v1870_v3 = vmul.f32 %v4557_v63, %v5341_v14  ;;  %v4430_v63 = vld [vmem:[%s4965_s15 + $0x18] sm:$0xff]  }
 0x3cd   : > { %4564 = vrcp.f32 %v1830_v1 }
 0x3ce   : > { %v1883_v5 = vpack.c.bf16 %v1870_v3, %v1869_v2  ;;  %4566 = vrcp.f32 %v1833_v28  ;;  %v4431_v3 = vld [vmem:[%s4965_s15 + $0x10] sm:$0xff]  }
 0x3cf   : > { %v1839_v8 = vpop.xlane.xlu1 %1838 }
 0x3d0   : > { %v1836_v44 = vpop.xlane.xlu0 %1835  ;;  %4212 = vmatmul.mubr.msk.bf16.vlgmr.msra.gmra.mxu1 %vm1704_vm3, %v1883_v5  ;;  %v4559_v9 = vpop.eup %4558 }
 0x3d1   : > { %4568 = vrcp.f32 %v1836_v44  ;;  %4222 = vmatpush3.bf16.msra.mxu1 %v4422_v43  ;;  %4223 = vmatprep.mubr.msk.bf16.mxu1 %vm4789_vm0, %v4788_v35  ;;  %v1871_v13 = vmul.f32 %v4559_v9, %v5348_v7  ;;  %v4432_v9 = vld [vmem:[%s4965_s15 + $0x8] sm:$0xff]  }
 0x3d2   : > { %4233 = vmatprep.subr.bf16.mxu1 %v4788_v35  ;;  %4570 = vrcp.f32 %v1839_v8 }
 0x3d3   : > { %v1845_v53 = vpop.xlane.xlu1 %1844 }
 0x3d4   : > { %v1842_v10 = vpop.xlane.xlu0 %1841 }
 0x3d5   : > { %v4561_v14 = vpop.eup %4560  ;;  %4572 = vrcp.f32 %v1842_v10 }
 0x3d6   : > { %4574 = vrcp.f32 %v1845_v53  ;;  %v1872_v56 = vmul.f32 %v4561_v14, %v5357_v19  ;;  %v4563_v23 = vpop.eup %4562  ;;  %v4433_v53 = vld [vmem:[%s4965_s15] sm:$0xff]  }
 0x3d7   : > { %v1109_v58 = vpop.permute.xlu1 %1108  ;;  %v1873_v32 = vmul.f32 %v4563_v23, %v5353_v15 }
 0x3d8   : > { %v1848_v20 = vpop.xlane.xlu0 %1847  ;;  %1118 = vst.msk [vmem:[#allocation2 + $0xbc] sm:$0xf] %vm923_vm1, %v1109_v58  ;;  %v1884_v18 = vpack.c.bf16 %v1872_v56, %v1871_v13 }
 0x3d9   : > { %4576 = vrcp.f32 %v1848_v20 }
 0x3da   : > { %v4565_v26 = vpop.eup %4564  ;;  %4218 = vmatmul.mubr.msk.bf16.vlgmr.msra.gmra.mxu0 %vm1704_vm3, %v1884_v18 }
 0x3db   : > { %4228 = vmatpush3.bf16.msra.mxu0 %v4423_v0  ;;  %v1874_v39 = vmul.f32 %v4565_v26, %v5363_v36  ;;  %4229 = vmatprep.mubr.msk.bf16.mxu0 %vm4789_vm0, %v4788_v35  ;;  %v4567_v7 = vpop.eup %4566 }
 0x3dc   : > { %v1107_v31 = vpop.permute.xlu0 %1106  ;;  %4239 = vmatprep.subr.bf16.mxu0 %v4788_v35  ;;  %v1875_v47 = vmul.f32 %v4567_v7, %v5366_v45 }
 0x3dd   : > { %1117 = vst.msk [vmem:[#allocation2 + $0xb8] sm:$0xf] %vm923_vm1, %v1107_v31  ;;  %v1885_v19 = vpack.c.bf16 %v1874_v39, %v1873_v32 }
 0x3de   : > { %v4569_v41 = vpop.eup %4568 }
 0x3df   : > { %4224 = vmatmul.mubr.msk.bf16.vlgmr.msra.gmra.mxu1 %vm1704_vm3, %v1885_v19  ;;  %v1876_v48 = vmul.f32 %v4569_v41, %v5372_v29  ;;  %v4571_v15 = vpop.eup %4570 }
 0x3e0   : > { %4234 = vmatpush3.bf16.msra.mxu1 %v4424_v46  ;;  %4235 = vmatprep.mubr.msk.bf16.mxu1 %vm4789_vm0, %v4788_v35  ;;  %v1877_v52 = vmul.f32 %v4571_v15, %v5374_v30 }
 0x3e1   : > { %v1886_v36 = vpack.c.bf16 %v1876_v48, %v1875_v47  ;;  %4245 = vmatprep.subr.bf16.mxu1 %v4426_v12 }
 0x3e2   : > { %v4573_v49 = vpop.eup %4572 }
 0x3e3   : > { %v4575_v50 = vpop.eup %4574  ;;  %4230 = vmatmul.mubr.msk.bf16.vlgmr.msra.gmra.mxu0 %vm1704_vm3, %v1886_v36  ;;  %v1878_v51 = vmul.f32 %v4573_v49, %v5380_v33 }
 0x3e4   : > { %v4425_v57 = vld [vmem:[#allocation2 + $0xb8] sm:$0xff]   ;;  %4241 = vmatprep.mubr.msk.bf16.mxu0 %vm4789_vm0, %v4788_v35  ;;  %v1879_v54 = vmul.f32 %v4575_v50, %v5382_v34 }
 0x3e5   : > { %v1887_v29 = vpack.c.bf16 %v1878_v51, %v1877_v52  ;;  %4240 = vmatpush3.bf16.msra.mxu0 %v4425_v57 }
 0x3e6   : > { %v4577_v45 = vpop.eup %4576 }
 0x3e7   : > { %v1880_v4 = vmul.f32 %v4577_v45, %v5388_v42  ;;  %4236 = vmatmul.mubr.msk.bf16.vlgmr.msra.gmra.mxu1 %vm1704_vm3, %v1887_v29 }
 0x3e8   : > { %4246 = vmatpush3.bf16.msra.mxu1 %v4426_v12 }
 0x3e9   : > { %v1888_v55 = vpack.c.bf16 %v1880_v4, %v1879_v54  ;;  %4247 = vmatprep.subr.bf16.mxu1 %v4427_v60 }
 0x3eb   : > { %4242 = vmatmul.mubr.msk.bf16.vlgmr.msra.gmra.mxu0 %vm1704_vm3, %v1888_v55  ;;  %v2380_v55 = vsub.s32 3, %v5051_v37 }
 0x3ec   : > { %2792 = vmatprep.mubr.bf16.mxu0 %v4787_v6  ;;  %4248 = vmatpush3.bf16.msra.mxu1 %v4427_v60 }
 0x3ed   : > { %4249 = vmatprep.subr.bf16.mxu1 %v4428_v22 }
 0x3f0   : > { %4250 = vmatpush3.bf16.msra.mxu1 %v4428_v22  ;;  %v4628_v22 = vld [vmem:[%s5825_s10 + $0x8] sm:$0xff] }
 0x3f1   : > { %4251 = vmatprep.subr.bf16.mxu1 %v4429_v62 }
 0x3f4   : > { %4252 = vmatpush3.bf16.msra.mxu1 %v4429_v62 }
 0x3f5   : > { %4253 = vmatprep.subr.bf16.mxu1 %v4430_v63 }
 0x3f8   : > { %4254 = vmatpush3.bf16.msra.mxu1 %v4430_v63 }
 0x3f9   : > { %4255 = vmatprep.subr.bf16.mxu1 %v4431_v3 }
 0x3fc   : > { %4256 = vmatpush3.bf16.msra.mxu1 %v4431_v3  ;;  %v4439_v3 = vld [vmem:[%s4975_s17 + $0xec] ss:$16 sps:$4 sm:$0xff]  }
 0x3fd   : > { %4257 = vmatprep.subr.bf16.mxu1 %v4432_v9 }
 0x400   : > { %4258 = vmatpush3.bf16.msra.mxu1 %v4432_v9 }
 0x401   : > { %4259 = vmatprep.subr.bf16.mxu1 %v4433_v53 }
 0x404   : > { %4260 = vmatpush3.bf16.msra.mxu1 %v4433_v53 }
 0x405   : > { %2813 = vmatprep.subr.bf16.mxu1 %v4439_v3  ;;  %v2530_v3 = vsub.s32 4, %v5051_v37 }
 0x441   : > { %v1932_v30 = vpop.f32.mrf.mxu1 }
 0x442   : > { %2289 = vst.msk [vmem:[#allocation3] sm:$0xff] %vm1177_vm2, %v1932_v30 }
 0x443   : > { %v4201_v35 = vpop.f32.mrf.mxu1 }
 0x444   : > { %v5466_v35 = vld [vmem:[%s4970_s12] sm:$0xff] }
 0x445   : > { %v1982_v33 = vpop.f32.mrf.mxu0  ;;  %v1935_v21 = vpop.f32.mrf.mxu1 }
 0x446   : > { %2291 = vst.msk [vmem:[#allocation3 + $0x10] sm:$0xff] %vm1177_vm2, %v1982_v33  ;;  %2290 = vst.msk [vmem:[#allocation3 + $0x8] sm:$0xff] %vm1177_vm2, %v1935_v21  ;;  %v2381_v33 = vrot.slane %v5466_v35, %v2380_v55 }
 0x447   : > { %v4207_v34 = vpop.f32.mrf.mxu0  ;;  %v4202_v42 = vpop.f32.mrf.mxu1 }
 0x449   : > { %v1985_v59 = vpop.f32.mrf.mxu0 }
 0x44a   : > { %2292 = vst.msk [vmem:[#allocation3 + $0x18] sm:$0xff] %vm1177_vm2, %v1985_v59 }
 0x44b   : > { %v4208_v16 = vpop.f32.mrf.mxu0 }
 0x44c   : > { %v4627_v16 = vld [vmem:[%s5825_s10] sm:$0xff] }
 0x490   : > { %v2032_v61 = vpop.f32.mrf.mxu1 }
 0x491   : > { %2297 = vrot.lane.b32.xlu0 %v2032_v61, %s4792_s23 }
 0x492   : > { %v4213_v17 = vpop.f32.mrf.mxu1 }
 0x494   : > { %v2035_v27 = vpop.f32.mrf.mxu1 }
 0x495   : > { %2299 = vrot.lane.b32.xlu1 %v2035_v27, %s4792_s23 }
 0x496   : > { %v4214_v24 = vpop.f32.mrf.mxu1 }
 0x497   : > { %v4629_v24 = vld [vmem:[%s5825_s10 + $0x10] sm:$0xff] }
 0x49a   : > { %v2082_v25 = vpop.f32.mrf.mxu0 }
 0x49b   : > { %2301 = vrot.lane.b32.xlu0 %v2082_v25, %s4792_s23  ;;  %v4630_v25 = vld [vmem:[%s5825_s10 + $0x18] sm:$0xff] }
 0x49c   : > { %v4219_v28 = vpop.f32.mrf.mxu0 }
 0x49d   : > { %v4434_v28 = vld [vmem:[%s4975_s17 + $0xe0] ss:$16 sps:$4 sm:$0xff]  }
 0x49e   : > { %v2085_v1 = vpop.f32.mrf.mxu0 }
 0x49f   : > { %v2132_v2 = vpop.f32.mrf.mxu1  ;;  %2303 = vrot.lane.b32.xlu1 %v2085_v1, %s4792_s23  ;;  %v4436_v1 = vld [vmem:[%s4975_s17 + $0xe4] ss:$16 sps:$4 sm:$0xff]  }
 0x4a0   : > { %2318 = vrot.lane.b32.xlu0 %v2132_v2, %s4791_s9  ;;  %v4220_v5 = vpop.f32.mrf.mxu0  ;;  %v4437_v2 = vld [vmem:[%s4975_s17 + $0xe8] ss:$16 sps:$4 sm:$0xff]   ;;  %2760 = vmatprep.subr.bf16.mxu0 %v4436_v1 }
 0x4a1   : > { %v4225_v8 = vpop.f32.mrf.mxu1  ;;  %2761 = vmatpush1.bf16.msra.mxu0 %v4434_v28 }
 0x4a3   : > { %v2135_v44 = vpop.f32.mrf.mxu1  ;;  %v2182_v43 = vpop.f32.mrf.mxu0 }
 0x4a4   : > { %2320 = vrot.lane.b32.xlu1 %v2135_v44, %s4791_s9  ;;  %2322 = vrot.lane.b32.xlu0 %v2182_v43, %s4791_s9 }
 0x4a5   : > { %v4226_v10 = vpop.f32.mrf.mxu1  ;;  %v4231_v14 = vpop.f32.mrf.mxu0 }
 0x4a7   : > { %v2185_v13 = vpop.f32.mrf.mxu0  ;;  %v2232_v56 = vpop.f32.mrf.mxu1 }
 0x4a8   : > { %2339 = vrot.lane.b32.xlu0 %v2232_v56, %s4790_s13  ;;  %2324 = vrot.lane.b32.xlu1 %v2185_v13, %s4791_s9 }
 0x4a9   : > { %v4232_v58 = vpop.f32.mrf.mxu0  ;;  %v4237_v20 = vpop.f32.mrf.mxu1 }
 0x4ab   : > { %v2235_v23 = vpop.f32.mrf.mxu1  ;;  %v2282_v18 = vpop.f32.mrf.mxu0 }
 0x4ac   : > { %2341 = vrot.lane.b32.xlu1 %v2235_v23, %s4790_s13  ;;  %2343 = vrot.lane.b32.xlu0 %v2282_v18, %s4790_s13 }
 0x4ad   : > { %v4238_v0 = vpop.f32.mrf.mxu1  ;;  %v4243_v26 = vpop.f32.mrf.mxu0 }
 0x4af   : > { %v2285_v31 = vpop.f32.mrf.mxu0 }
 0x4b0   : > { %2345 = vrot.lane.b32.xlu1 %v2285_v31, %s4790_s13  ;;  %v4442_v31 = vld [vmem:[%s4975_s17 + $0xc4] ss:$16 sps:$4 sm:$0xff]  }
 0x4b1   : > { %v4244_v32 = vpop.f32.mrf.mxu0  ;;  %2762 = vmatprep.subr.bf16.mxu0 %v4442_v31 }
 0x4b2   : > { %v4445_v32 = vld [vmem:[%s4975_s17 + $0xcc] ss:$16 sps:$4 sm:$0xff]  }
 0x503   : > { %v2298_v39 = vpop.permute.xlu0 %2297 }
 0x504   : > { %2310 = vst.msk [vmem:[#allocation3] sm:$0xff] %vm2309_vm4, %v2298_v39  ;;  %v4440_v39 = vld [vmem:[%s4975_s17 + $0xc0] ss:$16 sps:$4 sm:$0xff]  }
 0x505   : > { %2763 = vmatpush1.bf16.msra.mxu0 %v4440_v39 }
 0x507   : > { %v2300_v7 = vpop.permute.xlu1 %2299 }
 0x508   : > { %2311 = vst.msk [vmem:[#allocation3 + $0x8] sm:$0xff] %vm2309_vm4, %v2300_v7  ;;  %v4443_v7 = vld [vmem:[%s4975_s17 + $0xc8] ss:$16 sps:$4 sm:$0xff]  }
 0x50d   : > { %v2302_v19 = vpop.permute.xlu0 %2301 }
 0x50e   : > { %2312 = vst.msk [vmem:[#allocation3 + $0x10] sm:$0xff] %vm2309_vm4, %v2302_v19  ;;  %v4448_v19 = vld [vmem:[%s4975_s17 + $0xa4] ss:$16 sps:$4 sm:$0xff]  }
 0x50f   : > { %2764 = vmatprep.subr.bf16.mxu0 %v4448_v19 }
 0x511   : > { %v2304_v41 = vpop.permute.xlu1 %2303 }
 0x512   : > { %v2319_v46 = vpop.permute.xlu0 %2318  ;;  %2313 = vst.msk [vmem:[#allocation3 + $0x18] sm:$0xff] %vm2309_vm4, %v2304_v41  ;;  %v4451_v41 = vld [vmem:[%s4975_s17 + $0xac] ss:$16 sps:$4 sm:$0xff]  }
 0x513   : > { %2331 = vst.msk [vmem:[#allocation3] sm:$0xff] %vm2330_vm5, %v2319_v46  ;;  %v4446_v46 = vld [vmem:[%s4975_s17 + $0xa0] ss:$16 sps:$4 sm:$0xff]  }
 0x514   : > { %2765 = vmatpush1.bf16.msra.mxu0 %v4446_v46  ;;  %v4483_v46 = vld [vmem:[%s4954_s16 + $0xf8] sm:$0xff]  }
 0x516   : > { %v2321_v47 = vpop.permute.xlu1 %2320  ;;  %v2323_v48 = vpop.permute.xlu0 %2322 }
 0x517   : > { %2332 = vst.msk [vmem:[#allocation3 + $0x8] sm:$0xff] %vm2330_vm5, %v2321_v47  ;;  %2333 = vst.msk [vmem:[#allocation3 + $0x10] sm:$0xff] %vm2330_vm5, %v2323_v48  ;;  %v4449_v47 = vld [vmem:[%s4975_s17 + $0xa8] ss:$16 sps:$4 sm:$0xff]   ;;  %v4454_v48 = vld [vmem:[%s4975_s17 + $0x84] ss:$16 sps:$4 sm:$0xff]  }
 0x518   : > { %2766 = vmatprep.subr.bf16.mxu0 %v4454_v48  ;;  %v4485_v48 = vld [vmem:[%s4954_s16 + $0xb8] sm:$0xff]  }
 0x51a   : > { %v2340_v15 = vpop.permute.xlu0 %2339  ;;  %v2325_v36 = vpop.permute.xlu1 %2324 }
 0x51b   : > { %2352 = vst.msk [vmem:[#allocation3] sm:$0xff] %vm2351_vm6, %v2340_v15  ;;  %v4457_v15 = vld [vmem:[%s4975_s17 + $0x8c] ss:$16 sps:$4 sm:$0xff]  }
 0x51c   : > { %2334 = vst.msk [vmem:[#allocation3 + $0x18] sm:$0xff] %vm2330_vm5, %v2325_v36  ;;  %v4452_v36 = vld [vmem:[%s4975_s17 + $0x80] ss:$16 sps:$4 sm:$0xff]  }
 0x51d   : > { %2767 = vmatpush1.bf16.msra.mxu0 %v4452_v36  ;;  %v4488_v36 = vld [vmem:[%s4954_s16 + $0x30] sm:$0xff]  }
 0x51e   : > { %v2342_v49 = vpop.permute.xlu1 %2341  ;;  %v2344_v50 = vpop.permute.xlu0 %2343 }
 0x51f   : > { %2353 = vst.msk [vmem:[#allocation3 + $0x8] sm:$0xff] %vm2351_vm6, %v2342_v49  ;;  %2354 = vst.msk [vmem:[#allocation3 + $0x10] sm:$0xff] %vm2351_vm6, %v2344_v50  ;;  %v4455_v49 = vld [vmem:[%s4975_s17 + $0x88] ss:$16 sps:$4 sm:$0xff]   ;;  %v4458_v50 = vld [vmem:[%s4975_s17 + $0x60] ss:$16 sps:$4 sm:$0xff]  }
 0x522   : > { %v2346_v52 = vpop.permute.xlu1 %2345  ;;  %v2356_v51 = vld [vmem:[#allocation3] sm:$0xff] }
 0x523   : > { %2355 = vst.msk [vmem:[#allocation3 + $0x18] sm:$0xff] %vm2351_vm6, %v2346_v52  ;;  %v4460_v52 = vld [vmem:[%s4975_s17 + $0x64] ss:$16 sps:$4 sm:$0xff]  }
 0x524   : > { %2768 = vmatprep.subr.bf16.mxu0 %v4460_v52  ;;  %v4491_v52 = vld [vmem:[%s4954_s16 + $0xe8] sm:$0xff]  }
 0x525   : > { %2769 = vmatpush1.bf16.msra.mxu0 %v4458_v50  ;;  %v4490_v50 = vld [vmem:[%s4954_s16 + $0x68] sm:$0xff]  }
 0x526   : > { %v2357_v57 = vld [vmem:[#allocation3 + $0x8] sm:$0xff]  ;;  %v2358_v29 = vld [vmem:[#allocation3 + $0x10] sm:$0xff] }
 0x527   : > { %v2360_v45 = vpack.c.bf16 %v2357_v57, %v2356_v51  ;;  %v4461_v51 = vld [vmem:[%s4975_s17 + $0x68] ss:$16 sps:$4 sm:$0xff]   ;;  %v4463_v57 = vld [vmem:[%s4975_s17 + $0x6c] ss:$16 sps:$4 sm:$0xff]  }
 0x529   : > { %4261 = vmatprep.mubr.bf16.mxu1 %v2360_v45  ;;  %v4466_v45 = vld [vmem:[%s4975_s17 + $0x44] ss:$16 sps:$4 sm:$0xff]  }
 0x52a   : > { %v2359_v54 = vld [vmem:[#allocation3 + $0x18] sm:$0xff]  ;;  %2770 = vmatprep.subr.bf16.mxu0 %v4466_v45  ;;  %v4494_v45 = vld [vmem:[%s4954_s16 + $0x60] sm:$0xff]  }
 0x52b   : > { %v2361_v4 = vpack.c.bf16 %v2359_v54, %v2358_v29  ;;  %v4469_v29 = vld [vmem:[%s4975_s17 + $0x4c] ss:$16 sps:$4 sm:$0xff]   ;;  %v4464_v54 = vld [vmem:[%s4975_s17 + $0x40] ss:$16 sps:$4 sm:$0xff]  }
 0x52c   : > { %2771 = vmatpush1.bf16.msra.mxu0 %v4464_v54  ;;  %v4496_v54 = vld [vmem:[%s4954_s16 + $0x20] sm:$0xff]  }
 0x52d   : > { %4262 = vmatmul.mubr.bf16.vlgmr.msra.gmra.mxu1 %v2361_v4  ;;  %v4467_v4 = vld [vmem:[%s4975_s17 + $0x48] ss:$16 sps:$4 sm:$0xff]  }
 0x52e   : > { %2845 = vmatprep.mubr.bf16.mxu1 %v4787_v6  ;;  %2814 = vmatpush1.bf16.msra.mxu1 %v4437_v2 }
 0x52f   : > { %2815 = vmatprep.subr.bf16.mxu1 %v4445_v32 }
 0x532   : > { %2816 = vmatpush1.bf16.msra.mxu1 %v4443_v7 }
 0x533   : > { %2817 = vmatprep.subr.bf16.mxu1 %v4451_v41  ;;  %v4482_v41 = vld [vmem:[%s4954_s16 + $0x78] sm:$0xff]  }
 0x536   : > { %2818 = vmatpush1.bf16.msra.mxu1 %v4449_v47  ;;  %v4484_v47 = vld [vmem:[%s4954_s16 + $0x38] sm:$0xff]  }
 0x537   : > { %2819 = vmatprep.subr.bf16.mxu1 %v4457_v15  ;;  %v4487_v15 = vld [vmem:[%s4954_s16 + $0xf0] sm:$0xff]  }
 0x53a   : > { %2820 = vmatpush1.bf16.msra.mxu1 %v4455_v49  ;;  %v4489_v49 = vld [vmem:[%s4954_s16 + $0xb0] sm:$0xff]  }
 0x53b   : > { %2821 = vmatprep.subr.bf16.mxu1 %v4463_v57  ;;  %v4493_v57 = vld [vmem:[%s4954_s16 + $0xa8] sm:$0xff]  }
 0x53e   : > { %2822 = vmatpush1.bf16.msra.mxu1 %v4461_v51  ;;  %v4492_v51 = vld [vmem:[%s4954_s16 + $0x28] sm:$0xff]  }
 0x53f   : > { %2823 = vmatprep.subr.bf16.mxu1 %v4469_v29  ;;  %v4495_v29 = vld [vmem:[%s4954_s16 + $0xe0] sm:$0xff]  }
 0x542   : > { %2824 = vmatpush1.bf16.msra.mxu1 %v4467_v4  ;;  %v4497_v4 = vld [vmem:[%s4954_s16 + $0xa0] sm:$0xff]  }
 0x5ed   : > { %v4263_v30 = vpop.f32.mrf.mxu1 }
 0x5ee   : > { %v2473_v59 = vadd.f32 %v4263_v30, %v2381_v33  ;;  %v4472_v30 = vld [vmem:[%s4975_s17 + $0x24] ss:$16 sps:$4 sm:$0xff]  }
 0x5ef   : > { %v2464_v21 = vpop.f32.mrf.mxu1  ;;  %2772 = vmatprep.subr.bf16.mxu0 %v4472_v30  ;;  %v4498_v30 = vld [vmem:[%s4954_s16 + $0x58] sm:$0xff]  }
 0x5f0   : > { %v2465_v34 = vadd.f32 %v2464_v21, %v2381_v33  ;;  %v2481_v62 = vadd.f32 %v4629_v24, %v2473_v59  ;;  %v4470_v21 = vld [vmem:[%s4975_s17 + $0x20] ss:$16 sps:$4 sm:$0xff]   ;;  %v4481_v59 = vld [vmem:[%s4975_s17 + $0xc] ss:$16 sps:$4 sm:$0xff]  }
 0x5f1   : > { %v4264_v42 = vpop.f32.mrf.mxu1  ;;  %2773 = vmatpush1.bf16.msra.mxu0 %v4470_v21  ;;  %v4500_v21 = vld [vmem:[%s4954_s16 + $0x18] sm:$0xff]  }
 0x5f2   : > { %v2479_v12 = vadd.f32 %v4627_v16, %v2465_v34  ;;  %v2476_v17 = vadd.f32 %v4264_v42, %v2381_v33  ;;  %v4473_v34 = vld [vmem:[%s4975_s17 + $0x28] ss:$16 sps:$4 sm:$0xff]   ;;  %v4478_v42 = vld [vmem:[%s4975_s17 + $0x4] ss:$16 sps:$4 sm:$0xff]   ;;  %v4476_v16 = vld [vmem:[%s4975_s17] ss:$16 sps:$4 sm:$0xff]  }
 0x5f3   : > { %v2467_v60 = vpop.f32.mrf.mxu1  ;;  %2774 = vmatprep.subr.bf16.mxu0 %v4478_v42  ;;  %v4502_v42 = vld [vmem:[%s4954_s16 + $0x50] sm:$0xff]  }
 0x5f4   : > { %v2468_v61 = vadd.f32 %v2467_v60, %v2381_v33  ;;  %2483 = vadd.xlane.f32.xlu0 %v2479_v12  ;;  %v2482_v63 = vadd.f32 %v4630_v25, %v2476_v17  ;;  %v4475_v33 = vld [vmem:[%s4975_s17 + $0x2c] ss:$16 sps:$4 sm:$0xff]  }
 0x5f5   : > { %2825 = vmatprep.subr.bf16.mxu1 %v4475_v33  ;;  %2775 = vmatpush1.bf16.msra.mxu0 %v4476_v16  ;;  %v4499_v33 = vld [vmem:[%s4954_s16 + $0xd8] sm:$0xff]   ;;  %v4504_v16 = vld [vmem:[%s4954_s16 + $0x10] sm:$0xff]  }
 0x5f6   : > { %v2480_v27 = vadd.f32 %v4628_v22, %v2468_v61  ;;  %2826 = vmatpush1.bf16.msra.mxu1 %v4473_v34  ;;  %4064 = vmatprep.subr.bf16.mxu0 %v4482_v41  ;;  %v4501_v34 = vld [vmem:[%s4954_s16 + $0x98] sm:$0xff]  }
 0x5f7   : > { %2827 = vmatprep.subr.bf16.mxu1 %v4481_v59  ;;  %v4503_v59 = vld [vmem:[%s4954_s16 + $0xd0] sm:$0xff]  }
 0x5f8   : > { %2485 = vadd.xlane.f32.xlu1 %v2480_v27  ;;  %2487 = vadd.xlane.f32.xlu0 %v2481_v62 }
 0x5fc   : > { %2489 = vadd.xlane.f32.xlu0 %v2482_v63 }
 0x67d   : > { %v2484_v5 = vpop.xlane.xlu0 %2483 }
 0x67e   : > { %v2492_v8 = vmul.f32 0.0078125, %v2484_v5 }
 0x680   : > { %v5487_v44 = vsub.f32 %v2479_v12, %v2492_v8  ;;  %v4479_v12 = vld [vmem:[%s4975_s17 + $0x8] ss:$16 sps:$4 sm:$0xff]  }
 0x681   : > { %v2486_v43 = vpop.xlane.xlu1 %2485  ;;  %v2488_v9 = vpop.xlane.xlu0 %2487  ;;  %2828 = vmatpush1.bf16.msra.mxu1 %v4479_v12  ;;  %v4505_v12 = vld [vmem:[%s4954_s16 + $0x90] sm:$0xff]  }
 0x682   : > { %v2493_v53 = vmul.f32 0.0078125, %v2486_v43  ;;  %v2494_v10 = vmul.f32 0.0078125, %v2488_v9  ;;  %v2500_v14 = vmul.f32 %v5487_v44, %v5487_v44  ;;  %v2531_v43 = vrot.slane %v5466_v35, %v2530_v3  ;;  %4092 = vmatprep.subr.bf16.mxu1 %v4483_v46 }
 0x683   : > { %v2538_v9 = vsub.s32 5, %v5051_v37 }
 0x684   : > { %v5491_v13 = vsub.f32 %v2480_v27, %v2493_v53  ;;  %v5493_v56 = vsub.f32 %v2481_v62, %v2494_v10  ;;  %2504 = vadd.xlane.f32.xlu1 %v2500_v14 }
 0x685   : > { %v2490_v58 = vpop.xlane.xlu0 %2489 }
 0x686   : > { %v2495_v20 = vmul.f32 0.0078125, %v2490_v58  ;;  %v2501_v23 = vmul.f32 %v5491_v13, %v5491_v13  ;;  %v2502_v18 = vmul.f32 %v5493_v56, %v5493_v56  ;;  %v2539_v58 = vrot.slane %v5466_v35, %v2538_v9 }
 0x688   : > { %v5499_v0 = vsub.f32 %v2482_v63, %v2495_v20  ;;  %2506 = vadd.xlane.f32.xlu0 %v2501_v23  ;;  %2508 = vadd.xlane.f32.xlu1 %v2502_v18 }
 0x68a   : > { %v2503_v26 = vmul.f32 %v5499_v0, %v5499_v0 }
 0x68c   : > { %2510 = vadd.xlane.f32.xlu0 %v2503_v26 }
 0x70d   : > { %v2505_v60 = vpop.xlane.xlu1 %2504 }
 0x70e   : > { %v2512_v61 = vmul.f32 0.0078125, %v2505_v60  ;;  %v4506_v60 = vld [vmem:[%s4954_s16 + $0x48] sm:$0xff]  }
 0x710   : > { %v2516_v17 = vadd.f32 1e-12, %v2512_v61  ;;  %v4507_v61 = vld [vmem:[%s4954_s16 + $0xc8] sm:$0xff]  }
 0x711   : > { %v2509_v22 = vpop.xlane.xlu1 %2508  ;;  %v2507_v27 = vpop.xlane.xlu0 %2506 }
 0x712   : > { %4578 = vrsqrt.f32 %v2516_v17  ;;  %v2514_v24 = vmul.f32 0.0078125, %v2509_v22  ;;  %v2513_v62 = vmul.f32 0.0078125, %v2507_v27  ;;  %v4508_v17 = vld [vmem:[%s4954_s16 + $0x8] sm:$0xff]   ;;  %v4510_v27 = vld [vmem:[%s4954_s16 + $0x40] sm:$0xff]  }
 0x713   : > { %v4509_v22 = vld [vmem:[%s4954_s16 + $0x88] sm:$0xff]  }
 0x714   : > { %v2517_v25 = vadd.f32 1e-12, %v2513_v62  ;;  %v2518_v63 = vadd.f32 1e-12, %v2514_v24  ;;  %v4511_v24 = vld [vmem:[%s4954_s16 + $0xc0] sm:$0xff]  }
 0x715   : > { %v2511_v28 = vpop.xlane.xlu0 %2510  ;;  %v4512_v62 = vld [vmem:[%s4954_s16] sm:$0xff]  }
 0x716   : > { %v2515_v1 = vmul.f32 0.0078125, %v2511_v28  ;;  %4580 = vrsqrt.f32 %v2517_v25  ;;  %v4513_v25 = vld [vmem:[%s4954_s16 + $0x80] sm:$0xff]  }
 0x717   : > { %4582 = vrsqrt.f32 %v2518_v63  ;;  %v2578_v63 = vld [vmem:[%s4980_s7] sm:$0xf] }
 0x718   : > { %v2519_v2 = vadd.f32 1e-12, %v2515_v1  ;;  %v5588_v28 = vrot.slane %v2578_v63, %v881_v38  ;;  %v5592_v1 = vrot.slane %v2578_v63, %v901_v11  ;;  %v5600_v3 = vrot.slane %v2578_v63, %v2380_v55 }
 0x71a   : > { %4584 = vrsqrt.f32 %v2519_v2  ;;  %v5596_v2 = vrot.slane %v2578_v63, %v891_v40 }
 0x71f   : > { %v4579_v5 = vpop.eup %4578 }
 0x720   : > { %v2524_v8 = vmul.f32 %v4579_v5, %v5487_v44 }
 0x722   : > { %v2532_v14 = vmul.f32 %v2531_v43, %v2524_v8 }
 0x723   : > { %v4581_v53 = vpop.eup %4580 }
 0x724   : > { %v2525_v10 = vmul.f32 %v4581_v53, %v5491_v13  ;;  %v4583_v20 = vpop.eup %4582  ;;  %v5538_v31 = vadd.f32 %v2539_v58, %v2532_v14 }
 0x725   : > { %v2526_v32 = vmul.f32 %v4583_v20, %v5493_v56 }
 0x726   : > { %v2533_v18 = vmul.f32 %v2531_v43, %v2525_v10 }
 0x727   : > { %v4585_v23 = vpop.eup %4584  ;;  %v2534_v7 = vmul.f32 %v2531_v43, %v2526_v32 }
 0x728   : > { %v2527_v26 = vmul.f32 %v4585_v23, %v5499_v0  ;;  %v5540_v44 = vadd.f32 %v2539_v58, %v2533_v18 }
 0x729   : > { %v5549_v19 = vadd.f32 %v2539_v58, %v2534_v7 }
 0x72a   : > { %v2544_v13 = vpack.c.bf16 %v5540_v44, %v5538_v31  ;;  %v2535_v39 = vmul.f32 %v2531_v43, %v2527_v26 }
 0x72c   : > { %2793 = vmatmul.mubr.bf16.vlgmr.msra.gmra.mxu0 %v2544_v13  ;;  %2846 = vmatmul.mubr.bf16.vlgmr.msra.gmra.mxu1 %v2544_v13  ;;  %v5547_v0 = vadd.f32 %v2539_v58, %v2535_v39 }
 0x72d   : > { %2802 = vmatprep.mubr.bf16.mxu0 %v4787_v6  ;;  %2855 = vmatprep.mubr.bf16.mxu1 %v4787_v6  ;;  %v4486_v6 = vld [vmem:[%s4954_s16 + $0x70] sm:$0xff]  }
 0x72e   : > { %v2545_v56 = vpack.c.bf16 %v5547_v0, %v5549_v19  ;;  %4065 = vmatpush3.bf16.msra.mxu0 %v4484_v47  ;;  %4093 = vmatpush3.bf16.msra.mxu1 %v4485_v48 }
 0x72f   : > { %4066 = vmatprep.subr.bf16.mxu0 %v4486_v6  ;;  %4094 = vmatprep.subr.bf16.mxu1 %v4487_v15 }
 0x732   : > { %4067 = vmatpush3.bf16.msra.mxu0 %v4488_v36  ;;  %4095 = vmatpush3.bf16.msra.mxu1 %v4489_v49 }
 0x733   : > { %4068 = vmatprep.subr.bf16.mxu0 %v4490_v50  ;;  %4096 = vmatprep.subr.bf16.mxu1 %v4491_v52 }
 0x734   : > { %2803 = vmatmul.mubr.bf16.gmra.mxu0 %v2545_v56  ;;  %2856 = vmatmul.mubr.bf16.gmra.mxu1 %v2545_v56 }
 0x736   : > { %4069 = vmatpush3.bf16.msra.mxu0 %v4492_v51  ;;  %4097 = vmatpush3.bf16.msra.mxu1 %v4493_v57 }
 0x737   : > { %4070 = vmatprep.subr.bf16.mxu0 %v4494_v45  ;;  %4098 = vmatprep.subr.bf16.mxu1 %v4495_v29 }
 0x73a   : > { %4071 = vmatpush3.bf16.msra.mxu0 %v4496_v54  ;;  %4099 = vmatpush3.bf16.msra.mxu1 %v4497_v4 }
 0x73b   : > { %4072 = vmatprep.subr.bf16.mxu0 %v4498_v30  ;;  %4100 = vmatprep.subr.bf16.mxu1 %v4499_v33 }
 0x73e   : > { %4073 = vmatpush3.bf16.msra.mxu0 %v4500_v21  ;;  %4101 = vmatpush3.bf16.msra.mxu1 %v4501_v34 }
 0x73f   : > { %4074 = vmatprep.subr.bf16.mxu0 %v4502_v42  ;;  %4102 = vmatprep.subr.bf16.mxu1 %v4503_v59 }
 0x742   : > { %4075 = vmatpush3.bf16.msra.mxu0 %v4504_v16  ;;  %4103 = vmatpush3.bf16.msra.mxu1 %v4505_v12 }
 0x743   : > { %4076 = vmatprep.subr.bf16.mxu0 %v4506_v60  ;;  %4104 = vmatprep.subr.bf16.mxu1 %v4507_v61 }
 0x746   : > { %4077 = vmatpush3.bf16.msra.mxu0 %v4508_v17  ;;  %4105 = vmatpush3.bf16.msra.mxu1 %v4509_v22 }
 0x747   : > { %4078 = vmatprep.subr.bf16.mxu0 %v4510_v27  ;;  %4106 = vmatprep.subr.bf16.mxu1 %v4511_v24 }
 0x74a   : > { %4079 = vmatpush3.bf16.msra.mxu0 %v4512_v62  ;;  %4107 = vmatpush3.bf16.msra.mxu1 %v4513_v25 }
 0x7ec   : > { %v2794_v5 = vpop.f32.mrf.mxu0  ;;  %v2847_v8 = vpop.f32.mrf.mxu1 }
 0x7ed   : > { %v5603_v43 = vadd.f32 %v2794_v5, %v5588_v28  ;;  %v5606_v38 = vadd.f32 %v2847_v8, %v5592_v1 }
 0x7ee   : > { %v2796_v9 = vpop.f32.mrf.mxu0  ;;  %v2849_v53 = vpop.f32.mrf.mxu1 }
 0x7ef   : > { %v2866_v11 = vmul.f32 %v5603_v43, %v5603_v43  ;;  %v2868_v40 = vmul.f32 %v5606_v38, %v5606_v38  ;;  %v5613_v10 = vadd.f32 %v2796_v9, %v5596_v2  ;;  %v5616_v55 = vadd.f32 %v2849_v53, %v5600_v3 }
 0x7f0   : > { %v2798_v14 = vpop.f32.mrf.mxu0  ;;  %v2851_v58 = vpop.f32.mrf.mxu1 }
 0x7f1   : > { %v2882_v20 = vmul.f32 %v2866_v11, %v5603_v43  ;;  %v2884_v23 = vmul.f32 %v2868_v40, %v5606_v38  ;;  %v2867_v18 = vmul.f32 %v5613_v10, %v5613_v10  ;;  %v2869_v26 = vmul.f32 %v5616_v55, %v5616_v55 }
 0x7f2   : > { %v5625_v32 = vadd.f32 %v2798_v14, %v5588_v28  ;;  %v5628_v13 = vadd.f32 %v2851_v58, %v5592_v1  ;;  %v2800_v39 = vpop.f32.mrf.mxu0  ;;  %v2853_v7 = vpop.f32.mrf.mxu1 }
 0x7f3   : > { %v2898_v56 = vmul.f32 0.044715, %v2882_v20  ;;  %v2900_v41 = vmul.f32 0.044715, %v2884_v23  ;;  %v2883_v46 = vmul.f32 %v2867_v18, %v5613_v10  ;;  %v2885_v47 = vmul.f32 %v2869_v26, %v5616_v55 }
 0x7f4   : > { %v2870_v48 = vmul.f32 %v5625_v32, %v5625_v32  ;;  %v2872_v6 = vmul.f32 %v5628_v13, %v5628_v13  ;;  %v5637_v15 = vadd.f32 %v2800_v39, %v5596_v2  ;;  %v5640_v36 = vadd.f32 %v2853_v7, %v5600_v3  ;;  %v2804_v49 = vpop.f32.mrf.mxu0  ;;  %v2857_v50 = vpop.f32.mrf.mxu1 }
 0x7f5   : > { %v2914_v52 = vadd.f32 %v2898_v56, %v5603_v43  ;;  %v2916_v51 = vadd.f32 %v2900_v41, %v5606_v38  ;;  %v2899_v57 = vmul.f32 0.044715, %v2883_v46  ;;  %v2901_v45 = vmul.f32 0.044715, %v2885_v47 }
 0x7f6   : > { %v2886_v29 = vmul.f32 %v2870_v48, %v5625_v32  ;;  %v2888_v54 = vmul.f32 %v2872_v6, %v5628_v13  ;;  %v2871_v4 = vmul.f32 %v5637_v15, %v5637_v15  ;;  %v2873_v30 = vmul.f32 %v5640_v36, %v5640_v36  ;;  %v2806_v59 = vpop.f32.mrf.mxu0  ;;  %v2859_v17 = vpop.f32.mrf.mxu1 }
 0x7f7   : > { %v2930_v33 = vmul.f32 0.7978846, %v2914_v52  ;;  %v2932_v21 = vmul.f32 0.7978846, %v2916_v51  ;;  %v2915_v34 = vadd.f32 %v2899_v57, %v5613_v10  ;;  %v2917_v42 = vadd.f32 %v2901_v45, %v5616_v55 }
 0x7f8   : > { %v2902_v16 = vmul.f32 0.044715, %v2886_v29  ;;  %v2904_v12 = vmul.f32 0.044715, %v2888_v54  ;;  %v2887_v60 = vmul.f32 %v2871_v4, %v5637_v15  ;;  %v2889_v61 = vmul.f32 %v2873_v30, %v5640_v36  ;;  %v2808_v53 = vpop.f32.mrf.mxu0  ;;  %v2861_v58 = vpop.f32.mrf.mxu1 }
 0x7f9   : > { %4586 = vtanh.f32 %v2930_v33  ;;  %v2931_v22 = vmul.f32 0.7978846, %v2915_v34  ;;  %v2933_v27 = vmul.f32 0.7978846, %v2917_v42  ;;  %v5655_v24 = vadd.f32 %v2804_v49, %v5588_v28 }
 0x7fa   : > { %4588 = vtanh.f32 %v2932_v21  ;;  %v2918_v62 = vadd.f32 %v2902_v16, %v5625_v32  ;;  %v2920_v25 = vadd.f32 %v2904_v12, %v5628_v13  ;;  %v2903_v63 = vmul.f32 0.044715, %v2887_v60  ;;  %v2810_v48 = vpop.f32.mrf.mxu0  ;;  %v2863_v52 = vpop.f32.mrf.mxu1 }
 0x7fb   : > { %4590 = vtanh.f32 %v2931_v22  ;;  %v2905_v5 = vmul.f32 0.044715, %v2889_v61  ;;  %v2874_v8 = vmul.f32 %v5655_v24, %v5655_v24  ;;  %v5662_v9 = vadd.f32 %v2857_v50, %v5592_v1 }
 0x7fc   : > { %4592 = vtanh.f32 %v2933_v27  ;;  %v2934_v11 = vmul.f32 0.7978846, %v2918_v62  ;;  %v2936_v40 = vmul.f32 0.7978846, %v2920_v25  ;;  %v2919_v14 = vadd.f32 %v2903_v63, %v5637_v15 }
 0x7fd   : > { %v2921_v20 = vadd.f32 %v2905_v5, %v5640_v36  ;;  %v2890_v23 = vmul.f32 %v2874_v8, %v5655_v24  ;;  %v2876_v18 = vmul.f32 %v5662_v9, %v5662_v9  ;;  %v5670_v26 = vadd.f32 %v2806_v59, %v5596_v2 }
 0x7fe   : > { %4594 = vtanh.f32 %v2934_v11  ;;  %v2935_v39 = vmul.f32 0.7978846, %v2919_v14  ;;  %v5673_v7 = vadd.f32 %v2859_v17, %v5600_v3  ;;  %v5676_v56 = vadd.f32 %v2808_v53, %v5588_v28 }
 0x7ff   : > { %4596 = vtanh.f32 %v2936_v40  ;;  %v2937_v41 = vmul.f32 0.7978846, %v2921_v20  ;;  %v2906_v46 = vmul.f32 0.044715, %v2890_v23  ;;  %v2892_v47 = vmul.f32 %v2876_v18, %v5662_v9 }
 0x800   : > { %4598 = vtanh.f32 %v2935_v39  ;;  %v2875_v6 = vmul.f32 %v5670_v26, %v5670_v26  ;;  %v2877_v49 = vmul.f32 %v5673_v7, %v5673_v7  ;;  %v2878_v50 = vmul.f32 %v5676_v56, %v5676_v56 }
 0x801   : > { %4600 = vtanh.f32 %v2937_v41  ;;  %v2922_v28 = vadd.f32 %v2906_v46, %v5655_v24  ;;  %v2908_v51 = vmul.f32 0.044715, %v2892_v47  ;;  %v5687_v57 = vadd.f32 %v2861_v58, %v5592_v1 }
 0x802   : > { %v2891_v45 = vmul.f32 %v2875_v6, %v5670_v26  ;;  %v2893_v29 = vmul.f32 %v2877_v49, %v5673_v7  ;;  %v2894_v54 = vmul.f32 %v2878_v50, %v5676_v56  ;;  %v5693_v4 = vadd.f32 %v2810_v48, %v5596_v2 }
 0x803   : > { %v2938_v30 = vmul.f32 0.7978846, %v2922_v28  ;;  %v2924_v33 = vadd.f32 %v2908_v51, %v5662_v9  ;;  %v2880_v21 = vmul.f32 %v5687_v57, %v5687_v57  ;;  %v5699_v34 = vadd.f32 %v2863_v52, %v5600_v3 }
 0x804   : > { %v2907_v1 = vmul.f32 0.044715, %v2891_v45  ;;  %v2909_v42 = vmul.f32 0.044715, %v2893_v29  ;;  %v2910_v59 = vmul.f32 0.044715, %v2894_v54  ;;  %v2879_v16 = vmul.f32 %v5693_v4, %v5693_v4 }
 0x805   : > { %v2940_v12 = vmul.f32 0.7978846, %v2924_v33  ;;  %v2896_v60 = vmul.f32 %v2880_v21, %v5687_v57  ;;  %v2881_v2 = vmul.f32 %v5699_v34, %v5699_v34  ;;  %4602 = vtanh.f32 %v2938_v30 }
 0x806   : > { %v4587_v61 = vpop.eup %4586  ;;  %v2923_v17 = vadd.f32 %v2907_v1, %v5670_v26  ;;  %v2925_v22 = vadd.f32 %v2909_v42, %v5673_v7  ;;  %v2926_v3 = vadd.f32 %v2910_v59, %v5676_v56  ;;  %v2895_v27 = vmul.f32 %v2879_v16, %v5693_v4 }
 0x807   : > { %v4589_v62 = vpop.eup %4588  ;;  %v2912_v25 = vmul.f32 0.044715, %v2896_v60  ;;  %v2897_v63 = vmul.f32 %v2881_v2, %v5699_v34  ;;  %4604 = vtanh.f32 %v2940_v12  ;;  %v2962_v39 = vadd.f32 1.0, %v4587_v61 }
 0x808   : > { %v4591_v5 = vpop.eup %4590  ;;  %v2939_v8 = vmul.f32 0.7978846, %v2923_v17  ;;  %v2941_v53 = vmul.f32 0.7978846, %v2925_v22  ;;  %v2942_v40 = vmul.f32 0.7978846, %v2926_v3 }
 0x809   : > { %v4593_v11 = vpop.eup %4592  ;;  %v2928_v14 = vadd.f32 %v2912_v25, %v5687_v57  ;;  %v2911_v58 = vmul.f32 0.044715, %v2895_v27  ;;  %v2913_v20 = vmul.f32 0.044715, %v2897_v63  ;;  %v2963_v23 = vadd.f32 1.0, %v4591_v5 }
 0x80a   : > { %4606 = vtanh.f32 %v2939_v8  ;;  %v2964_v48 = vadd.f32 1.0, %v4589_v62  ;;  %v2965_v33 = vadd.f32 1.0, %v4593_v11  ;;  %v2978_v21 = vmul.f32 0.5, %v2962_v39 }
 0x80b   : > { %v4595_v18 = vpop.eup %4594  ;;  %4608 = vtanh.f32 %v2941_v53  ;;  %v2944_v41 = vmul.f32 0.7978846, %v2928_v14  ;;  %v2927_v46 = vadd.f32 %v2911_v58, %v5693_v4  ;;  %v2929_v49 = vadd.f32 %v2913_v20, %v5699_v34 }
 0x80c   : > { %v4597_v47 = vpop.eup %4596  ;;  %v2966_v6 = vadd.f32 1.0, %v4595_v18  ;;  %4610 = vtanh.f32 %v2942_v40  ;;  %v2979_v51 = vmul.f32 0.5, %v2963_v23  ;;  %v2980_v59 = vmul.f32 0.5, %v2964_v48 }
 0x80d   : > { %v4599_v50 = vpop.eup %4598  ;;  %v2968_v52 = vadd.f32 1.0, %v4597_v47  ;;  %4612 = vtanh.f32 %v2944_v41  ;;  %v2943_v28 = vmul.f32 0.7978846, %v2927_v46  ;;  %v2945_v54 = vmul.f32 0.7978846, %v2929_v49 }
 0x80e   : > { %v4601_v45 = vpop.eup %4600  ;;  %v2982_v29 = vmul.f32 0.5, %v2966_v6  ;;  %v2967_v30 = vadd.f32 1.0, %v4599_v50  ;;  %v2981_v12 = vmul.f32 0.5, %v2965_v33  ;;  %v2995_v17 = vmul.f32 %v2979_v51, %v5613_v10 }
 0x80f   : > { %v2984_v1 = vmul.f32 0.5, %v2968_v52  ;;  %4614 = vtanh.f32 %v2943_v28  ;;  %v2969_v42 = vadd.f32 1.0, %v4601_v45  ;;  %v2994_v3 = vmul.f32 %v2978_v21, %v5603_v43 }
 0x810   : > { %4616 = vtanh.f32 %v2945_v54  ;;  %v2983_v16 = vmul.f32 0.5, %v2967_v30  ;;  %v2998_v60 = vmul.f32 %v2982_v29, %v5625_v32  ;;  %v2997_v27 = vmul.f32 %v2981_v12, %v5616_v55 }
 0x811   : > { %v2985_v2 = vmul.f32 0.5, %v2969_v42  ;;  %v3000_v61 = vmul.f32 %v2984_v1, %v5628_v13  ;;  %v2996_v25 = vmul.f32 %v2980_v59, %v5606_v38 }
 0x812   : > { %v2999_v22 = vmul.f32 %v2983_v16, %v5637_v15  ;;  %v4603_v5 = vpop.eup %4602  ;;  %v3010_v8 = vpack.c.bf16 %v2998_v60, %v2994_v3 }
 0x813   : > { %v3001_v62 = vmul.f32 %v2985_v2, %v5640_v36  ;;  %v3012_v11 = vpack.c.bf16 %v3000_v61, %v2996_v25  ;;  %v2970_v14 = vadd.f32 1.0, %v4603_v5 }
 0x814   : > { %v3011_v63 = vpack.c.bf16 %v2999_v22, %v2995_v17  ;;  %v4605_v32 = vpop.eup %4604 }
 0x815   : > { %v3013_v53 = vpack.c.bf16 %v3001_v62, %v2997_v27  ;;  %v2972_v58 = vadd.f32 1.0, %v4605_v32  ;;  %v2986_v6 = vmul.f32 0.5, %v2970_v14 }
 0x816   : > { %3310 = vmatprep.mubr.bf16.mxu0 %v3011_v63 }
 0x817   : > { %v4607_v13 = vpop.eup %4606  ;;  %3359 = vmatprep.mubr.bf16.mxu1 %v3013_v53  ;;  %3311 = vmatmul.mubr.bf16.vlgmr.msra.gmra.mxu0 %v3010_v8  ;;  %v2988_v50 = vmul.f32 0.5, %v2972_v58  ;;  %v3002_v33 = vmul.f32 %v2986_v6, %v5655_v24 }
 0x818   : > { %v4609_v10 = vpop.eup %4608  ;;  %3360 = vmatmul.mubr.bf16.vlgmr.msra.gmra.mxu1 %v3012_v11  ;;  %v2971_v43 = vadd.f32 1.0, %v4607_v13 }
 0x819   : > { %v4611_v15 = vpop.eup %4610  ;;  %v2973_v55 = vadd.f32 1.0, %v4609_v10  ;;  %v3004_v1 = vmul.f32 %v2988_v50, %v5662_v9 }
 0x81a   : > { %v4613_v40 = vpop.eup %4612  ;;  %v2974_v36 = vadd.f32 1.0, %v4611_v15  ;;  %v2987_v41 = vmul.f32 0.5, %v2971_v43 }
 0x81b   : > { %v2976_v38 = vadd.f32 1.0, %v4613_v40  ;;  %v2989_v48 = vmul.f32 0.5, %v2973_v55 }
 0x81c   : > { %v4615_v20 = vpop.eup %4614  ;;  %v2990_v23 = vmul.f32 0.5, %v2974_v36  ;;  %v3003_v51 = vmul.f32 %v2987_v41, %v5670_v26  ;;  %v3084_v26 = vsub.s32 6, %v5051_v37 }
 0x81d   : > { %v4617_v18 = vpop.eup %4616  ;;  %v2975_v39 = vadd.f32 1.0, %v4615_v20  ;;  %v2992_v46 = vmul.f32 0.5, %v2976_v38  ;;  %v3005_v54 = vmul.f32 %v2989_v48, %v5673_v7 }
 0x81e   : > { %v2977_v47 = vadd.f32 1.0, %v4617_v18  ;;  %v3006_v28 = vmul.f32 %v2990_v23, %v5676_v56  ;;  %v3085_v7 = vrot.slane %v5466_v35, %v3084_v26 }
 0x81f   : > { %v2991_v49 = vmul.f32 0.5, %v2975_v39  ;;  %v3008_v29 = vmul.f32 %v2992_v46, %v5687_v57 }
 0x820   : > { %v2993_v52 = vmul.f32 0.5, %v2977_v47  ;;  %v3014_v59 = vpack.c.bf16 %v3006_v28, %v3002_v33 }
 0x821   : > { %v3007_v45 = vmul.f32 %v2991_v49, %v5693_v4  ;;  %v3016_v16 = vpack.c.bf16 %v3008_v29, %v3004_v1 }
 0x822   : > { %v3009_v30 = vmul.f32 %v2993_v52, %v5699_v34 }
 0x823   : > { %v3015_v21 = vpack.c.bf16 %v3007_v45, %v3003_v51 }
 0x824   : > { %v3017_v42 = vpack.c.bf16 %v3009_v30, %v3005_v54 }
 0x825   : > { %3318 = vmatprep.mubr.bf16.mxu0 %v3015_v21 }
 0x826   : > { %3367 = vmatprep.mubr.bf16.mxu1 %v3017_v42  ;;  %3319 = vmatmul.mubr.bf16.gmra.mxu0 %v3014_v59  ;;  %v3426_v59 = vsub.s32 7, %v5051_v37 }
 0x827   : > { %3368 = vmatmul.mubr.bf16.gmra.mxu1 %v3016_v16 }
 0x8d7   : > { %v4080_v56 = vpop.f32.mrf.mxu0 }
 0x8d8   : > { %v4108_v57 = vpop.f32.mrf.mxu1 }
 0x8d9   : > { %v4081_v4 = vpop.f32.mrf.mxu0 }
 0x8da   : > { %v4082_v34 = vadd.f32 %v4081_v4, %v4080_v56  ;;  %v4109_v12 = vpop.f32.mrf.mxu1  ;;  %v3427_v56 = vrot.slane %v5466_v35, %v3426_v59 }
 0x8db   : > { %v4083_v24 = vpop.f32.mrf.mxu0  ;;  %v4110_v2 = vadd.f32 %v4109_v12, %v4108_v57  ;;  %v3977_v12 = vld [vmem:[%s4970_s12 + $0x8] ss:$0 sm:$0xff] }
 0x8dc   : > { %v3313_v60 = vadd.f32 %v4082_v34, %v3085_v7  ;;  %v4111_v9 = vpop.f32.mrf.mxu1 }
 0x8dd   : > { %v4084_v61 = vpop.f32.mrf.mxu0 }
 0x8de   : > { %v3362_v17 = vadd.f32 %v4110_v2, %v3313_v60  ;;  %v4085_v22 = vadd.f32 %v4084_v61, %v4083_v24  ;;  %v4112_v3 = vpop.f32.mrf.mxu1 }
 0x8df   : > { %v4113_v62 = vadd.f32 %v4112_v3, %v4111_v9 }
 0x8e0   : > { %v3316_v27 = vadd.f32 %v4085_v22, %v3085_v7  ;;  %v3376_v25 = vadd.f32 %v3362_v17, %v5538_v31 }
 0x8e2   : > { %v3365_v63 = vadd.f32 %v4113_v62, %v3316_v27  ;;  %3380 = vadd.xlane.f32.xlu1 %v3376_v25 }
 0x8e4   : > { %v3377_v5 = vadd.f32 %v3365_v63, %v5540_v44 }
 0x8e6   : > { %v4086_v8 = vpop.f32.mrf.mxu0  ;;  %3382 = vadd.xlane.f32.xlu0 %v3377_v5 }
 0x8e7   : > { %v4114_v53 = vpop.f32.mrf.mxu1 }
 0x8e8   : > { %v4087_v32 = vpop.f32.mrf.mxu0 }
 0x8e9   : > { %v4088_v11 = vadd.f32 %v4087_v32, %v4086_v8  ;;  %v4115_v13 = vpop.f32.mrf.mxu1 }
 0x8ea   : > { %v4089_v10 = vpop.f32.mrf.mxu0  ;;  %v4116_v43 = vadd.f32 %v4115_v13, %v4114_v53 }
 0x8eb   : > { %v3321_v15 = vadd.f32 %v4088_v11, %v3085_v7  ;;  %v4117_v40 = vpop.f32.mrf.mxu1 }
 0x8ec   : > { %v4090_v55 = vpop.f32.mrf.mxu0 }
 0x8ed   : > { %v3370_v14 = vadd.f32 %v4116_v43, %v3321_v15  ;;  %v4091_v36 = vadd.f32 %v4090_v55, %v4089_v10  ;;  %v4118_v58 = vpop.f32.mrf.mxu1 }
 0x8ee   : > { %v4119_v31 = vadd.f32 %v4118_v58, %v4117_v40 }
 0x8ef   : > { %v3324_v38 = vadd.f32 %v4091_v36, %v3085_v7  ;;  %v3378_v20 = vadd.f32 %v3370_v14, %v5549_v19 }
 0x8f1   : > { %v3373_v23 = vadd.f32 %v4119_v31, %v3324_v38  ;;  %3384 = vadd.xlane.f32.xlu1 %v3378_v20 }
 0x8f3   : > { %v3379_v44 = vadd.f32 %v3373_v23, %v5547_v0 }
 0x8f5   : > { %3386 = vadd.xlane.f32.xlu0 %v3379_v44 }
 0x96b   : > { %v3381_v18 = vpop.xlane.xlu1 %3380 }
 0x96c   : > { %v3388_v39 = vmul.f32 0.0078125, %v3381_v18 }
 0x96e   : > { %v3392_v41 = vsub.f32 %v3376_v25, %v3388_v39 }
 0x96f   : > { %v3383_v46 = vpop.xlane.xlu0 %3382 }
 0x970   : > { %v3389_v47 = vmul.f32 0.0078125, %v3383_v46  ;;  %v3396_v48 = vmul.f32 %v3392_v41, %v3392_v41 }
 0x972   : > { %v3393_v6 = vsub.f32 %v3377_v5, %v3389_v47  ;;  %3400 = vadd.xlane.f32.xlu1 %v3396_v48 }
 0x974   : > { %v3397_v49 = vmul.f32 %v3393_v6, %v3393_v6 }
 0x976   : > { %3402 = vadd.xlane.f32.xlu0 %v3397_v49 }
 0x97a   : > { %v3385_v50 = vpop.xlane.xlu1 %3384 }
 0x97b   : > { %v3390_v52 = vmul.f32 0.0078125, %v3385_v50 }
 0x97d   : > { %v3394_v28 = vsub.f32 %v3378_v20, %v3390_v52 }
 0x97e   : > { %v3387_v51 = vpop.xlane.xlu0 %3386 }
 0x97f   : > { %v3391_v19 = vmul.f32 0.0078125, %v3387_v51  ;;  %v3398_v45 = vmul.f32 %v3394_v28, %v3394_v28 }
 0x981   : > { %v3395_v29 = vsub.f32 %v3379_v44, %v3391_v19  ;;  %3404 = vadd.xlane.f32.xlu1 %v3398_v45 }
 0x983   : > { %v3399_v0 = vmul.f32 %v3395_v29, %v3395_v29 }
 0x985   : > { %3406 = vadd.xlane.f32.xlu0 %v3399_v0 }
 0x9fb   : > { %v3401_v54 = vpop.xlane.xlu1 %3400 }
 0x9fc   : > { %v3408_v30 = vmul.f32 0.0078125, %v3401_v54 }
 0x9fe   : > { %v3412_v33 = vadd.f32 1e-12, %v3408_v30 }
 0x9ff   : > { %v3403_v21 = vpop.xlane.xlu0 %3402 }
 0xa00   : > { %4618 = vrsqrt.f32 %v3412_v33  ;;  %v3409_v1 = vmul.f32 0.0078125, %v3403_v21 }
 0xa02   : > { %v3413_v42 = vadd.f32 1e-12, %v3409_v1 }
 0xa04   : > { %4620 = vrsqrt.f32 %v3413_v42 }
 0xa0a   : > { %v3405_v16 = vpop.xlane.xlu1 %3404 }
 0xa0b   : > { %v3410_v26 = vmul.f32 0.0078125, %v3405_v16 }
 0xa0d   : > { %v4619_v57 = vpop.eup %4618  ;;  %v3414_v7 = vadd.f32 1e-12, %v3410_v26 }
 0xa0e   : > { %v3420_v4 = vmul.f32 %v4619_v57, %v3392_v41  ;;  %v3407_v34 = vpop.xlane.xlu0 %3406 }
 0xa0f   : > { %4622 = vrsqrt.f32 %v3414_v7  ;;  %v3411_v24 = vmul.f32 0.0078125, %v3407_v34 }
 0xa10   : > { %v3428_v60 = vmul.f32 %v3427_v56, %v3420_v4 }
 0xa11   : > { %v4621_v2 = vpop.eup %4620  ;;  %v3415_v9 = vadd.f32 1e-12, %v3411_v24 }
 0xa12   : > { %v3436_v61 = vadd.f32 %v3977_v12, %v3428_v60  ;;  %v3421_v17 = vmul.f32 %v4621_v2, %v3393_v6 }
 0xa13   : > { %4624 = vrsqrt.f32 %v3415_v9 }
 0xa14   : > { %3440 = vst [vmem:[%s5825_s10] sm:$0xff] %v3436_v61  ;;  %v3429_v22 = vmul.f32 %v3427_v56, %v3421_v17 }
 0xa16   : > { %v3437_v3 = vadd.f32 %v3977_v12, %v3429_v22 }
 0xa18   : > { %3441 = vst [vmem:[%s5825_s10 + $0x8] sm:$0xff] %v3437_v3 }
 0xa1c   : > { %v4623_v35 = vpop.eup %4622 }
 0xa1d   : > { %v3422_v27 = vmul.f32 %v4623_v35, %v3394_v28 }
 0xa1f   : > { %v3430_v62 = vmul.f32 %v3427_v56, %v3422_v27 }
 0xa20   : > { %v4625_v25 = vpop.eup %4624 }
 0xa21   : > { %v3438_v63 = vadd.f32 %v3977_v12, %v3430_v62  ;;  %v3423_v5 = vmul.f32 %v4625_v25, %v3395_v29 }
 0xa23   : > { %3442 = vst [vmem:[%s5825_s10 + $0x10] sm:$0xff] %v3438_v63  ;;  %v3431_v8 = vmul.f32 %v3427_v56, %v3423_v5  ;;  %3447 = sbr.rel (%p3978_p10) target bundleno = 2847 (0xb1f), region = 76 }
 0xa25   : > { %v3439_v53 = vadd.f32 %v3977_v12, %v3431_v8 }
 0xa27   : > { %3443 = vst [vmem:[%s5825_s10 + $0x18] sm:$0xff] %v3439_v53 }
 0xa28   : > { %v4631_v32 = vld [vmem:[%s5823_s8 + $0x38] sm:$0xff]   ;;  %v4793_v11 = vmov 0.0   ;;  %v4632_v13 = vld [vmem:[%s5823_s8 + $0x30] sm:$0xff]   ;;  %vm4794_vm7 = vmmov 0   ;;  %v4633_v10 = vld [vmem:[%s5823_s8 + $0x28] sm:$0xff]   ;;  %v3449_v40 = vpack.c.bf16 %v3438_v63, %v3438_v63  ;;  %v3448_v14 = vpack.c.bf16 %v3436_v61, %v3436_v61 }
 0xa29   : > { %4265 = vmatprep.subr.bf16.mxu0 %v4793_v11  ;;  %4281 = vmatprep.mubr.msk.bf16.mxu0 %vm4794_vm7, %v4793_v11  ;;  %v4634_v15 = vld [vmem:[%s5823_s8 + $0x20] sm:$0xff]   ;;  %v4635_v43 = vld [vmem:[%s5823_s8 + $0x18] sm:$0xff]   ;;  %v4636_v55 = vld [vmem:[%s5823_s8 + $0x10] sm:$0xff]   ;;  %vm3478_vm8 = vcmask 1041409   ;;  %v4795_v48 = vmov 1966171168  }
 0xa2a   : > { %4266 = vmatpush3.bf16.msra.mxu0 %v4631_v32  ;;  %v3476_v36 = vunpack.c.l.b16 %v3449_v40  ;;  %v4637_v58 = vld [vmem:[%s5823_s8 + $0x8] sm:$0xff]   ;;  %v3475_v38 = vunpack.c.l.b16 %v3448_v14  ;;  %v4638_v20 = vld [vmem:[%s5823_s8] sm:$0xff]   ;;  %v3573_v6 = vunpack.c.l.s4 %v4795_v48 }
 0xa2b   : > { %4267 = vmatprep.subr.bf16.mxu0 %v4793_v11  ;;  %v3979_v18 = vld [vmem:[%s5842_s11] ss:$0 sm:$0xff] }
 0xa2c   : > { %v3477_v31 = vrot.slane %v3476_v36, 7  ;;  %v3574_v50 = vunpack.c.0.s8 %v3573_v6 }
 0xa2e   : > { %4268 = vmatpush3.bf16.msra.mxu0 %v4632_v13  ;;  %v3479_v23 = vsel %vm3478_vm8, %v3477_v31, %v3475_v38  ;;  %v3577_v52 = vsub.s32 %v3574_v50, %v5051_v37 }
 0xa2f   : > { %4269 = vmatprep.subr.bf16.mxu0 %v4793_v11  ;;  %v3480_v44 = vpack.c.b16 %v3479_v23, %v3479_v23 }
 0xa32   : > { %4270 = vmatpush3.bf16.msra.mxu0 %v4633_v10 }
 0xa33   : > { %4271 = vmatprep.subr.bf16.mxu0 %v4793_v11 }
 0xa36   : > { %4272 = vmatpush3.bf16.msra.mxu0 %v4634_v15 }
 0xa37   : > { %4273 = vmatprep.subr.bf16.mxu0 %v4793_v11 }
 0xa3a   : > { %4274 = vmatpush3.bf16.msra.mxu0 %v4635_v43 }
 0xa3b   : > { %4275 = vmatprep.subr.bf16.mxu0 %v4793_v11 }
 0xa3e   : > { %4276 = vmatpush3.bf16.msra.mxu0 %v4636_v55 }
 0xa3f   : > { %4277 = vmatprep.subr.bf16.mxu0 %v4793_v11 }
 0xa42   : > { %4278 = vmatpush3.bf16.msra.mxu0 %v4637_v58 }
 0xa43   : > { %4279 = vmatprep.subr.bf16.mxu0 %v4793_v11 }
 0xa46   : > { %4280 = vmatpush3.bf16.msra.mxu0 %v4638_v20 }
 0xa49   : > { %4282 = vmatmul.mubr.bf16.vlgmr.msra.gmra.mxu0 %v3480_v44 }
 0xb09   : > { %v3564_v39 = vpop.f32.mrf.mxu0 }
 0xb0a   : > { %v3565_v41 = vadd.f32 %v3979_v18, %v3564_v39 }
 0xb0b   : > { %v4283_v46 = vpop.f32.mrf.mxu0 }
 0xb0c   : > { %4639 = vtanh.f32 %v3565_v41 }
 0xb0d   : > { %v3567_v47 = vpop.f32.mrf.mxu0 }
 0xb0f   : > { %v4284_v49 = vpop.f32.mrf.mxu0 }
 0xb19   : > { %v4640_v28 = vpop.eup %4639 }
 0xb1a   : > { %v3578_v51 = vrot.slane %v4640_v28, %v3577_v52 }
 0xb1c   : > { %v3579_v19 = vcombine.high %v3578_v51, %v3578_v51  ;;  %3988 = vst.sshfl [vmem:[#allocation9] sm:$0x1 pattern:$0x73625140] %v3578_v51 }
 0xb1e   : > { %3989 = vst.sshfl [vmem:[#allocation9 + $0x1] sm:$0x1 pattern:$0x73625140] %v3579_v19 }
 0xb1f PF: > { %s5843_s30 = sadd.s32 4294967295, %s4779_s22   ;;  %s4796_s14 = smov [#allocation9]  }
 0xb20   : > { %p5782_p3 = scmp.eq.s32.totalorder %s5843_s30, 1  ;;  %s3617_s2 = sshll.u32 %s4796_s14, 4  ;;  %s3618_s2 = int_to_ptr.vmem [resolvable:$true] %s3617_s2 }
 0xb21   : > { %s4697_s15 = scalar_lea.vmem %s3618_s2, 32  ;;  %p4704_p8 = scmp.lt.s32.totalorder %s3618_s2, %s3618_s2 }
 0xb22   : > { %p4698_p4 = scmp.ne.s32.totalorder %s3618_s2, %s4697_s15  ;;  %p4705_p11 = scmp.lt.s32.totalorder %s4697_s15, %s4697_s15 }
 0xb24   : > { %p4699_p5 = pnand %p4698_p4, %p5782_p3  ;;  %p4706_p12 = por %p4705_p11, %p4704_p8 }
 0xb26   : > { %p4700_p6 = pneg %p4699_p5 }
 0xb28   : > { %p4707_p13 = pnand %p4706_p12, %p4700_p6 }
 0xb2a   : > { %4710 = shalt.err (!%p4707_p13)
}
 0xb2b   : > { %s4797_s13 = smov 16   ;;  %s4798_s9 = smov 1  }
 0xb2c   : > { %s5845_s26 = sld [smem:[#allocation19_spill]] }
 0xb32   : > { %4293 = dma.vmem_to_hbm [thread:$0]  (%p5782_p3), %s3618_s2, 32, %s5845_s26, [#allocation6], %s4797_s13, %s4797_s13, %s4798_s9  }
 0xb33   : > { %4754 = dma.done.wait (%p5782_p3), [#allocation6], 32  }
 0xb34   : > { %4756 = vsyncadd (%p5782_p3), [#allocation6], 4294967264 }
 0xb35 PF: > { %s29_s22 = sadd.s32 1, %s4779_s22   ;;  %s5846_s25 = sld [smem:[#allocation13_spill]] }
 0xb36   : > { %p26_p0 = scmp.ge.s32.totalorder %s29_s22, 4   ;;  %s5847_s19 = sld [smem:[#allocation15_spill]] }
 0xb37   : > { %s5848_s24 = sld [smem:[#allocation14_spill]]  ;;  %s5849_s17 = smov %s4763_s18 }
 0xb38   : > { %s5851_s20 = smov %s4775_s21 }
 0xb39   :  { %28 = sbr.rel (!%p26_p0) target bundleno = 12 (0xc), region = 160 }
 0xb3b   : > { %s5850_s18 = smov %s5846_s25 }
 0xb3d   : > { %s5852_s21 = smov %s5848_s24 }
 0xb3e   :  { %3642 = vsyncpa [#allocation5], 1 }
 0xb3f   :  { %3644 = vsyncpa [#allocation5 + $0x1], 1 }
 0xb40   :  { %3645 = vsyncpa [#allocation8], 1 }
 0xb41   :  { %3647 = vsyncpa [#allocation8 + $0x1], 1 }
 0xb42   :  { %3648 = vsyncpa [#allocation6], 1 }
 0xb43   :  { %3650 = vsyncpa [#allocation6 + $0x1], 1 }

</bundles_post_ra>
